<compile_context>
chip_gen: v7x
topology: tpu7x:2x2x1
jax: 0.10.0
libtpu: 0.0.40
codegen_flags: <defaults>
</compile_context>

<pallas_src>
import functools

import jax
import jax.numpy as jnp
from jax import lax
from jax.experimental import pallas as pl
from jax.experimental.pallas import tpu as pltpu


def _ssd_kernel(a_ref, x_ref, b_ref, c_ref, y_ref, s_ref, *,
                n_heads, d_head, d_state, chunks_per_step):
    h, p, n = n_heads, d_head, d_state
    l = a_ref.shape[2]
    f32 = jnp.float32

    # ---- state init at the first chunk-step of each batch -------------------
    @pl.when(pl.program_id(1) == 0)
    def _init_state():
        s_ref[...] = jnp.zeros_like(s_ref)

    # ---- per-call constants (hoisted out of the chunk / head loops) ---------
    ii = lax.broadcasted_iota(jnp.int32, (l, l), 0)
    jj = lax.broadcasted_iota(jnp.int32, (l, l), 1)
    tril_f = (jj <= ii).astype(f32)                          # (l, l) causal mask

    ii2 = lax.broadcasted_iota(jnp.int32, (l, 2 * l), 0)
    jj2 = lax.broadcasted_iota(jnp.int32, (l, 2 * l), 1)
    jj2m = jj2 - jnp.where(jj2 >= l, l, 0)                   # column index mod l
    tril2_f = (jj2m <= ii2).astype(f32)                      # (l, 2l) = [tril | tril]

    # head -> (h*n)-lane block-expansion matrix (0/1); expands per-(row, head)
    # factors to lane-dense (l, h*n) column scales via one small MXU matmul.
    rr = lax.broadcasted_iota(jnp.int32, (h, h * n), 0)
    cc = lax.broadcasted_iota(jnp.int32, (h, h * n), 1)
    expand_n = ((cc >= rr * n) & (cc < rr * n + n)).astype(f32)   # (h, h*n)

    # lane masks used to build block-diagonal pair operands and per-pair
    # column scales (left head -> lanes [0, p), right head -> lanes [p, 2p)).
    lane_p = lax.broadcasted_iota(jnp.int32, (1, 2 * p), 1)
    mP_lo = (lane_p < p).astype(f32)                         # (1, 2p)
    mP_hi = (lane_p >= p).astype(f32)
    lane_n = lax.broadcasted_iota(jnp.int32, (1, 2 * n), 1)
    mN_lo = (lane_n < n).astype(f32)                         # (1, 2n)
    mN_hi = (lane_n >= n).astype(f32)

    # ---- chunk loop (static unroll; CS is kept small by the wrapper) --------
    for ci in range(chunks_per_step):
        A = a_ref[0, ci].astype(f32)                         # (l, h)

        # Inclusive cumulative sum along l via the MXU (no XLU transpose).
        A_cs = jnp.dot(tril_f, A, preferred_element_type=f32)        # (l, h)
        last = A_cs[l - 1:l, :]                                       # (1, h)

        # Per-head midpoint shift keeps both rank-1 exponentials in f32 range
        # (never worse than the reference's own exp(A_cumsum)).
        m = 0.5 * (jnp.max(A_cs, axis=0, keepdims=True)
                   + jnp.min(A_cs, axis=0, keepdims=True))            # (1, h)

        e_pos = jnp.exp(A_cs - m)                                      # (l, h)
        e_neg = jnp.exp(m - A_cs)                                      # (l, h)
        cd_h = jnp.exp(last)                                           # (1, h) chunk decay
        g_h = jnp.exp(last - m)                                        # (1, h) state-in scale
        em_h = jnp.exp(m)                                              # (1, h) state-out scale

        # Expand (l, h) exponentials to lane-dense (l, h*n) column scales and
        # fold them into C / B once per chunk for all heads.
        e_pos_c = jnp.dot(e_pos, expand_n, preferred_element_type=f32)  # (l, h*n)
        e_neg_c = jnp.dot(e_neg, expand_n, preferred_element_type=f32)  # (l, h*n)

        X_all = x_ref[0, ci].astype(f32)                               # (l, h*p)
        C_sc = c_ref[0, ci].astype(f32) * e_pos_c                      # (l, h*n)
        B_sc = b_ref[0, ci].astype(f32) * e_neg_c                      # (l, h*n)

        # ---- head pairs: every load/store/matmul result is 128-lane dense ---
        for k in range(h // 2):
            cp = slice(2 * k * p, 2 * k * p + 2 * p)        # 128-lane aligned
            cn = slice(2 * k * n, 2 * k * n + 2 * n)

            X_pair = X_all[:, cp]                            # (l, 2p)
            Cp = C_sc[:, cn]                                 # (l, 2n)
            Bp = B_sc[:, cn]                                 # (l, 2n)

            # Block-diagonal pair operands (upper block = left head, lower
            # block = right head); keeps the two heads independent inside the
            # shared matmuls.
            X_bd = jnp.concatenate([X_pair * mP_lo, X_pair * mP_hi], axis=0)  # (2l, 2p)
            B_bd = jnp.concatenate([Bp * mN_lo, Bp * mN_hi], axis=0)          # (2l, 2n)

            # Intra-chunk ("diagonal") term, both heads in one matmul chain:
            #   [M1 | M2] = (Csc_pair @ blockdiag(Bsc1, Bsc2)^T) * [tril|tril]
            cbt = lax.dot_general(Cp, B_bd, (((1,), (1,)), ((), ())),
                                  preferred_element_type=f32)                 # (l, 2l)
            y_pair = jnp.dot(cbt * tril2_f, X_bd,
                             preferred_element_type=f32)                      # (l, 2p)

            # Per-pair column scales built from per-head scalars + lane masks.
            cd_pair = cd_h[:, 2 * k:2 * k + 1] * mP_lo + cd_h[:, 2 * k + 1:2 * k + 2] * mP_hi
            g_pair = g_h[:, 2 * k:2 * k + 1] * mP_lo + g_h[:, 2 * k + 1:2 * k + 2] * mP_hi
            em_pair = em_h[:, 2 * k:2 * k + 1] * mP_lo + em_h[:, 2 * k + 1:2 * k + 2] * mP_hi

            # Inter-chunk ("off-diagonal") term from the carried block-diagonal
            # state:  y += Csc_pair @ (S * exp(m))      (exp(Acs) = exp(Acs-m)*exp(m))
            S = s_ref[k]                                                       # (2n, 2p)
            y_pair = y_pair + jnp.dot(Cp, S * em_pair,
                                      preferred_element_type=f32)

            # State recurrence: S <- exp(A_total) * S + exp(A_total - m) * Bsc^T X
            # (blockdiag(B)^T @ blockdiag(X) is exactly block-diagonal.)
            G = lax.dot_general(B_bd, X_bd, (((0,), (0,)), ((), ())),
                                preferred_element_type=f32)                    # (2n, 2p)
            s_ref[k] = cd_pair * S + g_pair * G

            # Lane-dense, unmasked output store (128-lane aligned slice).
            y_ref[0, ci, :, cp] = y_pair.astype(y_ref.dtype)


def mamba2_ssd_y(X, A, B, C, block_len):
    b, s, h, p = X.shape
    n = B.shape[-1]
    assert s % block_len == 0, "seq length must be divisible by block_len"
    # TODO(synk): odd n_heads would need a singleton-head tail path; the module
    # default (8) and all common configs are even.
    assert h % 2 == 0, "kernel processes heads in lane-dense pairs"
    c = s // block_len
    l = block_len

    # Pure reshapes only (no HBM-copying transposes).
    Xf = X.reshape(b, c, l, h * p)
    Af = A.reshape(b, c, l, h)
    Bf = B.reshape(b, c, l, h * n)
    Cf = C.reshape(b, c, l, h * n)

    # Chunks per grid step: amortize per-step overhead while keeping the
    # double-buffered blocks inside a VMEM budget that is safe on v7x (64 MiB
    # physical / 32 MiB scoped) as well as v5e/v6e; also capped for unroll size.
    bytes_per_chunk = 4 * l * (2 * h * p + 2 * h * n + h)      # X + Y + B + C + A, f32
    budget = 20 * 1024 * 1024
    cap = int(min(max(1, budget // (2 * bytes_per_chunk)), 8, c))
    cs = 1
    for d in range(1, cap + 1):
        if c % d == 0:
            cs = d
    n_steps = c // cs

    kernel = functools.partial(_ssd_kernel, n_heads=h, d_head=p, d_state=n,
                               chunks_per_step=cs)

    y = pl.pallas_call(
        kernel,
        out_shape=jax.ShapeDtypeStruct((b, c, l, h * p), jnp.float32),
        grid_spec=pltpu.PrefetchScalarGridSpec(
            num_scalar_prefetch=0,
            # Invariant: axis 1 (chunk steps) must stay innermost + "arbitrary"
            # so the carried state in VMEM scratch is visited in order.
            grid=(b, n_steps),
            in_specs=[
                pl.BlockSpec((1, cs, l, h), lambda bi, si: (bi, si, 0, 0)),
                pl.BlockSpec((1, cs, l, h * p), lambda bi, si: (bi, si, 0, 0)),
                pl.BlockSpec((1, cs, l, h * n), lambda bi, si: (bi, si, 0, 0)),
                pl.BlockSpec((1, cs, l, h * n), lambda bi, si: (bi, si, 0, 0)),
            ],
            out_specs=pl.BlockSpec((1, cs, l, h * p), lambda bi, si: (bi, si, 0, 0)),
            # Block-diagonal per-pair state: (h/2, 2n, 2p) -> lane-dense (32, 128) slabs.
            scratch_shapes=[pltpu.VMEM((h // 2, 2 * n, 2 * p), jnp.float32)],
        ),
        compiler_params=pltpu.CompilerParams(
            dimension_semantics=("parallel", "arbitrary"),
            vmem_limit_bytes=32 * 1024 * 1024),
    )(Af, Xf, Bf, Cf)

    # Free reshape back to (b, seq, h, p).
    return y.reshape(b, s, h, p)


# ---------------- pure-JAX reference (mirrors the PyTorch module) ----------------
def _segsum_ref(x):
    T = x.shape[-1]
    cs = jnp.cumsum(x, axis=-1)
    seg = cs[..., :, None] - cs[..., None, :]
    mask = jnp.tril(jnp.ones((T, T), dtype=bool))
    return jnp.where(mask, seg, -jnp.inf)


def ref_forward(X, A, B, C, block_len):
    b, s, h, p = X.shape
    n = B.shape[-1]
    c = s // block_len
    l = block_len
    Xb = X.reshape(b, c, l, h, p)
    Ab = A.reshape(b, c, l, h).transpose(0, 3, 1, 2)
    Bb = B.reshape(b, c, l, h, n)
    Cb = C.reshape(b, c, l, h, n)
    A_cumsum = jnp.cumsum(Ab, axis=-1)
    L = jnp.exp(_segsum_ref(Ab))
    Y_diag = jnp.einsum('bclhn,bcshn,bhcls,bcshp->bclhp', Cb, Bb, L, Xb)
    decay_states = jnp.exp(A_cumsum[:, :, :, -1:] - A_cumsum)
    states = jnp.einsum('bclhn,bhcl,bclhp->bchpn', Bb, decay_states, Xb)
    init = jnp.zeros_like(states[:, :1])
    states = jnp.concatenate([init, states], axis=1)
    decay_chunk = jnp.exp(_segsum_ref(
        jnp.pad(A_cumsum[:, :, :, -1], ((0, 0), (0, 0), (1, 0)))))
    new_states = jnp.einsum('bhzc,bchpn->bzhpn', decay_chunk, states)
    states = new_states[:, :-1]
    state_decay_out = jnp.exp(A_cumsum)
    Y_off = jnp.einsum('bclhn,bchpn,bhcl->bclhp', Cb, states, state_decay_out)
    return (Y_diag + Y_off).reshape(b, s, h, p)


if __name__ == "__main__":
    # Small shapes consistent with the module defaults (module head/state dims,
    # reduced batch): h*p = 512 and h*n = 128 keep everything 128-lane dense.
    batch_size = 2
    seq_length = 128
    block_len = 64
    n_heads = 8
    d_head = 64
    d_state = 16

    key = jax.random.PRNGKey(0)
    kx, ka, kb, kc = jax.random.split(key, 4)
    X = jax.random.normal(kx, (batch_size, seq_length, n_heads, d_head), jnp.float32)
    # deterministic "parameters" (module: A, B, C are nn.Parameters ~ randn)
    A = jax.random.normal(ka, (batch_size, seq_length, n_heads), jnp.float32)
    B = jax.random.normal(kb, (batch_size, seq_length, n_heads, d_state), jnp.float32)
    C = jax.random.normal(kc, (batch_size, seq_length, n_heads, d_state), jnp.float32)

    Y = jax.block_until_ready(mamba2_ssd_y(X, A, B, C, block_len))

    Y_ref = jax.block_until_ready(ref_forward(X, A, B, C, block_len))
    rel_err = float(jnp.max(jnp.abs(Y - Y_ref)) / (jnp.max(jnp.abs(Y_ref)) + 1e-30))
    assert rel_err < 1e-3, f"mismatch, rel_err={rel_err}"

    print("KERNEL_OK")
</pallas_src>

<mosaic_0001>
module attributes {stable_mosaic.version = 11 : i64} {
  func.func @_ssd_kernel(%arg0: i32, %arg1: i32, %arg2: memref<1x2x64x8xf32, #tpu.memory_space<vmem>>, %arg3: memref<1x2x64x512xf32, #tpu.memory_space<vmem>>, %arg4: memref<1x2x64x128xf32, #tpu.memory_space<vmem>>, %arg5: memref<1x2x64x128xf32, #tpu.memory_space<vmem>>, %arg6: memref<1x2x64x512xf32, #tpu.memory_space<vmem>>, %arg7: memref<4x32x128xf32, #tpu.memory_space<vmem>>) attributes {dimension_semantics = [#tpu.dimension_semantics<parallel>, #tpu.dimension_semantics<arbitrary>], iteration_bounds = array<i64: 2, 1>, scalar_prefetch = 0 : i64, scratch_operands = 1 : i64, tpu.core_type = #tpu.core_type<tc>, window_params = [{transform_indices = @transform_0, window_bounds = array<i64: 1, 2, 64, 8>}, {transform_indices = @transform_1, window_bounds = array<i64: 1, 2, 64, 512>}, {transform_indices = @transform_2, window_bounds = array<i64: 1, 2, 64, 128>}, {transform_indices = @transform_3, window_bounds = array<i64: 1, 2, 64, 128>}, {transform_indices = @transform_4, window_bounds = array<i64: 1, 2, 64, 512>}]} {
    %c0_i32 = arith.constant 0 : i32
    %0 = arith.cmpi eq, %arg1, %c0_i32 : i32
    %1 = arith.extui %0 : i1 to i32
    %c0_i32_0 = arith.constant 0 : i32
    %2 = arith.cmpi ne, %1, %c0_i32_0 : i32
    scf.if %2 {
      %cst_157 = arith.constant 0.000000e+00 : f32
      %552 = vector.broadcast %cst_157 : f32 to vector<4x32x128xf32>
      %c0_158 = arith.constant 0 : index
      %c0_159 = arith.constant 0 : index
      %c0_160 = arith.constant 0 : index
      %553 = vector.load %arg7[%c0_158, %c0_159, %c0_160] : memref<4x32x128xf32, #tpu.memory_space<vmem>>, vector<4x32x128xf32>
      tpu.vector_store %arg7[%c0_158, %c0_159, %c0_160], %552 {strides = array<i32>} : memref<4x32x128xf32, #tpu.memory_space<vmem>>, vector<4x32x128xf32>,
    } else {
    }
    %3 = tpu.iota {dimensions = array<i32: 0>} : vector<64x64xi32>
    %4 = tpu.iota {dimensions = array<i32: 1>} : vector<64x64xi32>
    %5 = arith.cmpi sle, %4, %3 : vector<64x64xi32>
    %6 = arith.extui %5 : vector<64x64xi1> to vector<64x64xi32>
    %7 = arith.sitofp %6 : vector<64x64xi32> to vector<64x64xf32>
    %8 = tpu.iota {dimensions = array<i32: 0>} : vector<64x128xi32>
    %9 = tpu.iota {dimensions = array<i32: 1>} : vector<64x128xi32>
    %c64_i32 = arith.constant 64 : i32
    %10 = vector.broadcast %c64_i32 : i32 to vector<64x128xi32>
    %11 = arith.cmpi sge, %9, %10 : vector<64x128xi32>
    %c64_i32_1 = arith.constant 64 : i32
    %c0_i32_2 = arith.constant 0 : i32
    %12 = vector.broadcast %c64_i32_1 : i32 to vector<64x128xi32>
    %13 = vector.broadcast %c0_i32_2 : i32 to vector<64x128xi32>
    %14 = arith.select %11, %12, %13 : vector<64x128xi1>, vector<64x128xi32>
    %15 = arith.subi %9, %14 : vector<64x128xi32>
    %16 = arith.cmpi sle, %15, %8 : vector<64x128xi32>
    %17 = arith.extui %16 : vector<64x128xi1> to vector<64x128xi32>
    %18 = arith.sitofp %17 : vector<64x128xi32> to vector<64x128xf32>
    %19 = tpu.iota {dimensions = array<i32: 0>} : vector<8x128xi32>
    %20 = tpu.iota {dimensions = array<i32: 1>} : vector<8x128xi32>
    %c16_i32 = arith.constant 16 : i32
    %21 = vector.broadcast %c16_i32 : i32 to vector<8x128xi32>
    %22 = arith.muli %19, %21 : vector<8x128xi32>
    %23 = arith.cmpi sge, %20, %22 : vector<8x128xi32>
    %c16_i32_3 = arith.constant 16 : i32
    %24 = vector.broadcast %c16_i32_3 : i32 to vector<8x128xi32>
    %25 = arith.muli %19, %24 : vector<8x128xi32>
    %c16_i32_4 = arith.constant 16 : i32
    %26 = vector.broadcast %c16_i32_4 : i32 to vector<8x128xi32>
    %27 = arith.addi %25, %26 : vector<8x128xi32>
    %28 = arith.cmpi slt, %20, %27 : vector<8x128xi32>
    %29 = arith.andi %23, %28 : vector<8x128xi1>
    %30 = arith.extui %29 : vector<8x128xi1> to vector<8x128xi32>
    %31 = arith.sitofp %30 : vector<8x128xi32> to vector<8x128xf32>
    %32 = tpu.iota {dimensions = array<i32: 1>} : vector<1x128xi32>
    %c64_i32_5 = arith.constant 64 : i32
    %33 = vector.broadcast %c64_i32_5 : i32 to vector<1x128xi32>
    %34 = arith.cmpi slt, %32, %33 : vector<1x128xi32>
    %35 = arith.extui %34 : vector<1x128xi1> to vector<1x128xi32>
    %36 = arith.sitofp %35 : vector<1x128xi32> to vector<1x128xf32>
    %c64_i32_6 = arith.constant 64 : i32
    %37 = vector.broadcast %c64_i32_6 : i32 to vector<1x128xi32>
    %38 = arith.cmpi sge, %32, %37 : vector<1x128xi32>
    %39 = arith.extui %38 : vector<1x128xi1> to vector<1x128xi32>
    %40 = arith.sitofp %39 : vector<1x128xi32> to vector<1x128xf32>
    %41 = tpu.iota {dimensions = array<i32: 1>} : vector<1x32xi32>
    %c16_i32_7 = arith.constant 16 : i32
    %42 = vector.broadcast %c16_i32_7 : i32 to vector<1x32xi32>
    %43 = arith.cmpi slt, %41, %42 : vector<1x32xi32>
    %44 = arith.extui %43 : vector<1x32xi1> to vector<1x32xi32>
    %45 = arith.sitofp %44 : vector<1x32xi32> to vector<1x32xf32>
    %c16_i32_8 = arith.constant 16 : i32
    %46 = vector.broadcast %c16_i32_8 : i32 to vector<1x32xi32>
    %47 = arith.cmpi sge, %41, %46 : vector<1x32xi32>
    %48 = arith.extui %47 : vector<1x32xi1> to vector<1x32xi32>
    %49 = arith.sitofp %48 : vector<1x32xi32> to vector<1x32xf32>
    %c0 = arith.constant 0 : index
    %c0_9 = arith.constant 0 : index
    %c0_10 = arith.constant 0 : index
    %c0_11 = arith.constant 0 : index
    %50 = vector.load %arg2[%c0, %c0_9, %c0_10, %c0_11] : memref<1x2x64x8xf32, #tpu.memory_space<vmem>>, vector<1x1x64x8xf32>
    %51 = vector.shape_cast %50 : vector<1x1x64x8xf32> to vector<64x8xf32>
    %cst = arith.constant dense<0.000000e+00> : vector<64x8xf32>
    %52 = tpu.matmul %7, %51, %cst {dimension_numbers = #tpu.dot_dimension_numbers<[1], [0], [0], [1], [0, 0, 1, 1], [], []>} : vector<64x64xf32>, vector<64x8xf32>, vector<64x8xf32> -> vector<64x8xf32>
    %53 = vector.extract_strided_slice %52 {offsets = [63, 0], sizes = [1, 8], strides = [1, 1]} : vector<64x8xf32> to vector<1x8xf32>
    %cst_12 = arith.constant dense<0xFF800000> : vector<8xf32>
    %54 = vector.multi_reduction <maximumf>, %52, %cst_12 [0] : vector<64x8xf32> to vector<8xf32>
    %55 = vector.shape_cast %54 : vector<8xf32> to vector<1x8xf32>
    %cst_13 = arith.constant dense<0x7F800000> : vector<8xf32>
    %56 = vector.multi_reduction <minimumf>, %52, %cst_13 [0] : vector<64x8xf32> to vector<8xf32>
    %57 = vector.shape_cast %56 : vector<8xf32> to vector<1x8xf32>
    %58 = arith.addf %55, %57 : vector<1x8xf32>
    %cst_14 = arith.constant 5.000000e-01 : f32
    %59 = vector.broadcast %cst_14 : f32 to vector<1x8xf32>
    %60 = arith.mulf %59, %58 : vector<1x8xf32>
    %61 = vector.broadcast %60 : vector<1x8xf32> to vector<64x8xf32>
    %62 = arith.subf %52, %61 : vector<64x8xf32>
    %63 = math.exp %62 : vector<64x8xf32>
    %64 = vector.broadcast %60 : vector<1x8xf32> to vector<64x8xf32>
    %65 = arith.subf %64, %52 : vector<64x8xf32>
    %66 = math.exp %65 : vector<64x8xf32>
    %67 = math.exp %53 : vector<1x8xf32>
    %68 = arith.subf %53, %60 : vector<1x8xf32>
    %69 = math.exp %68 : vector<1x8xf32>
    %70 = math.exp %60 : vector<1x8xf32>
    %cst_15 = arith.constant dense<0.000000e+00> : vector<64x128xf32>
    %71 = tpu.matmul %63, %31, %cst_15 {dimension_numbers = #tpu.dot_dimension_numbers<[1], [0], [0], [1], [0, 0, 1, 1], [], []>} : vector<64x8xf32>, vector<8x128xf32>, vector<64x128xf32> -> vector<64x128xf32>
    %cst_16 = arith.constant dense<0.000000e+00> : vector<64x128xf32>
    %72 = tpu.matmul %66, %31, %cst_16 {dimension_numbers = #tpu.dot_dimension_numbers<[1], [0], [0], [1], [0, 0, 1, 1], [], []>} : vector<64x8xf32>, vector<8x128xf32>, vector<64x128xf32> -> vector<64x128xf32>
    %c0_17 = arith.constant 0 : index
    %c0_18 = arith.constant 0 : index
    %c0_19 = arith.constant 0 : index
    %c0_20 = arith.constant 0 : index
    %73 = vector.load %arg3[%c0_17, %c0_18, %c0_19, %c0_20] : memref<1x2x64x512xf32, #tpu.memory_space<vmem>>, vector<1x1x64x512xf32>
    %74 = vector.shape_cast %73 : vector<1x1x64x512xf32> to vector<64x512xf32>
    %c0_21 = arith.constant 0 : index
    %c0_22 = arith.constant 0 : index
    %c0_23 = arith.constant 0 : index
    %c0_24 = arith.constant 0 : index
    %75 = vector.load %arg5[%c0_21, %c0_22, %c0_23, %c0_24] : memref<1x2x64x128xf32, #tpu.memory_space<vmem>>, vector<1x1x64x128xf32>
    %76 = vector.shape_cast %75 : vector<1x1x64x128xf32> to vector<64x128xf32>
    %77 = arith.mulf %76, %71 : vector<64x128xf32>
    %c0_25 = arith.constant 0 : index
    %c0_26 = arith.constant 0 : index
    %c0_27 = arith.constant 0 : index
    %c0_28 = arith.constant 0 : index
    %78 = vector.load %arg4[%c0_25, %c0_26, %c0_27, %c0_28] : memref<1x2x64x128xf32, #tpu.memory_space<vmem>>, vector<1x1x64x128xf32>
    %79 = vector.shape_cast %78 : vector<1x1x64x128xf32> to vector<64x128xf32>
    %80 = arith.mulf %79, %72 : vector<64x128xf32>
    %81 = vector.extract_strided_slice %74 {offsets = [0, 0], sizes = [64, 128], strides = [1, 1]} : vector<64x512xf32> to vector<64x128xf32>
    %82 = vector.extract_strided_slice %77 {offsets = [0, 0], sizes = [64, 32], strides = [1, 1]} : vector<64x128xf32> to vector<64x32xf32>
    %83 = vector.extract_strided_slice %80 {offsets = [0, 0], sizes = [64, 32], strides = [1, 1]} : vector<64x128xf32> to vector<64x32xf32>
    %84 = vector.broadcast %36 : vector<1x128xf32> to vector<64x128xf32>
    %85 = arith.mulf %81, %84 : vector<64x128xf32>
    %86 = vector.broadcast %40 : vector<1x128xf32> to vector<64x128xf32>
    %87 = arith.mulf %81, %86 : vector<64x128xf32>
    %88 = tpu.concatenate %85, %87 in 0 : vector<64x128xf32>, vector<64x128xf32> -> vector<128x128xf32>
    %89 = vector.broadcast %45 : vector<1x32xf32> to vector<64x32xf32>
    %90 = arith.mulf %83, %89 : vector<64x32xf32>
    %91 = vector.broadcast %49 : vector<1x32xf32> to vector<64x32xf32>
    %92 = arith.mulf %83, %91 : vector<64x32xf32>
    %93 = tpu.concatenate %90, %92 in 0 : vector<64x32xf32>, vector<64x32xf32> -> vector<128x32xf32>
    %cst_29 = arith.constant dense<0.000000e+00> : vector<64x128xf32>
    %94 = tpu.matmul %82, %93, %cst_29 {dimension_numbers = #tpu.dot_dimension_numbers<[1], [1], [0], [0], [0, 0, 1, 0], [], []>} : vector<64x32xf32>, vector<128x32xf32>, vector<64x128xf32> -> vector<64x128xf32>
    %95 = arith.mulf %94, %18 : vector<64x128xf32>
    %cst_30 = arith.constant dense<0.000000e+00> : vector<64x128xf32>
    %96 = tpu.matmul %95, %88, %cst_30 {dimension_numbers = #tpu.dot_dimension_numbers<[1], [0], [0], [1], [0, 0, 1, 1], [], []>} : vector<64x128xf32>, vector<128x128xf32>, vector<64x128xf32> -> vector<64x128xf32>
    %97 = vector.extract_strided_slice %67 {offsets = [0, 0], sizes = [1, 1], strides = [1, 1]} : vector<1x8xf32> to vector<1x1xf32>
    %98 = vector.broadcast %97 : vector<1x1xf32> to vector<1x128xf32>
    %99 = arith.mulf %98, %36 : vector<1x128xf32>
    %100 = vector.extract_strided_slice %67 {offsets = [0, 1], sizes = [1, 1], strides = [1, 1]} : vector<1x8xf32> to vector<1x1xf32>
    %101 = vector.broadcast %100 : vector<1x1xf32> to vector<1x128xf32>
    %102 = arith.mulf %101, %40 : vector<1x128xf32>
    %103 = arith.addf %99, %102 : vector<1x128xf32>
    %104 = vector.extract_strided_slice %69 {offsets = [0, 0], sizes = [1, 1], strides = [1, 1]} : vector<1x8xf32> to vector<1x1xf32>
    %105 = vector.broadcast %104 : vector<1x1xf32> to vector<1x128xf32>
    %106 = arith.mulf %105, %36 : vector<1x128xf32>
    %107 = vector.extract_strided_slice %69 {offsets = [0, 1], sizes = [1, 1], strides = [1, 1]} : vector<1x8xf32> to vector<1x1xf32>
    %108 = vector.broadcast %107 : vector<1x1xf32> to vector<1x128xf32>
    %109 = arith.mulf %108, %40 : vector<1x128xf32>
    %110 = arith.addf %106, %109 : vector<1x128xf32>
    %111 = vector.extract_strided_slice %70 {offsets = [0, 0], sizes = [1, 1], strides = [1, 1]} : vector<1x8xf32> to vector<1x1xf32>
    %112 = vector.broadcast %111 : vector<1x1xf32> to vector<1x128xf32>
    %113 = arith.mulf %112, %36 : vector<1x128xf32>
    %114 = vector.extract_strided_slice %70 {offsets = [0, 1], sizes = [1, 1], strides = [1, 1]} : vector<1x8xf32> to vector<1x1xf32>
    %115 = vector.broadcast %114 : vector<1x1xf32> to vector<1x128xf32>
    %116 = arith.mulf %115, %40 : vector<1x128xf32>
    %117 = arith.addf %113, %116 : vector<1x128xf32>
    %c0_31 = arith.constant 0 : index
    %c0_32 = arith.constant 0 : index
    %c0_33 = arith.constant 0 : index
    %118 = vector.load %arg7[%c0_31, %c0_32, %c0_33] : memref<4x32x128xf32, #tpu.memory_space<vmem>>, vector<1x32x128xf32>
    %119 = vector.shape_cast %118 : vector<1x32x128xf32> to vector<32x128xf32>
    %120 = vector.broadcast %117 : vector<1x128xf32> to vector<32x128xf32>
    %121 = arith.mulf %119, %120 : vector<32x128xf32>
    %cst_34 = arith.constant dense<0.000000e+00> : vector<64x128xf32>
    %122 = tpu.matmul %82, %121, %cst_34 {dimension_numbers = #tpu.dot_dimension_numbers<[1], [0], [0], [1], [0, 0, 1, 1], [], []>} : vector<64x32xf32>, vector<32x128xf32>, vector<64x128xf32> -> vector<64x128xf32>
    %123 = arith.addf %96, %122 : vector<64x128xf32>
    %cst_35 = arith.constant dense<0.000000e+00> : vector<32x128xf32>
    %124 = tpu.matmul %93, %88, %cst_35 {dimension_numbers = #tpu.dot_dimension_numbers<[0], [0], [1], [1], [0, 1, 1, 1], [], []>} : vector<128x32xf32>, vector<128x128xf32>, vector<32x128xf32> -> vector<32x128xf32>
    %125 = vector.broadcast %103 : vector<1x128xf32> to vector<32x128xf32>
    %126 = arith.mulf %125, %119 : vector<32x128xf32>
    %127 = vector.broadcast %110 : vector<1x128xf32> to vector<32x128xf32>
    %128 = arith.mulf %127, %124 : vector<32x128xf32>
    %129 = arith.addf %126, %128 : vector<32x128xf32>
    %c0_36 = arith.constant 0 : index
    %c0_37 = arith.constant 0 : index
    %c0_38 = arith.constant 0 : index
    %130 = vector.load %arg7[%c0_36, %c0_37, %c0_38] : memref<4x32x128xf32, #tpu.memory_space<vmem>>, vector<1x32x128xf32>
    %131 = vector.shape_cast %130 : vector<1x32x128xf32> to vector<32x128xf32>
    %132 = vector.shape_cast %129 : vector<32x128xf32> to vector<1x32x128xf32>
    tpu.vector_store %arg7[%c0_36, %c0_37, %c0_38], %132 {strides = array<i32>} : memref<4x32x128xf32, #tpu.memory_space<vmem>>, vector<1x32x128xf32>,
    %c0_39 = arith.constant 0 : index
    %c0_40 = arith.constant 0 : index
    %c0_41 = arith.constant 0 : index
    %c0_42 = arith.constant 0 : index
    %133 = vector.load %arg6[%c0_39, %c0_40, %c0_41, %c0_42] : memref<1x2x64x512xf32, #tpu.memory_space<vmem>>, vector<1x1x64x128xf32>
    %134 = vector.shape_cast %133 : vector<1x1x64x128xf32> to vector<64x128xf32>
    %135 = vector.shape_cast %123 : vector<64x128xf32> to vector<1x1x64x128xf32>
    tpu.vector_store %arg6[%c0_39, %c0_40, %c0_41, %c0_42], %135 {strides = array<i32>} : memref<1x2x64x512xf32, #tpu.memory_space<vmem>>, vector<1x1x64x128xf32>,
    %136 = vector.extract_strided_slice %74 {offsets = [0, 128], sizes = [64, 128], strides = [1, 1]} : vector<64x512xf32> to vector<64x128xf32>
    %137 = vector.extract_strided_slice %77 {offsets = [0, 32], sizes = [64, 32], strides = [1, 1]} : vector<64x128xf32> to vector<64x32xf32>
    %138 = vector.extract_strided_slice %80 {offsets = [0, 32], sizes = [64, 32], strides = [1, 1]} : vector<64x128xf32> to vector<64x32xf32>
    %139 = vector.broadcast %36 : vector<1x128xf32> to vector<64x128xf32>
    %140 = arith.mulf %136, %139 : vector<64x128xf32>
    %141 = vector.broadcast %40 : vector<1x128xf32> to vector<64x128xf32>
    %142 = arith.mulf %136, %141 : vector<64x128xf32>
    %143 = tpu.concatenate %140, %142 in 0 : vector<64x128xf32>, vector<64x128xf32> -> vector<128x128xf32>
    %144 = vector.broadcast %45 : vector<1x32xf32> to vector<64x32xf32>
    %145 = arith.mulf %138, %144 : vector<64x32xf32>
    %146 = vector.broadcast %49 : vector<1x32xf32> to vector<64x32xf32>
    %147 = arith.mulf %138, %146 : vector<64x32xf32>
    %148 = tpu.concatenate %145, %147 in 0 : vector<64x32xf32>, vector<64x32xf32> -> vector<128x32xf32>
    %cst_43 = arith.constant dense<0.000000e+00> : vector<64x128xf32>
    %149 = tpu.matmul %137, %148, %cst_43 {dimension_numbers = #tpu.dot_dimension_numbers<[1], [1], [0], [0], [0, 0, 1, 0], [], []>} : vector<64x32xf32>, vector<128x32xf32>, vector<64x128xf32> -> vector<64x128xf32>
    %150 = arith.mulf %149, %18 : vector<64x128xf32>
    %cst_44 = arith.constant dense<0.000000e+00> : vector<64x128xf32>
    %151 = tpu.matmul %150, %143, %cst_44 {dimension_numbers = #tpu.dot_dimension_numbers<[1], [0], [0], [1], [0, 0, 1, 1], [], []>} : vector<64x128xf32>, vector<128x128xf32>, vector<64x128xf32> -> vector<64x128xf32>
    %152 = vector.extract_strided_slice %67 {offsets = [0, 2], sizes = [1, 1], strides = [1, 1]} : vector<1x8xf32> to vector<1x1xf32>
    %153 = vector.broadcast %152 : vector<1x1xf32> to vector<1x128xf32>
    %154 = arith.mulf %153, %36 : vector<1x128xf32>
    %155 = vector.extract_strided_slice %67 {offsets = [0, 3], sizes = [1, 1], strides = [1, 1]} : vector<1x8xf32> to vector<1x1xf32>
    %156 = vector.broadcast %155 : vector<1x1xf32> to vector<1x128xf32>
    %157 = arith.mulf %156, %40 : vector<1x128xf32>
    %158 = arith.addf %154, %157 : vector<1x128xf32>
    %159 = vector.extract_strided_slice %69 {offsets = [0, 2], sizes = [1, 1], strides = [1, 1]} : vector<1x8xf32> to vector<1x1xf32>
    %160 = vector.broadcast %159 : vector<1x1xf32> to vector<1x128xf32>
    %161 = arith.mulf %160, %36 : vector<1x128xf32>
    %162 = vector.extract_strided_slice %69 {offsets = [0, 3], sizes = [1, 1], strides = [1, 1]} : vector<1x8xf32> to vector<1x1xf32>
    %163 = vector.broadcast %162 : vector<1x1xf32> to vector<1x128xf32>
    %164 = arith.mulf %163, %40 : vector<1x128xf32>
    %165 = arith.addf %161, %164 : vector<1x128xf32>
    %166 = vector.extract_strided_slice %70 {offsets = [0, 2], sizes = [1, 1], strides = [1, 1]} : vector<1x8xf32> to vector<1x1xf32>
    %167 = vector.broadcast %166 : vector<1x1xf32> to vector<1x128xf32>
    %168 = arith.mulf %167, %36 : vector<1x128xf32>
    %169 = vector.extract_strided_slice %70 {offsets = [0, 3], sizes = [1, 1], strides = [1, 1]} : vector<1x8xf32> to vector<1x1xf32>
    %170 = vector.broadcast %169 : vector<1x1xf32> to vector<1x128xf32>
    %171 = arith.mulf %170, %40 : vector<1x128xf32>
    %172 = arith.addf %168, %171 : vector<1x128xf32>
    %c1 = arith.constant 1 : index
    %c0_45 = arith.constant 0 : index
    %c0_46 = arith.constant 0 : index
    %173 = vector.load %arg7[%c1, %c0_45, %c0_46] : memref<4x32x128xf32, #tpu.memory_space<vmem>>, vector<1x32x128xf32>
    %174 = vector.shape_cast %173 : vector<1x32x128xf32> to vector<32x128xf32>
    %175 = vector.broadcast %172 : vector<1x128xf32> to vector<32x128xf32>
    %176 = arith.mulf %174, %175 : vector<32x128xf32>
    %cst_47 = arith.constant dense<0.000000e+00> : vector<64x128xf32>
    %177 = tpu.matmul %137, %176, %cst_47 {dimension_numbers = #tpu.dot_dimension_numbers<[1], [0], [0], [1], [0, 0, 1, 1], [], []>} : vector<64x32xf32>, vector<32x128xf32>, vector<64x128xf32> -> vector<64x128xf32>
    %178 = arith.addf %151, %177 : vector<64x128xf32>
    %cst_48 = arith.constant dense<0.000000e+00> : vector<32x128xf32>
    %179 = tpu.matmul %148, %143, %cst_48 {dimension_numbers = #tpu.dot_dimension_numbers<[0], [0], [1], [1], [0, 1, 1, 1], [], []>} : vector<128x32xf32>, vector<128x128xf32>, vector<32x128xf32> -> vector<32x128xf32>
    %180 = vector.broadcast %158 : vector<1x128xf32> to vector<32x128xf32>
    %181 = arith.mulf %180, %174 : vector<32x128xf32>
    %182 = vector.broadcast %165 : vector<1x128xf32> to vector<32x128xf32>
    %183 = arith.mulf %182, %179 : vector<32x128xf32>
    %184 = arith.addf %181, %183 : vector<32x128xf32>
    %c1_49 = arith.constant 1 : index
    %c0_50 = arith.constant 0 : index
    %c0_51 = arith.constant 0 : index
    %185 = vector.load %arg7[%c1_49, %c0_50, %c0_51] : memref<4x32x128xf32, #tpu.memory_space<vmem>>, vector<1x32x128xf32>
    %186 = vector.shape_cast %185 : vector<1x32x128xf32> to vector<32x128xf32>
    %187 = vector.shape_cast %184 : vector<32x128xf32> to vector<1x32x128xf32>
    tpu.vector_store %arg7[%c1_49, %c0_50, %c0_51], %187 {strides = array<i32>} : memref<4x32x128xf32, #tpu.memory_space<vmem>>, vector<1x32x128xf32>,
    %c0_52 = arith.constant 0 : index
    %c0_53 = arith.constant 0 : index
    %c0_54 = arith.constant 0 : index
    %c128 = arith.constant 128 : index
    %188 = vector.load %arg6[%c0_52, %c0_53, %c0_54, %c128] : memref<1x2x64x512xf32, #tpu.memory_space<vmem>>, vector<1x1x64x128xf32>
    %189 = vector.shape_cast %188 : vector<1x1x64x128xf32> to vector<64x128xf32>
    %190 = vector.shape_cast %178 : vector<64x128xf32> to vector<1x1x64x128xf32>
    tpu.vector_store %arg6[%c0_52, %c0_53, %c0_54, %c128], %190 {strides = array<i32>} : memref<1x2x64x512xf32, #tpu.memory_space<vmem>>, vector<1x1x64x128xf32>,
    %191 = vector.extract_strided_slice %74 {offsets = [0, 256], sizes = [64, 128], strides = [1, 1]} : vector<64x512xf32> to vector<64x128xf32>
    %192 = vector.extract_strided_slice %77 {offsets = [0, 64], sizes = [64, 32], strides = [1, 1]} : vector<64x128xf32> to vector<64x32xf32>
    %193 = vector.extract_strided_slice %80 {offsets = [0, 64], sizes = [64, 32], strides = [1, 1]} : vector<64x128xf32> to vector<64x32xf32>
    %194 = vector.broadcast %36 : vector<1x128xf32> to vector<64x128xf32>
    %195 = arith.mulf %191, %194 : vector<64x128xf32>
    %196 = vector.broadcast %40 : vector<1x128xf32> to vector<64x128xf32>
    %197 = arith.mulf %191, %196 : vector<64x128xf32>
    %198 = tpu.concatenate %195, %197 in 0 : vector<64x128xf32>, vector<64x128xf32> -> vector<128x128xf32>
    %199 = vector.broadcast %45 : vector<1x32xf32> to vector<64x32xf32>
    %200 = arith.mulf %193, %199 : vector<64x32xf32>
    %201 = vector.broadcast %49 : vector<1x32xf32> to vector<64x32xf32>
    %202 = arith.mulf %193, %201 : vector<64x32xf32>
    %203 = tpu.concatenate %200, %202 in 0 : vector<64x32xf32>, vector<64x32xf32> -> vector<128x32xf32>
    %cst_55 = arith.constant dense<0.000000e+00> : vector<64x128xf32>
    %204 = tpu.matmul %192, %203, %cst_55 {dimension_numbers = #tpu.dot_dimension_numbers<[1], [1], [0], [0], [0, 0, 1, 0], [], []>} : vector<64x32xf32>, vector<128x32xf32>, vector<64x128xf32> -> vector<64x128xf32>
    %205 = arith.mulf %204, %18 : vector<64x128xf32>
    %cst_56 = arith.constant dense<0.000000e+00> : vector<64x128xf32>
    %206 = tpu.matmul %205, %198, %cst_56 {dimension_numbers = #tpu.dot_dimension_numbers<[1], [0], [0], [1], [0, 0, 1, 1], [], []>} : vector<64x128xf32>, vector<128x128xf32>, vector<64x128xf32> -> vector<64x128xf32>
    %207 = vector.extract_strided_slice %67 {offsets = [0, 4], sizes = [1, 1], strides = [1, 1]} : vector<1x8xf32> to vector<1x1xf32>
    %208 = vector.broadcast %207 : vector<1x1xf32> to vector<1x128xf32>
    %209 = arith.mulf %208, %36 : vector<1x128xf32>
    %210 = vector.extract_strided_slice %67 {offsets = [0, 5], sizes = [1, 1], strides = [1, 1]} : vector<1x8xf32> to vector<1x1xf32>
    %211 = vector.broadcast %210 : vector<1x1xf32> to vector<1x128xf32>
    %212 = arith.mulf %211, %40 : vector<1x128xf32>
    %213 = arith.addf %209, %212 : vector<1x128xf32>
    %214 = vector.extract_strided_slice %69 {offsets = [0, 4], sizes = [1, 1], strides = [1, 1]} : vector<1x8xf32> to vector<1x1xf32>
    %215 = vector.broadcast %214 : vector<1x1xf32> to vector<1x128xf32>
    %216 = arith.mulf %215, %36 : vector<1x128xf32>
    %217 = vector.extract_strided_slice %69 {offsets = [0, 5], sizes = [1, 1], strides = [1, 1]} : vector<1x8xf32> to vector<1x1xf32>
    %218 = vector.broadcast %217 : vector<1x1xf32> to vector<1x128xf32>
    %219 = arith.mulf %218, %40 : vector<1x128xf32>
    %220 = arith.addf %216, %219 : vector<1x128xf32>
    %221 = vector.extract_strided_slice %70 {offsets = [0, 4], sizes = [1, 1], strides = [1, 1]} : vector<1x8xf32> to vector<1x1xf32>
    %222 = vector.broadcast %221 : vector<1x1xf32> to vector<1x128xf32>
    %223 = arith.mulf %222, %36 : vector<1x128xf32>
    %224 = vector.extract_strided_slice %70 {offsets = [0, 5], sizes = [1, 1], strides = [1, 1]} : vector<1x8xf32> to vector<1x1xf32>
    %225 = vector.broadcast %224 : vector<1x1xf32> to vector<1x128xf32>
    %226 = arith.mulf %225, %40 : vector<1x128xf32>
    %227 = arith.addf %223, %226 : vector<1x128xf32>
    %c2 = arith.constant 2 : index
    %c0_57 = arith.constant 0 : index
    %c0_58 = arith.constant 0 : index
    %228 = vector.load %arg7[%c2, %c0_57, %c0_58] : memref<4x32x128xf32, #tpu.memory_space<vmem>>, vector<1x32x128xf32>
    %229 = vector.shape_cast %228 : vector<1x32x128xf32> to vector<32x128xf32>
    %230 = vector.broadcast %227 : vector<1x128xf32> to vector<32x128xf32>
    %231 = arith.mulf %229, %230 : vector<32x128xf32>
    %cst_59 = arith.constant dense<0.000000e+00> : vector<64x128xf32>
    %232 = tpu.matmul %192, %231, %cst_59 {dimension_numbers = #tpu.dot_dimension_numbers<[1], [0], [0], [1], [0, 0, 1, 1], [], []>} : vector<64x32xf32>, vector<32x128xf32>, vector<64x128xf32> -> vector<64x128xf32>
    %233 = arith.addf %206, %232 : vector<64x128xf32>
    %cst_60 = arith.constant dense<0.000000e+00> : vector<32x128xf32>
    %234 = tpu.matmul %203, %198, %cst_60 {dimension_numbers = #tpu.dot_dimension_numbers<[0], [0], [1], [1], [0, 1, 1, 1], [], []>} : vector<128x32xf32>, vector<128x128xf32>, vector<32x128xf32> -> vector<32x128xf32>
    %235 = vector.broadcast %213 : vector<1x128xf32> to vector<32x128xf32>
    %236 = arith.mulf %235, %229 : vector<32x128xf32>
    %237 = vector.broadcast %220 : vector<1x128xf32> to vector<32x128xf32>
    %238 = arith.mulf %237, %234 : vector<32x128xf32>
    %239 = arith.addf %236, %238 : vector<32x128xf32>
    %c2_61 = arith.constant 2 : index
    %c0_62 = arith.constant 0 : index
    %c0_63 = arith.constant 0 : index
    %240 = vector.load %arg7[%c2_61, %c0_62, %c0_63] : memref<4x32x128xf32, #tpu.memory_space<vmem>>, vector<1x32x128xf32>
    %241 = vector.shape_cast %240 : vector<1x32x128xf32> to vector<32x128xf32>
    %242 = vector.shape_cast %239 : vector<32x128xf32> to vector<1x32x128xf32>
    tpu.vector_store %arg7[%c2_61, %c0_62, %c0_63], %242 {strides = array<i32>} : memref<4x32x128xf32, #tpu.memory_space<vmem>>, vector<1x32x128xf32>,
    %c0_64 = arith.constant 0 : index
    %c0_65 = arith.constant 0 : index
    %c0_66 = arith.constant 0 : index
    %c256 = arith.constant 256 : index
    %243 = vector.load %arg6[%c0_64, %c0_65, %c0_66, %c256] : memref<1x2x64x512xf32, #tpu.memory_space<vmem>>, vector<1x1x64x128xf32>
    %244 = vector.shape_cast %243 : vector<1x1x64x128xf32> to vector<64x128xf32>
    %245 = vector.shape_cast %233 : vector<64x128xf32> to vector<1x1x64x128xf32>
    tpu.vector_store %arg6[%c0_64, %c0_65, %c0_66, %c256], %245 {strides = array<i32>} : memref<1x2x64x512xf32, #tpu.memory_space<vmem>>, vector<1x1x64x128xf32>,
    %246 = vector.extract_strided_slice %74 {offsets = [0, 384], sizes = [64, 128], strides = [1, 1]} : vector<64x512xf32> to vector<64x128xf32>
    %247 = vector.extract_strided_slice %77 {offsets = [0, 96], sizes = [64, 32], strides = [1, 1]} : vector<64x128xf32> to vector<64x32xf32>
    %248 = vector.extract_strided_slice %80 {offsets = [0, 96], sizes = [64, 32], strides = [1, 1]} : vector<64x128xf32> to vector<64x32xf32>
    %249 = vector.broadcast %36 : vector<1x128xf32> to vector<64x128xf32>
    %250 = arith.mulf %246, %249 : vector<64x128xf32>
    %251 = vector.broadcast %40 : vector<1x128xf32> to vector<64x128xf32>
    %252 = arith.mulf %246, %251 : vector<64x128xf32>
    %253 = tpu.concatenate %250, %252 in 0 : vector<64x128xf32>, vector<64x128xf32> -> vector<128x128xf32>
    %254 = vector.broadcast %45 : vector<1x32xf32> to vector<64x32xf32>
    %255 = arith.mulf %248, %254 : vector<64x32xf32>
    %256 = vector.broadcast %49 : vector<1x32xf32> to vector<64x32xf32>
    %257 = arith.mulf %248, %256 : vector<64x32xf32>
    %258 = tpu.concatenate %255, %257 in 0 : vector<64x32xf32>, vector<64x32xf32> -> vector<128x32xf32>
    %cst_67 = arith.constant dense<0.000000e+00> : vector<64x128xf32>
    %259 = tpu.matmul %247, %258, %cst_67 {dimension_numbers = #tpu.dot_dimension_numbers<[1], [1], [0], [0], [0, 0, 1, 0], [], []>} : vector<64x32xf32>, vector<128x32xf32>, vector<64x128xf32> -> vector<64x128xf32>
    %260 = arith.mulf %259, %18 : vector<64x128xf32>
    %cst_68 = arith.constant dense<0.000000e+00> : vector<64x128xf32>
    %261 = tpu.matmul %260, %253, %cst_68 {dimension_numbers = #tpu.dot_dimension_numbers<[1], [0], [0], [1], [0, 0, 1, 1], [], []>} : vector<64x128xf32>, vector<128x128xf32>, vector<64x128xf32> -> vector<64x128xf32>
    %262 = vector.extract_strided_slice %67 {offsets = [0, 6], sizes = [1, 1], strides = [1, 1]} : vector<1x8xf32> to vector<1x1xf32>
    %263 = vector.broadcast %262 : vector<1x1xf32> to vector<1x128xf32>
    %264 = arith.mulf %263, %36 : vector<1x128xf32>
    %265 = vector.extract_strided_slice %67 {offsets = [0, 7], sizes = [1, 1], strides = [1, 1]} : vector<1x8xf32> to vector<1x1xf32>
    %266 = vector.broadcast %265 : vector<1x1xf32> to vector<1x128xf32>
    %267 = arith.mulf %266, %40 : vector<1x128xf32>
    %268 = arith.addf %264, %267 : vector<1x128xf32>
    %269 = vector.extract_strided_slice %69 {offsets = [0, 6], sizes = [1, 1], strides = [1, 1]} : vector<1x8xf32> to vector<1x1xf32>
    %270 = vector.broadcast %269 : vector<1x1xf32> to vector<1x128xf32>
    %271 = arith.mulf %270, %36 : vector<1x128xf32>
    %272 = vector.extract_strided_slice %69 {offsets = [0, 7], sizes = [1, 1], strides = [1, 1]} : vector<1x8xf32> to vector<1x1xf32>
    %273 = vector.broadcast %272 : vector<1x1xf32> to vector<1x128xf32>
    %274 = arith.mulf %273, %40 : vector<1x128xf32>
    %275 = arith.addf %271, %274 : vector<1x128xf32>
    %276 = vector.extract_strided_slice %70 {offsets = [0, 6], sizes = [1, 1], strides = [1, 1]} : vector<1x8xf32> to vector<1x1xf32>
    %277 = vector.broadcast %276 : vector<1x1xf32> to vector<1x128xf32>
    %278 = arith.mulf %277, %36 : vector<1x128xf32>
    %279 = vector.extract_strided_slice %70 {offsets = [0, 7], sizes = [1, 1], strides = [1, 1]} : vector<1x8xf32> to vector<1x1xf32>
    %280 = vector.broadcast %279 : vector<1x1xf32> to vector<1x128xf32>
    %281 = arith.mulf %280, %40 : vector<1x128xf32>
    %282 = arith.addf %278, %281 : vector<1x128xf32>
    %c3 = arith.constant 3 : index
    %c0_69 = arith.constant 0 : index
    %c0_70 = arith.constant 0 : index
    %283 = vector.load %arg7[%c3, %c0_69, %c0_70] : memref<4x32x128xf32, #tpu.memory_space<vmem>>, vector<1x32x128xf32>
    %284 = vector.shape_cast %283 : vector<1x32x128xf32> to vector<32x128xf32>
    %285 = vector.broadcast %282 : vector<1x128xf32> to vector<32x128xf32>
    %286 = arith.mulf %284, %285 : vector<32x128xf32>
    %cst_71 = arith.constant dense<0.000000e+00> : vector<64x128xf32>
    %287 = tpu.matmul %247, %286, %cst_71 {dimension_numbers = #tpu.dot_dimension_numbers<[1], [0], [0], [1], [0, 0, 1, 1], [], []>} : vector<64x32xf32>, vector<32x128xf32>, vector<64x128xf32> -> vector<64x128xf32>
    %288 = arith.addf %261, %287 : vector<64x128xf32>
    %cst_72 = arith.constant dense<0.000000e+00> : vector<32x128xf32>
    %289 = tpu.matmul %258, %253, %cst_72 {dimension_numbers = #tpu.dot_dimension_numbers<[0], [0], [1], [1], [0, 1, 1, 1], [], []>} : vector<128x32xf32>, vector<128x128xf32>, vector<32x128xf32> -> vector<32x128xf32>
    %290 = vector.broadcast %268 : vector<1x128xf32> to vector<32x128xf32>
    %291 = arith.mulf %290, %284 : vector<32x128xf32>
    %292 = vector.broadcast %275 : vector<1x128xf32> to vector<32x128xf32>
    %293 = arith.mulf %292, %289 : vector<32x128xf32>
    %294 = arith.addf %291, %293 : vector<32x128xf32>
    %c3_73 = arith.constant 3 : index
    %c0_74 = arith.constant 0 : index
    %c0_75 = arith.constant 0 : index
    %295 = vector.load %arg7[%c3_73, %c0_74, %c0_75] : memref<4x32x128xf32, #tpu.memory_space<vmem>>, vector<1x32x128xf32>
    %296 = vector.shape_cast %295 : vector<1x32x128xf32> to vector<32x128xf32>
    %297 = vector.shape_cast %294 : vector<32x128xf32> to vector<1x32x128xf32>
    tpu.vector_store %arg7[%c3_73, %c0_74, %c0_75], %297 {strides = array<i32>} : memref<4x32x128xf32, #tpu.memory_space<vmem>>, vector<1x32x128xf32>,
    %c0_76 = arith.constant 0 : index
    %c0_77 = arith.constant 0 : index
    %c0_78 = arith.constant 0 : index
    %c384 = arith.constant 384 : index
    %298 = vector.load %arg6[%c0_76, %c0_77, %c0_78, %c384] : memref<1x2x64x512xf32, #tpu.memory_space<vmem>>, vector<1x1x64x128xf32>
    %299 = vector.shape_cast %298 : vector<1x1x64x128xf32> to vector<64x128xf32>
    %300 = vector.shape_cast %288 : vector<64x128xf32> to vector<1x1x64x128xf32>
    tpu.vector_store %arg6[%c0_76, %c0_77, %c0_78, %c384], %300 {strides = array<i32>} : memref<1x2x64x512xf32, #tpu.memory_space<vmem>>, vector<1x1x64x128xf32>,
    %c0_79 = arith.constant 0 : index
    %c1_80 = arith.constant 1 : index
    %c0_81 = arith.constant 0 : index
    %c0_82 = arith.constant 0 : index
    %301 = vector.load %arg2[%c0_79, %c1_80, %c0_81, %c0_82] : memref<1x2x64x8xf32, #tpu.memory_space<vmem>>, vector<1x1x64x8xf32>
    %302 = vector.shape_cast %301 : vector<1x1x64x8xf32> to vector<64x8xf32>
    %cst_83 = arith.constant dense<0.000000e+00> : vector<64x8xf32>
    %303 = tpu.matmul %7, %302, %cst_83 {dimension_numbers = #tpu.dot_dimension_numbers<[1], [0], [0], [1], [0, 0, 1, 1], [], []>} : vector<64x64xf32>, vector<64x8xf32>, vector<64x8xf32> -> vector<64x8xf32>
    %304 = vector.extract_strided_slice %303 {offsets = [63, 0], sizes = [1, 8], strides = [1, 1]} : vector<64x8xf32> to vector<1x8xf32>
    %cst_84 = arith.constant dense<0xFF800000> : vector<8xf32>
    %305 = vector.multi_reduction <maximumf>, %303, %cst_84 [0] : vector<64x8xf32> to vector<8xf32>
    %306 = vector.shape_cast %305 : vector<8xf32> to vector<1x8xf32>
    %cst_85 = arith.constant dense<0x7F800000> : vector<8xf32>
    %307 = vector.multi_reduction <minimumf>, %303, %cst_85 [0] : vector<64x8xf32> to vector<8xf32>
    %308 = vector.shape_cast %307 : vector<8xf32> to vector<1x8xf32>
    %309 = arith.addf %306, %308 : vector<1x8xf32>
    %cst_86 = arith.constant 5.000000e-01 : f32
    %310 = vector.broadcast %cst_86 : f32 to vector<1x8xf32>
    %311 = arith.mulf %310, %309 : vector<1x8xf32>
    %312 = vector.broadcast %311 : vector<1x8xf32> to vector<64x8xf32>
    %313 = arith.subf %303, %312 : vector<64x8xf32>
    %314 = math.exp %313 : vector<64x8xf32>
    %315 = vector.broadcast %311 : vector<1x8xf32> to vector<64x8xf32>
    %316 = arith.subf %315, %303 : vector<64x8xf32>
    %317 = math.exp %316 : vector<64x8xf32>
    %318 = math.exp %304 : vector<1x8xf32>
    %319 = arith.subf %304, %311 : vector<1x8xf32>
    %320 = math.exp %319 : vector<1x8xf32>
    %321 = math.exp %311 : vector<1x8xf32>
    %cst_87 = arith.constant dense<0.000000e+00> : vector<64x128xf32>
    %322 = tpu.matmul %314, %31, %cst_87 {dimension_numbers = #tpu.dot_dimension_numbers<[1], [0], [0], [1], [0, 0, 1, 1], [], []>} : vector<64x8xf32>, vector<8x128xf32>, vector<64x128xf32> -> vector<64x128xf32>
    %cst_88 = arith.constant dense<0.000000e+00> : vector<64x128xf32>
    %323 = tpu.matmul %317, %31, %cst_88 {dimension_numbers = #tpu.dot_dimension_numbers<[1], [0], [0], [1], [0, 0, 1, 1], [], []>} : vector<64x8xf32>, vector<8x128xf32>, vector<64x128xf32> -> vector<64x128xf32>
    %c0_89 = arith.constant 0 : index
    %c1_90 = arith.constant 1 : index
    %c0_91 = arith.constant 0 : index
    %c0_92 = arith.constant 0 : index
    %324 = vector.load %arg3[%c0_89, %c1_90, %c0_91, %c0_92] : memref<1x2x64x512xf32, #tpu.memory_space<vmem>>, vector<1x1x64x512xf32>
    %325 = vector.shape_cast %324 : vector<1x1x64x512xf32> to vector<64x512xf32>
    %c0_93 = arith.constant 0 : index
    %c1_94 = arith.constant 1 : index
    %c0_95 = arith.constant 0 : index
    %c0_96 = arith.constant 0 : index
    %326 = vector.load %arg5[%c0_93, %c1_94, %c0_95, %c0_96] : memref<1x2x64x128xf32, #tpu.memory_space<vmem>>, vector<1x1x64x128xf32>
    %327 = vector.shape_cast %326 : vector<1x1x64x128xf32> to vector<64x128xf32>
    %328 = arith.mulf %327, %322 : vector<64x128xf32>
    %c0_97 = arith.constant 0 : index
    %c1_98 = arith.constant 1 : index
    %c0_99 = arith.constant 0 : index
    %c0_100 = arith.constant 0 : index
    %329 = vector.load %arg4[%c0_97, %c1_98, %c0_99, %c0_100] : memref<1x2x64x128xf32, #tpu.memory_space<vmem>>, vector<1x1x64x128xf32>
    %330 = vector.shape_cast %329 : vector<1x1x64x128xf32> to vector<64x128xf32>
    %331 = arith.mulf %330, %323 : vector<64x128xf32>
    %332 = vector.extract_strided_slice %325 {offsets = [0, 0], sizes = [64, 128], strides = [1, 1]} : vector<64x512xf32> to vector<64x128xf32>
    %333 = vector.extract_strided_slice %328 {offsets = [0, 0], sizes = [64, 32], strides = [1, 1]} : vector<64x128xf32> to vector<64x32xf32>
    %334 = vector.extract_strided_slice %331 {offsets = [0, 0], sizes = [64, 32], strides = [1, 1]} : vector<64x128xf32> to vector<64x32xf32>
    %335 = vector.broadcast %36 : vector<1x128xf32> to vector<64x128xf32>
    %336 = arith.mulf %332, %335 : vector<64x128xf32>
    %337 = vector.broadcast %40 : vector<1x128xf32> to vector<64x128xf32>
    %338 = arith.mulf %332, %337 : vector<64x128xf32>
    %339 = tpu.concatenate %336, %338 in 0 : vector<64x128xf32>, vector<64x128xf32> -> vector<128x128xf32>
    %340 = vector.broadcast %45 : vector<1x32xf32> to vector<64x32xf32>
    %341 = arith.mulf %334, %340 : vector<64x32xf32>
    %342 = vector.broadcast %49 : vector<1x32xf32> to vector<64x32xf32>
    %343 = arith.mulf %334, %342 : vector<64x32xf32>
    %344 = tpu.concatenate %341, %343 in 0 : vector<64x32xf32>, vector<64x32xf32> -> vector<128x32xf32>
    %cst_101 = arith.constant dense<0.000000e+00> : vector<64x128xf32>
    %345 = tpu.matmul %333, %344, %cst_101 {dimension_numbers = #tpu.dot_dimension_numbers<[1], [1], [0], [0], [0, 0, 1, 0], [], []>} : vector<64x32xf32>, vector<128x32xf32>, vector<64x128xf32> -> vector<64x128xf32>
    %346 = arith.mulf %345, %18 : vector<64x128xf32>
    %cst_102 = arith.constant dense<0.000000e+00> : vector<64x128xf32>
    %347 = tpu.matmul %346, %339, %cst_102 {dimension_numbers = #tpu.dot_dimension_numbers<[1], [0], [0], [1], [0, 0, 1, 1], [], []>} : vector<64x128xf32>, vector<128x128xf32>, vector<64x128xf32> -> vector<64x128xf32>
    %348 = vector.extract_strided_slice %318 {offsets = [0, 0], sizes = [1, 1], strides = [1, 1]} : vector<1x8xf32> to vector<1x1xf32>
    %349 = vector.broadcast %348 : vector<1x1xf32> to vector<1x128xf32>
    %350 = arith.mulf %349, %36 : vector<1x128xf32>
    %351 = vector.extract_strided_slice %318 {offsets = [0, 1], sizes = [1, 1], strides = [1, 1]} : vector<1x8xf32> to vector<1x1xf32>
    %352 = vector.broadcast %351 : vector<1x1xf32> to vector<1x128xf32>
    %353 = arith.mulf %352, %40 : vector<1x128xf32>
    %354 = arith.addf %350, %353 : vector<1x128xf32>
    %355 = vector.extract_strided_slice %320 {offsets = [0, 0], sizes = [1, 1], strides = [1, 1]} : vector<1x8xf32> to vector<1x1xf32>
    %356 = vector.broadcast %355 : vector<1x1xf32> to vector<1x128xf32>
    %357 = arith.mulf %356, %36 : vector<1x128xf32>
    %358 = vector.extract_strided_slice %320 {offsets = [0, 1], sizes = [1, 1], strides = [1, 1]} : vector<1x8xf32> to vector<1x1xf32>
    %359 = vector.broadcast %358 : vector<1x1xf32> to vector<1x128xf32>
    %360 = arith.mulf %359, %40 : vector<1x128xf32>
    %361 = arith.addf %357, %360 : vector<1x128xf32>
    %362 = vector.extract_strided_slice %321 {offsets = [0, 0], sizes = [1, 1], strides = [1, 1]} : vector<1x8xf32> to vector<1x1xf32>
    %363 = vector.broadcast %362 : vector<1x1xf32> to vector<1x128xf32>
    %364 = arith.mulf %363, %36 : vector<1x128xf32>
    %365 = vector.extract_strided_slice %321 {offsets = [0, 1], sizes = [1, 1], strides = [1, 1]} : vector<1x8xf32> to vector<1x1xf32>
    %366 = vector.broadcast %365 : vector<1x1xf32> to vector<1x128xf32>
    %367 = arith.mulf %366, %40 : vector<1x128xf32>
    %368 = arith.addf %364, %367 : vector<1x128xf32>
    %c0_103 = arith.constant 0 : index
    %c0_104 = arith.constant 0 : index
    %c0_105 = arith.constant 0 : index
    %369 = vector.load %arg7[%c0_103, %c0_104, %c0_105] : memref<4x32x128xf32, #tpu.memory_space<vmem>>, vector<1x32x128xf32>
    %370 = vector.shape_cast %369 : vector<1x32x128xf32> to vector<32x128xf32>
    %371 = vector.broadcast %368 : vector<1x128xf32> to vector<32x128xf32>
    %372 = arith.mulf %370, %371 : vector<32x128xf32>
    %cst_106 = arith.constant dense<0.000000e+00> : vector<64x128xf32>
    %373 = tpu.matmul %333, %372, %cst_106 {dimension_numbers = #tpu.dot_dimension_numbers<[1], [0], [0], [1], [0, 0, 1, 1], [], []>} : vector<64x32xf32>, vector<32x128xf32>, vector<64x128xf32> -> vector<64x128xf32>
    %374 = arith.addf %347, %373 : vector<64x128xf32>
    %cst_107 = arith.constant dense<0.000000e+00> : vector<32x128xf32>
    %375 = tpu.matmul %344, %339, %cst_107 {dimension_numbers = #tpu.dot_dimension_numbers<[0], [0], [1], [1], [0, 1, 1, 1], [], []>} : vector<128x32xf32>, vector<128x128xf32>, vector<32x128xf32> -> vector<32x128xf32>
    %376 = vector.broadcast %354 : vector<1x128xf32> to vector<32x128xf32>
    %377 = arith.mulf %376, %370 : vector<32x128xf32>
    %378 = vector.broadcast %361 : vector<1x128xf32> to vector<32x128xf32>
    %379 = arith.mulf %378, %375 : vector<32x128xf32>
    %380 = arith.addf %377, %379 : vector<32x128xf32>
    %c0_108 = arith.constant 0 : index
    %c0_109 = arith.constant 0 : index
    %c0_110 = arith.constant 0 : index
    %381 = vector.load %arg7[%c0_108, %c0_109, %c0_110] : memref<4x32x128xf32, #tpu.memory_space<vmem>>, vector<1x32x128xf32>
    %382 = vector.shape_cast %381 : vector<1x32x128xf32> to vector<32x128xf32>
    %383 = vector.shape_cast %380 : vector<32x128xf32> to vector<1x32x128xf32>
    tpu.vector_store %arg7[%c0_108, %c0_109, %c0_110], %383 {strides = array<i32>} : memref<4x32x128xf32, #tpu.memory_space<vmem>>, vector<1x32x128xf32>,
    %c0_111 = arith.constant 0 : index
    %c1_112 = arith.constant 1 : index
    %c0_113 = arith.constant 0 : index
    %c0_114 = arith.constant 0 : index
    %384 = vector.load %arg6[%c0_111, %c1_112, %c0_113, %c0_114] : memref<1x2x64x512xf32, #tpu.memory_space<vmem>>, vector<1x1x64x128xf32>
    %385 = vector.shape_cast %384 : vector<1x1x64x128xf32> to vector<64x128xf32>
    %386 = vector.shape_cast %374 : vector<64x128xf32> to vector<1x1x64x128xf32>
    tpu.vector_store %arg6[%c0_111, %c1_112, %c0_113, %c0_114], %386 {strides = array<i32>} : memref<1x2x64x512xf32, #tpu.memory_space<vmem>>, vector<1x1x64x128xf32>,
    %387 = vector.extract_strided_slice %325 {offsets = [0, 128], sizes = [64, 128], strides = [1, 1]} : vector<64x512xf32> to vector<64x128xf32>
    %388 = vector.extract_strided_slice %328 {offsets = [0, 32], sizes = [64, 32], strides = [1, 1]} : vector<64x128xf32> to vector<64x32xf32>
    %389 = vector.extract_strided_slice %331 {offsets = [0, 32], sizes = [64, 32], strides = [1, 1]} : vector<64x128xf32> to vector<64x32xf32>
    %390 = vector.broadcast %36 : vector<1x128xf32> to vector<64x128xf32>
    %391 = arith.mulf %387, %390 : vector<64x128xf32>
    %392 = vector.broadcast %40 : vector<1x128xf32> to vector<64x128xf32>
    %393 = arith.mulf %387, %392 : vector<64x128xf32>
    %394 = tpu.concatenate %391, %393 in 0 : vector<64x128xf32>, vector<64x128xf32> -> vector<128x128xf32>
    %395 = vector.broadcast %45 : vector<1x32xf32> to vector<64x32xf32>
    %396 = arith.mulf %389, %395 : vector<64x32xf32>
    %397 = vector.broadcast %49 : vector<1x32xf32> to vector<64x32xf32>
    %398 = arith.mulf %389, %397 : vector<64x32xf32>
    %399 = tpu.concatenate %396, %398 in 0 : vector<64x32xf32>, vector<64x32xf32> -> vector<128x32xf32>
    %cst_115 = arith.constant dense<0.000000e+00> : vector<64x128xf32>
    %400 = tpu.matmul %388, %399, %cst_115 {dimension_numbers = #tpu.dot_dimension_numbers<[1], [1], [0], [0], [0, 0, 1, 0], [], []>} : vector<64x32xf32>, vector<128x32xf32>, vector<64x128xf32> -> vector<64x128xf32>
    %401 = arith.mulf %400, %18 : vector<64x128xf32>
    %cst_116 = arith.constant dense<0.000000e+00> : vector<64x128xf32>
    %402 = tpu.matmul %401, %394, %cst_116 {dimension_numbers = #tpu.dot_dimension_numbers<[1], [0], [0], [1], [0, 0, 1, 1], [], []>} : vector<64x128xf32>, vector<128x128xf32>, vector<64x128xf32> -> vector<64x128xf32>
    %403 = vector.extract_strided_slice %318 {offsets = [0, 2], sizes = [1, 1], strides = [1, 1]} : vector<1x8xf32> to vector<1x1xf32>
    %404 = vector.broadcast %403 : vector<1x1xf32> to vector<1x128xf32>
    %405 = arith.mulf %404, %36 : vector<1x128xf32>
    %406 = vector.extract_strided_slice %318 {offsets = [0, 3], sizes = [1, 1], strides = [1, 1]} : vector<1x8xf32> to vector<1x1xf32>
    %407 = vector.broadcast %406 : vector<1x1xf32> to vector<1x128xf32>
    %408 = arith.mulf %407, %40 : vector<1x128xf32>
    %409 = arith.addf %405, %408 : vector<1x128xf32>
    %410 = vector.extract_strided_slice %320 {offsets = [0, 2], sizes = [1, 1], strides = [1, 1]} : vector<1x8xf32> to vector<1x1xf32>
    %411 = vector.broadcast %410 : vector<1x1xf32> to vector<1x128xf32>
    %412 = arith.mulf %411, %36 : vector<1x128xf32>
    %413 = vector.extract_strided_slice %320 {offsets = [0, 3], sizes = [1, 1], strides = [1, 1]} : vector<1x8xf32> to vector<1x1xf32>
    %414 = vector.broadcast %413 : vector<1x1xf32> to vector<1x128xf32>
    %415 = arith.mulf %414, %40 : vector<1x128xf32>
    %416 = arith.addf %412, %415 : vector<1x128xf32>
    %417 = vector.extract_strided_slice %321 {offsets = [0, 2], sizes = [1, 1], strides = [1, 1]} : vector<1x8xf32> to vector<1x1xf32>
    %418 = vector.broadcast %417 : vector<1x1xf32> to vector<1x128xf32>
    %419 = arith.mulf %418, %36 : vector<1x128xf32>
    %420 = vector.extract_strided_slice %321 {offsets = [0, 3], sizes = [1, 1], strides = [1, 1]} : vector<1x8xf32> to vector<1x1xf32>
    %421 = vector.broadcast %420 : vector<1x1xf32> to vector<1x128xf32>
    %422 = arith.mulf %421, %40 : vector<1x128xf32>
    %423 = arith.addf %419, %422 : vector<1x128xf32>
    %c1_117 = arith.constant 1 : index
    %c0_118 = arith.constant 0 : index
    %c0_119 = arith.constant 0 : index
    %424 = vector.load %arg7[%c1_117, %c0_118, %c0_119] : memref<4x32x128xf32, #tpu.memory_space<vmem>>, vector<1x32x128xf32>
    %425 = vector.shape_cast %424 : vector<1x32x128xf32> to vector<32x128xf32>
    %426 = vector.broadcast %423 : vector<1x128xf32> to vector<32x128xf32>
    %427 = arith.mulf %425, %426 : vector<32x128xf32>
    %cst_120 = arith.constant dense<0.000000e+00> : vector<64x128xf32>
    %428 = tpu.matmul %388, %427, %cst_120 {dimension_numbers = #tpu.dot_dimension_numbers<[1], [0], [0], [1], [0, 0, 1, 1], [], []>} : vector<64x32xf32>, vector<32x128xf32>, vector<64x128xf32> -> vector<64x128xf32>
    %429 = arith.addf %402, %428 : vector<64x128xf32>
    %cst_121 = arith.constant dense<0.000000e+00> : vector<32x128xf32>
    %430 = tpu.matmul %399, %394, %cst_121 {dimension_numbers = #tpu.dot_dimension_numbers<[0], [0], [1], [1], [0, 1, 1, 1], [], []>} : vector<128x32xf32>, vector<128x128xf32>, vector<32x128xf32> -> vector<32x128xf32>
    %431 = vector.broadcast %409 : vector<1x128xf32> to vector<32x128xf32>
    %432 = arith.mulf %431, %425 : vector<32x128xf32>
    %433 = vector.broadcast %416 : vector<1x128xf32> to vector<32x128xf32>
    %434 = arith.mulf %433, %430 : vector<32x128xf32>
    %435 = arith.addf %432, %434 : vector<32x128xf32>
    %c1_122 = arith.constant 1 : index
    %c0_123 = arith.constant 0 : index
    %c0_124 = arith.constant 0 : index
    %436 = vector.load %arg7[%c1_122, %c0_123, %c0_124] : memref<4x32x128xf32, #tpu.memory_space<vmem>>, vector<1x32x128xf32>
    %437 = vector.shape_cast %436 : vector<1x32x128xf32> to vector<32x128xf32>
    %438 = vector.shape_cast %435 : vector<32x128xf32> to vector<1x32x128xf32>
    tpu.vector_store %arg7[%c1_122, %c0_123, %c0_124], %438 {strides = array<i32>} : memref<4x32x128xf32, #tpu.memory_space<vmem>>, vector<1x32x128xf32>,
    %c0_125 = arith.constant 0 : index
    %c1_126 = arith.constant 1 : index
    %c0_127 = arith.constant 0 : index
    %c128_128 = arith.constant 128 : index
    %439 = vector.load %arg6[%c0_125, %c1_126, %c0_127, %c128_128] : memref<1x2x64x512xf32, #tpu.memory_space<vmem>>, vector<1x1x64x128xf32>
    %440 = vector.shape_cast %439 : vector<1x1x64x128xf32> to vector<64x128xf32>
    %441 = vector.shape_cast %429 : vector<64x128xf32> to vector<1x1x64x128xf32>
    tpu.vector_store %arg6[%c0_125, %c1_126, %c0_127, %c128_128], %441 {strides = array<i32>} : memref<1x2x64x512xf32, #tpu.memory_space<vmem>>, vector<1x1x64x128xf32>,
    %442 = vector.extract_strided_slice %325 {offsets = [0, 256], sizes = [64, 128], strides = [1, 1]} : vector<64x512xf32> to vector<64x128xf32>
    %443 = vector.extract_strided_slice %328 {offsets = [0, 64], sizes = [64, 32], strides = [1, 1]} : vector<64x128xf32> to vector<64x32xf32>
    %444 = vector.extract_strided_slice %331 {offsets = [0, 64], sizes = [64, 32], strides = [1, 1]} : vector<64x128xf32> to vector<64x32xf32>
    %445 = vector.broadcast %36 : vector<1x128xf32> to vector<64x128xf32>
    %446 = arith.mulf %442, %445 : vector<64x128xf32>
    %447 = vector.broadcast %40 : vector<1x128xf32> to vector<64x128xf32>
    %448 = arith.mulf %442, %447 : vector<64x128xf32>
    %449 = tpu.concatenate %446, %448 in 0 : vector<64x128xf32>, vector<64x128xf32> -> vector<128x128xf32>
    %450 = vector.broadcast %45 : vector<1x32xf32> to vector<64x32xf32>
    %451 = arith.mulf %444, %450 : vector<64x32xf32>
    %452 = vector.broadcast %49 : vector<1x32xf32> to vector<64x32xf32>
    %453 = arith.mulf %444, %452 : vector<64x32xf32>
    %454 = tpu.concatenate %451, %453 in 0 : vector<64x32xf32>, vector<64x32xf32> -> vector<128x32xf32>
    %cst_129 = arith.constant dense<0.000000e+00> : vector<64x128xf32>
    %455 = tpu.matmul %443, %454, %cst_129 {dimension_numbers = #tpu.dot_dimension_numbers<[1], [1], [0], [0], [0, 0, 1, 0], [], []>} : vector<64x32xf32>, vector<128x32xf32>, vector<64x128xf32> -> vector<64x128xf32>
    %456 = arith.mulf %455, %18 : vector<64x128xf32>
    %cst_130 = arith.constant dense<0.000000e+00> : vector<64x128xf32>
    %457 = tpu.matmul %456, %449, %cst_130 {dimension_numbers = #tpu.dot_dimension_numbers<[1], [0], [0], [1], [0, 0, 1, 1], [], []>} : vector<64x128xf32>, vector<128x128xf32>, vector<64x128xf32> -> vector<64x128xf32>
    %458 = vector.extract_strided_slice %318 {offsets = [0, 4], sizes = [1, 1], strides = [1, 1]} : vector<1x8xf32> to vector<1x1xf32>
    %459 = vector.broadcast %458 : vector<1x1xf32> to vector<1x128xf32>
    %460 = arith.mulf %459, %36 : vector<1x128xf32>
    %461 = vector.extract_strided_slice %318 {offsets = [0, 5], sizes = [1, 1], strides = [1, 1]} : vector<1x8xf32> to vector<1x1xf32>
    %462 = vector.broadcast %461 : vector<1x1xf32> to vector<1x128xf32>
    %463 = arith.mulf %462, %40 : vector<1x128xf32>
    %464 = arith.addf %460, %463 : vector<1x128xf32>
    %465 = vector.extract_strided_slice %320 {offsets = [0, 4], sizes = [1, 1], strides = [1, 1]} : vector<1x8xf32> to vector<1x1xf32>
    %466 = vector.broadcast %465 : vector<1x1xf32> to vector<1x128xf32>
    %467 = arith.mulf %466, %36 : vector<1x128xf32>
    %468 = vector.extract_strided_slice %320 {offsets = [0, 5], sizes = [1, 1], strides = [1, 1]} : vector<1x8xf32> to vector<1x1xf32>
    %469 = vector.broadcast %468 : vector<1x1xf32> to vector<1x128xf32>
    %470 = arith.mulf %469, %40 : vector<1x128xf32>
    %471 = arith.addf %467, %470 : vector<1x128xf32>
    %472 = vector.extract_strided_slice %321 {offsets = [0, 4], sizes = [1, 1], strides = [1, 1]} : vector<1x8xf32> to vector<1x1xf32>
    %473 = vector.broadcast %472 : vector<1x1xf32> to vector<1x128xf32>
    %474 = arith.mulf %473, %36 : vector<1x128xf32>
    %475 = vector.extract_strided_slice %321 {offsets = [0, 5], sizes = [1, 1], strides = [1, 1]} : vector<1x8xf32> to vector<1x1xf32>
    %476 = vector.broadcast %475 : vector<1x1xf32> to vector<1x128xf32>
    %477 = arith.mulf %476, %40 : vector<1x128xf32>
    %478 = arith.addf %474, %477 : vector<1x128xf32>
    %c2_131 = arith.constant 2 : index
    %c0_132 = arith.constant 0 : index
    %c0_133 = arith.constant 0 : index
    %479 = vector.load %arg7[%c2_131, %c0_132, %c0_133] : memref<4x32x128xf32, #tpu.memory_space<vmem>>, vector<1x32x128xf32>
    %480 = vector.shape_cast %479 : vector<1x32x128xf32> to vector<32x128xf32>
    %481 = vector.broadcast %478 : vector<1x128xf32> to vector<32x128xf32>
    %482 = arith.mulf %480, %481 : vector<32x128xf32>
    %cst_134 = arith.constant dense<0.000000e+00> : vector<64x128xf32>
    %483 = tpu.matmul %443, %482, %cst_134 {dimension_numbers = #tpu.dot_dimension_numbers<[1], [0], [0], [1], [0, 0, 1, 1], [], []>} : vector<64x32xf32>, vector<32x128xf32>, vector<64x128xf32> -> vector<64x128xf32>
    %484 = arith.addf %457, %483 : vector<64x128xf32>
    %cst_135 = arith.constant dense<0.000000e+00> : vector<32x128xf32>
    %485 = tpu.matmul %454, %449, %cst_135 {dimension_numbers = #tpu.dot_dimension_numbers<[0], [0], [1], [1], [0, 1, 1, 1], [], []>} : vector<128x32xf32>, vector<128x128xf32>, vector<32x128xf32> -> vector<32x128xf32>
    %486 = vector.broadcast %464 : vector<1x128xf32> to vector<32x128xf32>
    %487 = arith.mulf %486, %480 : vector<32x128xf32>
    %488 = vector.broadcast %471 : vector<1x128xf32> to vector<32x128xf32>
    %489 = arith.mulf %488, %485 : vector<32x128xf32>
    %490 = arith.addf %487, %489 : vector<32x128xf32>
    %c2_136 = arith.constant 2 : index
    %c0_137 = arith.constant 0 : index
    %c0_138 = arith.constant 0 : index
    %491 = vector.load %arg7[%c2_136, %c0_137, %c0_138] : memref<4x32x128xf32, #tpu.memory_space<vmem>>, vector<1x32x128xf32>
    %492 = vector.shape_cast %491 : vector<1x32x128xf32> to vector<32x128xf32>
    %493 = vector.shape_cast %490 : vector<32x128xf32> to vector<1x32x128xf32>
    tpu.vector_store %arg7[%c2_136, %c0_137, %c0_138], %493 {strides = array<i32>} : memref<4x32x128xf32, #tpu.memory_space<vmem>>, vector<1x32x128xf32>,
    %c0_139 = arith.constant 0 : index
    %c1_140 = arith.constant 1 : index
    %c0_141 = arith.constant 0 : index
    %c256_142 = arith.constant 256 : index
    %494 = vector.load %arg6[%c0_139, %c1_140, %c0_141, %c256_142] : memref<1x2x64x512xf32, #tpu.memory_space<vmem>>, vector<1x1x64x128xf32>
    %495 = vector.shape_cast %494 : vector<1x1x64x128xf32> to vector<64x128xf32>
    %496 = vector.shape_cast %484 : vector<64x128xf32> to vector<1x1x64x128xf32>
    tpu.vector_store %arg6[%c0_139, %c1_140, %c0_141, %c256_142], %496 {strides = array<i32>} : memref<1x2x64x512xf32, #tpu.memory_space<vmem>>, vector<1x1x64x128xf32>,
    %497 = vector.extract_strided_slice %325 {offsets = [0, 384], sizes = [64, 128], strides = [1, 1]} : vector<64x512xf32> to vector<64x128xf32>
    %498 = vector.extract_strided_slice %328 {offsets = [0, 96], sizes = [64, 32], strides = [1, 1]} : vector<64x128xf32> to vector<64x32xf32>
    %499 = vector.extract_strided_slice %331 {offsets = [0, 96], sizes = [64, 32], strides = [1, 1]} : vector<64x128xf32> to vector<64x32xf32>
    %500 = vector.broadcast %36 : vector<1x128xf32> to vector<64x128xf32>
    %501 = arith.mulf %497, %500 : vector<64x128xf32>
    %502 = vector.broadcast %40 : vector<1x128xf32> to vector<64x128xf32>
    %503 = arith.mulf %497, %502 : vector<64x128xf32>
    %504 = tpu.concatenate %501, %503 in 0 : vector<64x128xf32>, vector<64x128xf32> -> vector<128x128xf32>
    %505 = vector.broadcast %45 : vector<1x32xf32> to vector<64x32xf32>
    %506 = arith.mulf %499, %505 : vector<64x32xf32>
    %507 = vector.broadcast %49 : vector<1x32xf32> to vector<64x32xf32>
    %508 = arith.mulf %499, %507 : vector<64x32xf32>
    %509 = tpu.concatenate %506, %508 in 0 : vector<64x32xf32>, vector<64x32xf32> -> vector<128x32xf32>
    %cst_143 = arith.constant dense<0.000000e+00> : vector<64x128xf32>
    %510 = tpu.matmul %498, %509, %cst_143 {dimension_numbers = #tpu.dot_dimension_numbers<[1], [1], [0], [0], [0, 0, 1, 0], [], []>} : vector<64x32xf32>, vector<128x32xf32>, vector<64x128xf32> -> vector<64x128xf32>
    %511 = arith.mulf %510, %18 : vector<64x128xf32>
    %cst_144 = arith.constant dense<0.000000e+00> : vector<64x128xf32>
    %512 = tpu.matmul %511, %504, %cst_144 {dimension_numbers = #tpu.dot_dimension_numbers<[1], [0], [0], [1], [0, 0, 1, 1], [], []>} : vector<64x128xf32>, vector<128x128xf32>, vector<64x128xf32> -> vector<64x128xf32>
    %513 = vector.extract_strided_slice %318 {offsets = [0, 6], sizes = [1, 1], strides = [1, 1]} : vector<1x8xf32> to vector<1x1xf32>
    %514 = vector.broadcast %513 : vector<1x1xf32> to vector<1x128xf32>
    %515 = arith.mulf %514, %36 : vector<1x128xf32>
    %516 = vector.extract_strided_slice %318 {offsets = [0, 7], sizes = [1, 1], strides = [1, 1]} : vector<1x8xf32> to vector<1x1xf32>
    %517 = vector.broadcast %516 : vector<1x1xf32> to vector<1x128xf32>
    %518 = arith.mulf %517, %40 : vector<1x128xf32>
    %519 = arith.addf %515, %518 : vector<1x128xf32>
    %520 = vector.extract_strided_slice %320 {offsets = [0, 6], sizes = [1, 1], strides = [1, 1]} : vector<1x8xf32> to vector<1x1xf32>
    %521 = vector.broadcast %520 : vector<1x1xf32> to vector<1x128xf32>
    %522 = arith.mulf %521, %36 : vector<1x128xf32>
    %523 = vector.extract_strided_slice %320 {offsets = [0, 7], sizes = [1, 1], strides = [1, 1]} : vector<1x8xf32> to vector<1x1xf32>
    %524 = vector.broadcast %523 : vector<1x1xf32> to vector<1x128xf32>
    %525 = arith.mulf %524, %40 : vector<1x128xf32>
    %526 = arith.addf %522, %525 : vector<1x128xf32>
    %527 = vector.extract_strided_slice %321 {offsets = [0, 6], sizes = [1, 1], strides = [1, 1]} : vector<1x8xf32> to vector<1x1xf32>
    %528 = vector.broadcast %527 : vector<1x1xf32> to vector<1x128xf32>
    %529 = arith.mulf %528, %36 : vector<1x128xf32>
    %530 = vector.extract_strided_slice %321 {offsets = [0, 7], sizes = [1, 1], strides = [1, 1]} : vector<1x8xf32> to vector<1x1xf32>
    %531 = vector.broadcast %530 : vector<1x1xf32> to vector<1x128xf32>
    %532 = arith.mulf %531, %40 : vector<1x128xf32>
    %533 = arith.addf %529, %532 : vector<1x128xf32>
    %c3_145 = arith.constant 3 : index
    %c0_146 = arith.constant 0 : index
    %c0_147 = arith.constant 0 : index
    %534 = vector.load %arg7[%c3_145, %c0_146, %c0_147] : memref<4x32x128xf32, #tpu.memory_space<vmem>>, vector<1x32x128xf32>
    %535 = vector.shape_cast %534 : vector<1x32x128xf32> to vector<32x128xf32>
    %536 = vector.broadcast %533 : vector<1x128xf32> to vector<32x128xf32>
    %537 = arith.mulf %535, %536 : vector<32x128xf32>
    %cst_148 = arith.constant dense<0.000000e+00> : vector<64x128xf32>
    %538 = tpu.matmul %498, %537, %cst_148 {dimension_numbers = #tpu.dot_dimension_numbers<[1], [0], [0], [1], [0, 0, 1, 1], [], []>} : vector<64x32xf32>, vector<32x128xf32>, vector<64x128xf32> -> vector<64x128xf32>
    %539 = arith.addf %512, %538 : vector<64x128xf32>
    %cst_149 = arith.constant dense<0.000000e+00> : vector<32x128xf32>
    %540 = tpu.matmul %509, %504, %cst_149 {dimension_numbers = #tpu.dot_dimension_numbers<[0], [0], [1], [1], [0, 1, 1, 1], [], []>} : vector<128x32xf32>, vector<128x128xf32>, vector<32x128xf32> -> vector<32x128xf32>
    %541 = vector.broadcast %519 : vector<1x128xf32> to vector<32x128xf32>
    %542 = arith.mulf %541, %535 : vector<32x128xf32>
    %543 = vector.broadcast %526 : vector<1x128xf32> to vector<32x128xf32>
    %544 = arith.mulf %543, %540 : vector<32x128xf32>
    %545 = arith.addf %542, %544 : vector<32x128xf32>
    %c3_150 = arith.constant 3 : index
    %c0_151 = arith.constant 0 : index
    %c0_152 = arith.constant 0 : index
    %546 = vector.load %arg7[%c3_150, %c0_151, %c0_152] : memref<4x32x128xf32, #tpu.memory_space<vmem>>, vector<1x32x128xf32>
    %547 = vector.shape_cast %546 : vector<1x32x128xf32> to vector<32x128xf32>
    %548 = vector.shape_cast %545 : vector<32x128xf32> to vector<1x32x128xf32>
    tpu.vector_store %arg7[%c3_150, %c0_151, %c0_152], %548 {strides = array<i32>} : memref<4x32x128xf32, #tpu.memory_space<vmem>>, vector<1x32x128xf32>,
    %c0_153 = arith.constant 0 : index
    %c1_154 = arith.constant 1 : index
    %c0_155 = arith.constant 0 : index
    %c384_156 = arith.constant 384 : index
    %549 = vector.load %arg6[%c0_153, %c1_154, %c0_155, %c384_156] : memref<1x2x64x512xf32, #tpu.memory_space<vmem>>, vector<1x1x64x128xf32>
    %550 = vector.shape_cast %549 : vector<1x1x64x128xf32> to vector<64x128xf32>
    %551 = vector.shape_cast %539 : vector<64x128xf32> to vector<1x1x64x128xf32>
    tpu.vector_store %arg6[%c0_153, %c1_154, %c0_155, %c384_156], %551 {strides = array<i32>} : memref<1x2x64x512xf32, #tpu.memory_space<vmem>>, vector<1x1x64x128xf32>,
    return
  }
  func.func @transform_0(%arg0: i32, %arg1: i32) -> (i32, i32, i32, i32) {
    %c0_i32 = arith.constant 0 : i32
    %c0_i32_0 = arith.constant 0 : i32
    %c0_i32_1 = arith.constant 0 : i32
    return %arg0, %arg1, %c0_i32, %c0_i32_0 : i32, i32, i32, i32
  }
  func.func @transform_1(%arg0: i32, %arg1: i32) -> (i32, i32, i32, i32) {
    %c0_i32 = arith.constant 0 : i32
    %c0_i32_0 = arith.constant 0 : i32
    %c0_i32_1 = arith.constant 0 : i32
    return %arg0, %arg1, %c0_i32, %c0_i32_0 : i32, i32, i32, i32
  }
  func.func @transform_2(%arg0: i32, %arg1: i32) -> (i32, i32, i32, i32) {
    %c0_i32 = arith.constant 0 : i32
    %c0_i32_0 = arith.constant 0 : i32
    %c0_i32_1 = arith.constant 0 : i32
    return %arg0, %arg1, %c0_i32, %c0_i32_0 : i32, i32, i32, i32
  }
  func.func @transform_3(%arg0: i32, %arg1: i32) -> (i32, i32, i32, i32) {
    %c0_i32 = arith.constant 0 : i32
    %c0_i32_0 = arith.constant 0 : i32
    %c0_i32_1 = arith.constant 0 : i32
    return %arg0, %arg1, %c0_i32, %c0_i32_0 : i32, i32, i32, i32
  }
  func.func @transform_4(%arg0: i32, %arg1: i32) -> (i32, i32, i32, i32) {
    %c0_i32 = arith.constant 0 : i32
    %c0_i32_0 = arith.constant 0 : i32
    %c0_i32_1 = arith.constant 0 : i32
    return %arg0, %arg1, %c0_i32, %c0_i32_0 : i32, i32, i32, i32
  }
}

</mosaic_0001>

<bundles_post_ra>
// kernel: tpu_custom_call.1
= control target key start
LH: loop header
LB: loop body
LE: loop exit
PB: predicated region body
PF: predicated region fallthrough
CT: control target
= control target key end

     0   :  { %9 = vsyncpa [#allocation4], 0  ;;  %s14604_s0 = inlined_call_operand.vmem [shape: f32[2,2,64,8], index: 0, kind: input, shape index: {}]   ;;  %s14605_s1 = inlined_call_operand.hbm [shape: f32[2,2,64,512], index: 1, kind: input, shape index: {}]   ;;  %s14606_s2 = inlined_call_operand.vmem [shape: f32[2,2,64,128], index: 2, kind: input, shape index: {}]   ;;  %s14607_s3 = inlined_call_operand.hbm [shape: f32[2,2,64,128], index: 3, kind: input, shape index: {}]   ;;  %s14608_s4 = inlined_call_operand.hbm [shape: f32[2,2,64,512], index: 4, kind: output, shape index: {}]  }
   0x1   :  { %11 = vsyncpa [#allocation4 + $0x1], 0 }
   0x2   :  { %12 = vsyncpa [#allocation7], 0 }
   0x3   :  { %14 = vsyncpa [#allocation7 + $0x1], 0 }
   0x4   :  { %15 = vsyncpa [#allocation5], 0 }
   0x5   :  { %17 = vsyncpa [#allocation5 + $0x1], 0  ;;  %s11138_s15 = smov 0   ;;  %s11140_s16 = smov 0  }
   0x6   :  { %s11142_s17 = smov 0   ;;  %s11144_s18 = smov 0  }
   0x7   :  { %s11146_s19 = smov 0   ;;  %s11148_s20 = smov 0  }
   0x8 LB: > { %s7026_s21 = sadd.s32 4294967295, %s11090_s20   ;;  %s7027_s22 = sadd.s32 4294967294, %s11090_s20   ;;  %s11090_s20 = sphi %s11148_s20, %s23_s20   ;;  %s11086_s19 = sphi %s11146_s19, %s15061_s19   ;;  %s11082_s18 = sphi %s11144_s18, %s15060_s18   ;;  %s11078_s17 = sphi %s11142_s17, %s15059_s17   ;;  %s11074_s16 = sphi %s11140_s16, %s15058_s16   ;;  %s11070_s15 = sphi %s11138_s15, %s15057_s15  }
   0x9   : > { %s35_s23 = sadd.s32 1, %s11086_s19  ;;  %s72_s24 = sadd.s32 1, %s11078_s17 }
   0xa   : > { %p37_p0 = scmp.ge.s32.totalorder %s35_s23, 2  ;;  %p79_p1 = scmp.ne.s32.totalorder %s11078_s17, %s11074_s16 }
   0xb   : > { %p80_p2 = scmp.eq.s32.totalorder %s11090_s20, 0  ;;  %p85_p3 = scmp.ne.s32.totalorder %s11074_s16, %s11070_s15 }
   0xc   : > { %s15063_s23 = smov (%p37_p0, %s35_s23), 0  ;;  %p86_p5 = scmp.eq.s32.totalorder %s7026_s21, 0 }
   0xd   : > { %p11179_p4 = por %p80_p2, %p79_p1  ;;  %s67_s26 = ssub.s32 %s11086_s19, %s15063_s23 }
   0xe   : > { %p167_p6 = scmp.eq.s32.totalorder %s7026_s21, 1  ;;  %p70_p7 = scmp.eq.s32.totalorder %s67_s26, 0 }
   0xf   : > { %p11185_p8 = por %p86_p5, %p85_p3  ;;  %p173_p10 = scmp.eq.s32.totalorder %s7027_s22, 1 }
  0x10   : > { %p11189_p9 = por %p167_p6, %p79_p1  ;;  %p10532_p13 = scmp.lt.s32.totalorder %s11090_s20, 2 }
  0x11   : > { %s14787_s27 = scalar_select %p11185_p8, 1, 0 }
  0x12   : > { %s14788_s28 = scalar_select %p11189_p9, 1, 0 }
  0x13   : > { %s11194_s29 = scalar_select %p70_p7, %s11078_s17, %s72_s24  }
  0x14   : > { %p11196_p11 = por %p173_p10, %p85_p3  ;;  %s11203_s5 = sand.u32 1, %s11078_s17  }
  0x15   : > { %s7030_s6 = sshll.u32 %s11203_s5, 9  ;;  %s7466_s7 = sshll.u32 %s11086_s19, 13 }
  0x16   : > { %s14789_s30 = scalar_select %p11196_p11, 1, 0 }
  0x17   : > { %s11210_s10 = scalar_lea.hbm %s14605_s1, %s7466_s7  ;;  %s211_s11 = scalar_lea.vmem [#allocation3], %s7030_s6 }
  0x18   : > { %s221_s12 = sshll.u32 %s211_s11, 4  ;;  %p11216_p0 = pnand %p10532_p13, %p11179_p4  ;;  %s11212_s12 = int_to_ptr.vmem [resolvable:$true] %s221_s12 }
  0x19   : > { %s208_s14 = scalar_lea.sflag [#allocation4], %s11203_s5  ;;  %s10944_s21 = scalar_lea.hbm %s11210_s10, 8192 }
  0x1a   : > { %p10945_p2 = scmp.ne.s32.totalorder %s11210_s10, %s10944_s21  ;;  %p10946_p3 = pneg %p11216_p0 }
  0x1b   : > { %s10949_s25 = scalar_lea.hbm %s14605_s1, 16384  ;;  %p10950_p4 = scmp.lt.u32.totalorder %s11210_s10, %s14605_s1 }
  0x1c   : > { %p10947_p5 = pnand %p10946_p3, %p10945_p2  ;;  %p10951_p7 = scmp.lt.u32.totalorder %s10949_s25, %s10944_s21 }
  0x1d   : > { %p10953_p13 = scmp.lt.u32.totalorder %s10944_s21, %s11210_s10 }
  0x1e   : > { %p10948_p6 = pneg %p10947_p5  ;;  %p10952_p10 = por %p10951_p7, %p10950_p4 }
  0x20   : > { %p10954_p12 = por %p10953_p13, %p10952_p10 }
  0x22   : > { %p10955_p1 = pnand %p10954_p12, %p10948_p6 }
  0x24   : > { %10958 = shalt.err (!%p10955_p1)
}
  0x25   : > { %s10959_s7 = scalar_lea.vmem %s11212_s12, 8192  ;;  %s11092_s8 = smov [#allocation3]  }
  0x26   : > { %p10960_p2 = scmp.ne.s32.totalorder %s11212_s12, %s10959_s7  ;;  %s10964_s9 = sshll.u32 %s11092_s8, 4  ;;  %s10965_s9 = int_to_ptr.vmem [resolvable:$false] %s10964_s9 }
  0x27   : > { %s10966_s11 = scalar_lea.vmem %s10965_s9, 16384  ;;  %p10967_p9 = scmp.lt.s32.totalorder %s11212_s12, %s10965_s9 }
  0x28   : > { %p10962_p5 = pnand %p10960_p2, %p10946_p3  ;;  %p10968_p4 = scmp.lt.s32.totalorder %s10966_s11, %s10959_s7 }
  0x2a   : > { %p10963_p11 = pneg %p10962_p5  ;;  %p10969_p7 = por %p10968_p4, %p10967_p9 }
  0x2c   : > { %p10970_p10 = pnand %p10969_p7, %p10963_p11 }
  0x2e   : > { %10973 = shalt.err (!%p10970_p10)
}
  0x2f   : > { %s11093_s21 = smov 512   ;;  %s11094_s22 = smov 32  }
  0x30   : > { %10524 = dma.hbm_to_vmem [thread:$0]  (!%p11216_p0), %s11210_s10, 8192, %s11212_s12, %s208_s14, %s11093_s21, %s11093_s21, %s11094_s22  }
  0x31   : > { %p267_p12 = scmp.lt.s32.totalorder %s11090_s20, 3  ;;  %s7033_s24 = sshll.u32 %s11203_s5, 7 }
  0x32   : > { %s7467_s25 = sshll.u32 %s11086_s19, 11  ;;  %p14791_p9 = scmp.ge.s32.totalorder %s11090_s20, 1 }
  0x33   : > { %s11261_s8 = scalar_lea.hbm %s14607_s3, %s7467_s25  ;;  %s249_s9 = scalar_lea.vmem [#allocation6], %s7033_s24 }
  0x34   : > { %p11254_p11 = pnand %p14791_p9, %p267_p12  ;;  %s259_s11 = sshll.u32 %s249_s9, 4  ;;  %s11263_s11 = int_to_ptr.vmem [resolvable:$true] %s259_s11 }
  0x35   : > { %s246_s10 = scalar_lea.sflag [#allocation7], %s11203_s5  ;;  %s10974_s12 = scalar_lea.hbm %s11261_s8, 2048 }
  0x36   : > { %p10975_p1 = scmp.ne.s32.totalorder %s11261_s8, %s10974_s12  ;;  %s10979_s22 = scalar_lea.hbm %s14607_s3, 4096 }
  0x37   : > { %p10980_p2 = scmp.lt.u32.totalorder %s11261_s8, %s14607_s3  ;;  %p10981_p5 = scmp.lt.u32.totalorder %s10979_s22, %s10974_s12 }
  0x38   : > { %p10977_p6 = pnand %p10975_p1, %p10946_p3  ;;  %p10983_p7 = scmp.lt.u32.totalorder %s10974_s12, %s11261_s8 }
  0x39   : > { %p10982_p4 = por %p10981_p5, %p10980_p2 }
  0x3a   : > { %p10978_p13 = pneg %p10977_p6 }
  0x3b   : > { %p10984_p10 = por %p10983_p7, %p10982_p4 }
  0x3d   : > { %p10985_p12 = pnand %p10984_p10, %p10978_p13 }
  0x3f   : > { %10988 = shalt.err (!%p10985_p12)
}
  0x40   : > { %s10989_s24 = scalar_lea.vmem %s11263_s11, 2048  ;;  %s11095_s7 = smov [#allocation6]  }
  0x41   : > { %p10990_p9 = scmp.ne.s32.totalorder %s11263_s11, %s10989_s24  ;;  %s10994_s9 = sshll.u32 %s11095_s7, 4  ;;  %s10995_s9 = int_to_ptr.vmem [resolvable:$false] %s10994_s9 }
  0x42   : > { %s10996_s14 = scalar_lea.vmem %s10995_s9, 4096  ;;  %p10997_p8 = scmp.lt.s32.totalorder %s11263_s11, %s10995_s9 }
  0x43   : > { %p10992_p1 = pnand %p10990_p9, %p10946_p3  ;;  %p10998_p2 = scmp.lt.s32.totalorder %s10996_s14, %s10989_s24 }
  0x45   : > { %p10993_p6 = pneg %p10992_p1  ;;  %p10999_p5 = por %p10998_p2, %p10997_p8 }
  0x47   : > { %p11000_p4 = pnand %p10999_p5, %p10993_p6 }
  0x49   : > { %11003 = shalt.err (!%p11000_p4)
}
  0x4a   : > { %s11096_s12 = smov 128   ;;  %s11097_s21 = smov 8  }
  0x4b   : > { %10527 = dma.hbm_to_vmem [thread:$0]  (!%p11216_p0), %s11261_s8, 2048, %s11263_s11, %s246_s10, %s11096_s12, %s11096_s12, %s11097_s21  }
  0x4c   : > { %271 = sbr.rel (%p11254_p11) target bundleno = 2906 (0xb5a), region = 36 }
  0x53   : > { %s11294_s22 = sand.u32 1, %s11074_s16   ;;  %p14793_p8 = scmp.ne.s32.totalorder %s14787_s27, 0 }
  0x54   : > { %s7037_s25 = sshll.u32 %s11294_s22, 9  ;;  %s274_s6 = scalar_lea.sflag [#allocation4], %s11294_s22 }
  0x55   : > { %s11300_s24 = scalar_lea.vmem [#allocation3], %s7037_s25 }
  0x56   : > { %11057 = dma.done.wait (%p14793_p8), %s274_s6, 8192  }
  0x57   : > { %11059 = vsyncadd (%p14793_p8), %s274_s6, 4294959104  ;;  %s7038_s5 = sshll.u32 %s11294_s22, 7  ;;  %s283_s13 = scalar_lea.sflag [#allocation7], %s11294_s22 }
  0x58   : > { %s11308_s26 = scalar_lea.vmem [#allocation6], %s7038_s5 }
  0x59   : > { %11061 = dma.done.wait (%p14793_p8), %s283_s13, 2048  }
  0x5a   : > { %11063 = vsyncadd (%p14793_p8), %s283_s13, 4294965248  ;;  %p337_p0 = scmp.lt.s32.totalorder %s11082_s18, 1  ;;  %v381_v0 = vlaneseq  ;;  %vm469_vm0 = vcmask 523264   ;;  %v14617_v3 = vmov 0.0   ;;  %v14803_v33 = vmov 0  ;;  %s11100_s9 = smov 32  }
  0x5b   : > { %v14611_v34 = vmov 1.0   ;;  %vm599_vm14 = vcmask 64512   ;;  %vm1050_vm15 = vcmask 261120   ;;  %s11101_s6 = smov 96   ;;  %s11102_s5 = smov 64  }
  0x5c   : > { %s11316_s8 = scalar_select %p337_p0, %s11082_s18, 1  ;;  %v11318_v1 = vshrl.u32 %v381_v0, 7  ;;  %v11320_v2 = vand.u32 127, %v381_v0 }
  0x5d   : > { %s12741_s13 = scalar_lea.vmem [#allocation8], %s7037_s25  ;;  %s7470_s25 = sshll.u32 %s11082_s18, 13 }
  0x5e   : > { %14794 = vst [vmem:[#allocation12_spill] sm:$0xff] %v11318_v1  ;;  %s7468_s11 = sshll.u32 %s11316_s8, 7  ;;  %vm392_vm1 = vcmp.le.s32.totalorder %v11320_v2, %v11318_v1  ;;  %v11346_v17 = vadd.s32 8, %v11318_v1  ;;  %v11349_v18 = vadd.s32 16, %v11318_v1  ;;  %v11354_v19 = vadd.s32 24, %v11318_v1  ;;  %s6855_s27 = scalar_lea.sflag [#allocation5], %s11294_s22 }
  0x5f   : > { %s11330_s7 = scalar_lea.vmem %s14604_s0, %s7468_s11  ;;  %v11333_v4 = vsel %vm392_vm1, 1.0, %v14617_v3  ;;  %v11359_v20 = vadd.s32 32, %v11318_v1  ;;  %v11370_v23 = vadd.s32 40, %v11318_v1  ;;  %v11375_v24 = vadd.s32 48, %v11318_v1  ;;  %s11546_s21 = scalar_lea.vmem %s14606_s2, %s7468_s11  ;;  %vm11587_vm1 = vmpackc.low %vm1050_vm15, %vm1050_vm15 }
  0x60   : > { %14795 = vst [vmem:[#allocation13_spill] sm:$0xff] %v11333_v4  ;;  %8195 = vmatprep.mubr.msk.f32.mxu0 %vm469_vm0, %v11333_v4  ;;  %v461_v5 = vld [vmem:[%s11330_s7] sm:$0xff]  ;;  %v462_v6 = vld [vmem:[%s11330_s7 + $0x8] sm:$0xff]  ;;  %v463_v7 = vld [vmem:[%s11330_s7 + $0x10] sm:$0xff]  ;;  %vm393_vm2 = vcmp.le.s32.totalorder %v11320_v2, %v11346_v17  ;;  %vm394_vm3 = vcmp.le.s32.totalorder %v11320_v2, %v11349_v18  ;;  %vm395_vm4 = vcmp.le.s32.totalorder %v11320_v2, %v11354_v19  ;;  %v11390_v27 = vadd.s32 56, %v11318_v1  ;;  %s14550_s11 = scalar_lea.hbm %s14608_s4, %s7470_s25  ;;  %p15054_p11 = scmp.ne.s32.totalorder %s14788_s28, 0 }
  0x61   : > { %v9459_v8 = vpack.c.bf16 %v462_v6, %v461_v5  ;;  %v464_v9 = vld [vmem:[%s11330_s7 + $0x18] sm:$0xff]  ;;  %v465_v11 = vld [vmem:[%s11330_s7 + $0x20] sm:$0xff]  ;;  %v466_v12 = vld [vmem:[%s11330_s7 + $0x28] sm:$0xff]  ;;  %v11362_v21 = vsel %vm393_vm2, 1.0, %v14617_v3  ;;  %v11365_v22 = vsel %vm394_vm3, 1.0, %v14617_v3  ;;  %vm396_vm5 = vcmp.le.s32.totalorder %v11320_v2, %v11359_v20  ;;  %s11111_s10 = smov [#allocation8]  }
  0x62   : > { %v9463_v10 = vpack.c.bf16 %v464_v9, %v463_v7  ;;  %v9467_v13 = vpack.c.bf16 %v466_v12, %v465_v11  ;;  %v467_v14 = vld [vmem:[%s11330_s7 + $0x30] sm:$0xff]  ;;  %v468_v15 = vld [vmem:[%s11330_s7 + $0x38] sm:$0xff]  ;;  %14796 = vst [vmem:[#allocation14_spill] sm:$0xff] %v11362_v21  ;;  %14797 = vst [vmem:[#allocation15_spill] sm:$0xff] %v11365_v22  ;;  %v11382_v25 = vsel %vm395_vm4, 1.0, %v14617_v3  ;;  %v11385_v26 = vsel %vm396_vm5, 1.0, %v14617_v3 }
  0x63   : > { %9460 = vmatprep.subr.bf16.mxu0 %v9459_v8  ;;  %v9471_v16 = vpack.c.bf16 %v468_v15, %v467_v14  ;;  %14798 = vst [vmem:[#allocation16_spill] sm:$0xff] %v11382_v25  ;;  %14799 = vst [vmem:[#allocation17_spill] sm:$0xff] %v11385_v26  ;;  %vm397_vm6 = vcmp.le.s32.totalorder %v11320_v2, %v11370_v23  ;;  %vm398_vm7 = vcmp.le.s32.totalorder %v11320_v2, %v11375_v24 }
  0x64   : > { %9462 = vmatpush3.bf16.msra.mxu0 %v9459_v8  ;;  %v11399_v28 = vsel %vm397_vm6, 1.0, %v14617_v3  ;;  %v11402_v29 = vsel %vm398_vm7, 1.0, %v14617_v3  ;;  %vm399_vm8 = vcmp.le.s32.totalorder %v11320_v2, %v11390_v27  ;;  %v443_v31 = vmul.u32 16, %v11318_v1 }
  0x65   : > { %9464 = vmatprep.subr.bf16.mxu0 %v9463_v10  ;;  %14800 = vst [vmem:[#allocation18_spill] sm:$0xff] %v11399_v28  ;;  %14801 = vst [vmem:[#allocation19_spill] sm:$0xff] %v11402_v29  ;;  %v11411_v30 = vsel %vm399_vm8, 1.0, %v14617_v3  ;;  %vm455_vm12 = vcmp.lt.s32.totalorder %v11320_v2, 16  ;;  %vm458_vm13 = vcmp.ge.s32.totalorder %v11320_v2, 16  ;;  %vm450_vm2 = vcmp.lt.s32.totalorder %v11320_v2, 64 }
  0x66   : > { %14802 = vst [vmem:[#allocation20_spill] sm:$0xff] %v11411_v30  ;;  %vm444_vm9 = vcmp.ge.s32.totalorder %v11320_v2, %v443_v31  ;;  %v445_v32 = vadd.s32 16, %v443_v31  ;;  %v11437_v35 = vsel %vm455_vm12, 1.0, %v14617_v3  ;;  %v11442_v36 = vsel %vm458_vm13, 1.0, %v14617_v3 }
  0x67   : > { %14806 = vst [vmem:[#allocation22_spill] sm:$0xff] %v11437_v35  ;;  %1655 = vrot.lane.b32.xlu0 %v11437_v35, %s11100_s9  ;;  %14807 = vst [vmem:[#allocation23_spill] sm:$0xff] %v11442_v36  ;;  %vm416_vm3 = vcmp.ge.s32.totalorder %v11320_v2, 64 }
  0x68   : > { %9466 = vmatpush3.bf16.msra.mxu0 %v9463_v10  ;;  %vm446_vm10 = vcmp.lt.s32.totalorder %v11320_v2, %v445_v32 }
  0x69   : > { %9468 = vmatprep.subr.bf16.mxu0 %v9467_v13  ;;  %vm11418_vm11 = vmand %vm444_vm9, %vm446_vm10 }
  0x6a   : > { %v14804_v33 = vsel %vm11418_vm11, 4294967295, %v14803_v33  ;;  %8221 = vmatprep.subr.msk.mxu1 %vm11418_vm11, %v14611_v34 }
  0x6b   : > { %14805 = vst [vmem:[#allocation21_spill] sm:$0xff] %v14804_v33  ;;  %8222 = vmatpush3.msk.msra.mxu1 %vm11418_vm11, %v14611_v34  ;;  %1667 = vrot.lane.b32.xlu0 %v11442_v36, %s11100_s9 }
  0x6c   : > { %9470 = vmatpush3.bf16.msra.mxu0 %v9467_v13 }
  0x6d   : > { %9472 = vmatprep.subr.bf16.mxu0 %v9471_v16 }
  0x70   : > { %9474 = vmatpush3.bf16.msra.mxu0 %v9471_v16 }
  0x71   : > { %8207 = vmatprep.subr.msk.mxu0 %vm11418_vm11, %v14611_v34 }
  0x73   : > { %8196 = vmatmul.mubr.msk.f32.vlgmr.msra.gmra.mrb[0].mxu0 %vm469_vm0, %v11362_v21 }
  0x74   : > { %8198 = vmatprep.mubr.msk.f32.mxu0 %vm469_vm0, %v11365_v22  ;;  %8208 = vmatpush3.msk.msra.mxu0 %vm11418_vm11, %v14611_v34 }
  0x77   : > { %8199 = vmatmul.mubr.msk.f32.gmra.mrb[2].mxu0 %vm469_vm0, %v11382_v25 }
  0x78   : > { %8201 = vmatprep.mubr.msk.f32.mxu0 %vm469_vm0, %v11385_v26 }
  0x7b   : > { %8202 = vmatmul.mubr.msk.f32.gmra.mrb[4].mxu0 %vm469_vm0, %v11399_v28 }
  0x7c   : > { %8204 = vmatprep.mubr.msk.f32.mxu0 %vm469_vm0, %v11402_v29 }
  0x7f   : > { %8205 = vmatmul.mubr.msk.f32.gmra.mrb[6].mxu0 %vm469_vm0, %v11411_v30 }
 0x146   : > { %v11446_v37 = vpop.f32.mrb[0].mxu0 }
 0x147   : > { %v560_v38 = vpop.f32.mrb[1].mxu0  ;;  %v601_v41 = vsel %vm599_vm14, %v11446_v37, -inf  ;;  %v622_v42 = vsel %vm599_vm14, %v11446_v37, inf }
 0x148   : > { %v600_v44 = vsel %vm599_vm14, %v560_v38, -inf  ;;  %v621_v45 = vsel %vm599_vm14, %v560_v38, inf }
 0x14a   : > { %v11448_v39 = vpop.f32.mrb[2].mxu0 }
 0x14b   : > { %v11450_v40 = vpop.f32.mrb[3].mxu0  ;;  %v603_v55 = vsel %vm599_vm14, %v11448_v39, -inf  ;;  %v624_v56 = vsel %vm599_vm14, %v11448_v39, inf }
 0x14c   : > { %v602_v63 = vsel %vm599_vm14, %v11450_v40, -inf  ;;  %v623_v7 = vsel %vm599_vm14, %v11450_v40, inf }
 0x14e   : > { %v11456_v43 = vpop.f32.mrb[4].mxu0 }
 0x14f   : > { %v606_v46 = vsel %vm599_vm14, %v11456_v43, -inf  ;;  %v627_v47 = vsel %vm599_vm14, %v11456_v43, inf  ;;  %v11464_v48 = vpop.f32.mrb[5].mxu0 }
 0x150   : > { %v607_v49 = vmax.f32 %v601_v41, %v606_v46  ;;  %v628_v50 = vmin.f32 %v622_v42, %v627_v47  ;;  %v604_v51 = vsel %vm599_vm14, %v11464_v48, -inf  ;;  %v625_v52 = vsel %vm599_vm14, %v11464_v48, inf }
 0x151   : > { %v605_v53 = vmax.f32 %v600_v44, %v604_v51  ;;  %v626_v54 = vmin.f32 %v621_v45, %v625_v52 }
 0x152   : > { %v11474_v57 = vpop.f32.mrb[6].mxu0 }
 0x153   : > { %14808 = vst [vmem:[#allocation24_spill] sm:$0xff] %v11474_v57  ;;  %v612_v58 = vmax.f32 %v605_v53, %v607_v49  ;;  %v633_v59 = vmin.f32 %v626_v54, %v628_v50  ;;  %v610_v60 = vsel %vm599_vm14, %v11474_v57, -inf  ;;  %v631_v61 = vsel %vm599_vm14, %v11474_v57, inf  ;;  %v11480_v62 = vpop.f32.mrb[7].mxu0 }
 0x154   : > { %v611_v0 = vmax.f32 %v603_v55, %v610_v60  ;;  %v632_v5 = vmin.f32 %v624_v56, %v631_v61  ;;  %v608_v6 = vsel %vm599_vm14, %v11480_v62, -inf  ;;  %v629_v9 = vsel %vm599_vm14, %v11480_v62, inf }
 0x155   : > { %v609_v8 = vmax.f32 %v602_v63, %v608_v6  ;;  %v630_v10 = vmin.f32 %v623_v7, %v629_v9 }
 0x157   : > { %v613_v11 = vmax.f32 %v609_v8, %v611_v0  ;;  %v634_v12 = vmin.f32 %v630_v10, %v632_v5 }
 0x159   : > { %v614_v13 = vmax.f32 %v612_v58, %v613_v11  ;;  %v635_v14 = vmin.f32 %v633_v59, %v634_v12 }
 0x15b   : > { %v615_v15 = vrot.slane %v614_v13, 4  ;;  %v636_v16 = vrot.slane %v635_v14, 4 }
 0x15d   : > { %v616_v31 = vmax.f32 %v614_v13, %v615_v15  ;;  %v637_v32 = vmin.f32 %v635_v14, %v636_v16 }
 0x15f   : > { %v617_v41 = vrot.slane %v616_v31, 2  ;;  %v638_v42 = vrot.slane %v637_v32, 2 }
 0x161   : > { %v618_v44 = vmax.f32 %v616_v31, %v617_v41  ;;  %v639_v45 = vmin.f32 %v637_v32, %v638_v42 }
 0x163   : > { %v619_v46 = vrot.slane %v618_v44, 1  ;;  %v640_v47 = vrot.slane %v639_v45, 1 }
 0x165   : > { %v620_v49 = vmax.f32 %v618_v44, %v619_v46  ;;  %v641_v50 = vmin.f32 %v639_v45, %v640_v47 }
 0x167   : > { %v642_v51 = vadd.f32 %v641_v50, %v620_v49 }
 0x169   : > { %v11490_v52 = vmul.f32 0.5, %v642_v51 }
 0x16b   : > { %v650_v53 = vsub.f32 %v11480_v62, %v11490_v52  ;;  %v651_v54 = vsub.f32 %v11474_v57, %v11490_v52  ;;  %v674_v55 = vsub.f32 %v11490_v52, %v11480_v62  ;;  %v644_v56 = vsub.f32 %v560_v38, %v11490_v52 }
 0x16c   : > { %v668_v58 = vsub.f32 %v11490_v52, %v560_v38  ;;  %v645_v59 = vsub.f32 %v11446_v37, %v11490_v52  ;;  %v669_v60 = vsub.f32 %v11490_v52, %v11446_v37  ;;  %v646_v0 = vsub.f32 %v11450_v40, %v11490_v52 }
 0x16d   : > { %v664_v61 = vmul.f32 1.442695, %v650_v53  ;;  %v652_v63 = vmul.f32 1.442695, %v644_v56  ;;  %v670_v6 = vsub.f32 %v11490_v52, %v11450_v40  ;;  %v647_v62 = vsub.f32 %v11448_v39, %v11490_v52 }
 0x16e   : > { %v676_v5 = vmul.f32 1.442695, %v668_v58  ;;  %v654_v7 = vmul.f32 1.442695, %v645_v59  ;;  %v671_v38 = vsub.f32 %v11490_v52, %v11448_v39  ;;  %v648_v8 = vsub.f32 %v11464_v48, %v11490_v52 }
 0x16f   : > { %10874 = vpow2.f32 %v664_v61  ;;  %v678_v37 = vmul.f32 1.442695, %v669_v60  ;;  %v672_v9 = vsub.f32 %v11490_v52, %v11464_v48  ;;  %v656_v10 = vmul.f32 1.442695, %v646_v0  ;;  %v986_v0 = vld [vmem:[%s11308_s26] sm:$0xff] }
 0x170   : > { %10876 = vpow2.f32 %v652_v63  ;;  %v649_v40 = vsub.f32 %v11456_v43, %v11490_v52  ;;  %v680_v11 = vmul.f32 1.442695, %v670_v6  ;;  %v673_v12 = vsub.f32 %v11490_v52, %v11456_v43  ;;  %v1003_v63 = vld [vmem:[%s11546_s21 + $0x8] sm:$0xff]  ;;  %v1002_v6 = vld [vmem:[%s11546_s21] sm:$0xff] }
 0x171   : > { %10878 = vpow2.f32 %v676_v5  ;;  %v675_v39 = vsub.f32 %v11490_v52, %v11474_v57  ;;  %v658_v13 = vmul.f32 1.442695, %v647_v62  ;;  %v682_v14 = vmul.f32 1.442695, %v671_v38 }
 0x172   : > { %10880 = vpow2.f32 %v654_v7  ;;  %v660_v15 = vmul.f32 1.442695, %v648_v8  ;;  %v684_v48 = vmul.f32 1.442695, %v672_v9  ;;  %v662_v16 = vmul.f32 1.442695, %v649_v40  ;;  %v11557_v9 = vpop.permute.xlu0 %1655 }
 0x173   : > { %10882 = vpow2.f32 %v678_v37  ;;  %v686_v31 = vmul.f32 1.442695, %v673_v12  ;;  %v688_v32 = vmul.f32 1.442695, %v674_v55  ;;  %v666_v42 = vmul.f32 1.442695, %v651_v54 }
 0x174   : > { %10884 = vpow2.f32 %v656_v10  ;;  %v690_v45 = vmul.f32 1.442695, %v675_v39  ;;  %14810 = vst [vmem:[#allocation26_spill] sm:$0xff] %v11557_v9  ;;  %v1005_v40 = vld [vmem:[%s11546_s21 + $0x18] sm:$0xff]  ;;  %v1004_v12 = vld [vmem:[%s11546_s21 + $0x10] sm:$0xff] }
 0x175   : > { %10886 = vpow2.f32 %v680_v11 }
 0x176   : > { %10888 = vpow2.f32 %v658_v13 }
 0x177   : > { %10890 = vpow2.f32 %v682_v14 }
 0x178   : > { %10892 = vpow2.f32 %v660_v15 }
 0x179   : > { %v10875_v41 = vpop.eup %10874  ;;  %10894 = vpow2.f32 %v684_v48 }
 0x17a   : > { %v10877_v43 = vpop.eup %10876  ;;  %10896 = vpow2.f32 %v662_v16 }
 0x17b   : > { %v10879_v44 = vpop.eup %10878  ;;  %8209 = vmatprep.mubr.msk.f32.mxu0 %vm599_vm14, %v10877_v43  ;;  %10898 = vpow2.f32 %v686_v31 }
 0x17c   : > { %v10881_v46 = vpop.eup %10880  ;;  %10900 = vpow2.f32 %v688_v32  ;;  %8223 = vmatprep.mubr.msk.f32.mxu1 %vm599_vm14, %v10879_v44  ;;  %v1007_v44 = vld [vmem:[%s11546_s21 + $0x28] sm:$0xff] }
 0x17d   : > { %v10883_v47 = vpop.eup %10882  ;;  %8210 = vmatmul.mubr.msk.f32.vlgmr.msra.gmra.mrb[8].mxu0 %vm599_vm14, %v10881_v46  ;;  %10902 = vpow2.f32 %v666_v42 }
 0x17e   : > { %v10885_v49 = vpop.eup %10884  ;;  %8224 = vmatmul.mubr.msk.f32.vlgmr.msra.gmra.mrb[0].mxu1 %vm599_vm14, %v10883_v47  ;;  %10904 = vpow2.f32 %v690_v45  ;;  %v1006_v47 = vld [vmem:[%s11546_s21 + $0x20] sm:$0xff] }
 0x17f   : > { %v10887_v50 = vpop.eup %10886  ;;  %8212 = vmatprep.mubr.msk.f32.mxu0 %vm599_vm14, %v10885_v49 }
 0x180   : > { %v10889_v51 = vpop.eup %10888  ;;  %8226 = vmatprep.mubr.msk.f32.mxu1 %vm599_vm14, %v10887_v50 }
 0x181   : > { %v10891_v53 = vpop.eup %10890  ;;  %8213 = vmatmul.mubr.msk.f32.gmra.mrb[10].mxu0 %vm599_vm14, %v10889_v51 }
 0x182   : > { %v10893_v54 = vpop.eup %10892  ;;  %8227 = vmatmul.mubr.msk.f32.gmra.mrb[2].mxu1 %vm599_vm14, %v10891_v53 }
 0x183   : > { %v10895_v55 = vpop.eup %10894  ;;  %8215 = vmatprep.mubr.msk.f32.mxu0 %vm599_vm14, %v10893_v54 }
 0x184   : > { %v10897_v56 = vpop.eup %10896  ;;  %8229 = vmatprep.mubr.msk.f32.mxu1 %vm599_vm14, %v10895_v55 }
 0x185   : > { %v10899_v58 = vpop.eup %10898  ;;  %8216 = vmatmul.mubr.msk.f32.gmra.mrb[12].mxu0 %vm599_vm14, %v10897_v56 }
 0x186   : > { %v10901_v59 = vpop.eup %10900  ;;  %8230 = vmatmul.mubr.msk.f32.gmra.mrb[4].mxu1 %vm599_vm14, %v10899_v58  ;;  %8218 = vmatprep.mubr.msk.f32.mxu0 %vm599_vm14, %v10875_v41  ;;  %v14811_v41 = vmov 0 }
 0x187   : > { %8232 = vmatprep.mubr.msk.f32.mxu1 %vm599_vm14, %v10901_v59  ;;  %v11536_v60 = vpop.eup %10902  ;;  %v14812_v41 = vsel %vm11587_vm1, 4294967295, %v14811_v41  ;;  %v11620_v59 = vpop.permute.xlu0 %1667 }
 0x188   : > { %14809 = vst [vmem:[#allocation25_spill] sm:$0xff] %v11536_v60  ;;  %v10905_v61 = vpop.eup %10904  ;;  %14813 = vst [vmem:[#allocation27_spill] sm:$0xff] %v14812_v41 }
 0x189   : > { %8219 = vmatmul.mubr.msk.f32.gmra.mrb[14].mxu0 %vm599_vm14, %v11536_v60  ;;  %14814 = vst [vmem:[#allocation28_spill] sm:$0xff] %v11620_v59 }
 0x18a   : > { %8233 = vmatmul.mubr.msk.f32.gmra.mrb[6].mxu1 %vm599_vm14, %v10905_v61 }
 0x250   : > { %v11550_v5 = vpop.f32.mrb[8].mxu0 }
 0x251   : > { %v8225_v62 = vpop.f32.mrb[0].mxu1  ;;  %v786_v7 = vpop.f32.mrb[9].mxu0 }
 0x252   : > { %v11553_v38 = vmul.f32 %v8225_v62, %v1003_v63  ;;  %v11555_v8 = vmul.f32 %v986_v0, %v786_v7  ;;  %v915_v37 = vpop.f32.mrb[1].mxu1  ;;  %v1009_v0 = vld [vmem:[%s11546_s21 + $0x38] sm:$0xff]  ;;  %v1008_v7 = vld [vmem:[%s11546_s21 + $0x30] sm:$0xff] }
 0x253   : > { %v11559_v10 = vmul.f32 %v1002_v6, %v915_v37 }
 0x254   : > { %v11562_v11 = vpop.f32.mrb[10].mxu0  ;;  %8267 = vmatprep.mubr.msk.f32.mxu0 %vm1050_vm15, %v11555_v8  ;;  %8287 = vmatprep.mubr.msk.f32.mxu1 %vm1050_vm15, %v11555_v8  ;;  %v1659_v39 = vmul.f32 %v11557_v9, %v11553_v38  ;;  %v11573_v13 = vmul.f32 %v11437_v35, %v11553_v38 }
 0x255   : > { %v8228_v14 = vpop.f32.mrb[2].mxu1  ;;  %v11575_v15 = vpop.f32.mrb[11].mxu0  ;;  %v1658_v48 = vmul.f32 %v11557_v9, %v11559_v10  ;;  %v11581_v16 = vmul.f32 %v11437_v35, %v11559_v10 }
 0x256   : > { %v11583_v31 = vmul.f32 %v8228_v14, %v1005_v40  ;;  %v925_v32 = vpop.f32.mrb[3].mxu1 }
 0x257   : > { %v11591_v43 = vmul.f32 %v1004_v12, %v925_v32  ;;  %v10600_v42 = vpack.i.bf16 %v1659_v39, %v1658_v48  ;;  %v9475_v45 = vpack.c.bf16 %v11573_v13, %v11581_v16 }
 0x258   : > { %v11596_v46 = vpop.f32.mrb[12].mxu0  ;;  %v1661_v49 = vmul.f32 %v11557_v9, %v11583_v31  ;;  %v11603_v50 = vmul.f32 %v11437_v35, %v11583_v31 }
 0x259   : > { %10601 = vrot.lane.b32.xlu1 %v10600_v42, %s11101_s6  ;;  %v8231_v51 = vpop.f32.mrb[4].mxu1  ;;  %9477 = vmatprep.subr.msk.bf16.mxu0 %vm11587_vm1, %v9475_v45  ;;  %v11608_v53 = vpop.f32.mrb[13].mxu0  ;;  %v1660_v54 = vmul.f32 %v11557_v9, %v11591_v43  ;;  %v11614_v55 = vmul.f32 %v11437_v35, %v11591_v43 }
 0x25a   : > { %v11616_v56 = vmul.f32 %v8231_v51, %v1007_v44  ;;  %v935_v58 = vpop.f32.mrb[5].mxu1  ;;  %9480 = vmatpush3.bf16.xpose.msk.msra.mxu0 %vm11587_vm1, %v9475_v45  ;;  %v1670_v44 = vmul.f32 %v11620_v59, %v11559_v10  ;;  %v1671_v45 = vmul.f32 %v11620_v59, %v11553_v38 }
 0x25b   : > { %v11622_v61 = vmul.f32 %v1006_v47, %v935_v58  ;;  %v10605_v63 = vpack.i.bf16 %v1661_v49, %v1660_v54  ;;  %v9481_v6 = vpack.c.bf16 %v11603_v50, %v11614_v55 }
 0x25c   : > { %v11627_v62 = vpop.f32.mrb[14].mxu0  ;;  %v1663_v37 = vmul.f32 %v11557_v9, %v11616_v56  ;;  %v11645_v48 = vmul.f32 %v11437_v35, %v11616_v56 }
 0x25d   : > { %10606 = vrot.lane.b32.xlu1 %v10605_v63, %s11101_s6  ;;  %v8234_v40 = vpop.f32.mrb[6].mxu1  ;;  %9483 = vmatprep.subr.msk.bf16.mxu0 %vm11587_vm1, %v9481_v6  ;;  %v11635_v12 = vpop.f32.mrb[15].mxu0  ;;  %v1662_v39 = vmul.f32 %v11557_v9, %v11622_v61  ;;  %v11641_v14 = vmul.f32 %v11437_v35, %v11622_v61  ;;  %v10620_v63 = vpack.i.bf16 %v1671_v45, %v1670_v44 }
 0x25e   : > { %v11647_v32 = vmul.f32 %v8234_v40, %v1009_v0  ;;  %v945_v42 = vpop.f32.mrb[7].mxu1  ;;  %v1673_v0 = vmul.f32 %v11620_v59, %v11583_v31  ;;  %v1675_v40 = vmul.f32 %v11620_v59, %v11616_v56 }
 0x25f   : > { %v11653_v47 = vmul.f32 %v1008_v7, %v945_v42  ;;  %v10610_v49 = vpack.i.bf16 %v1663_v37, %v1662_v39  ;;  %v9487_v54 = vpack.c.bf16 %v11645_v48, %v11641_v14  ;;  %v1674_v37 = vmul.f32 %v11620_v59, %v11622_v61 }
 0x260   : > { %v1665_v51 = vmul.f32 %v11557_v9, %v11647_v32  ;;  %v1672_v39 = vmul.f32 %v11620_v59, %v11591_v43  ;;  %v11684_v42 = vmul.f32 %v11437_v35, %v11647_v32 }
 0x261   : > { %2336 = vrot.lane.b32.xlu1 %v11437_v35, %s11102_s5  ;;  %10611 = vrot.lane.b32.xlu0 %v10610_v49, %s11101_s6  ;;  %v1664_v58 = vmul.f32 %v11557_v9, %v11653_v47  ;;  %v10630_v44 = vpack.i.bf16 %v1675_v40, %v1674_v37  ;;  %v1676_v49 = vmul.f32 %v11620_v59, %v11653_v47 }
 0x262   : > { %9486 = vmatpush3.bf16.xpose.msk.msra.mxu0 %vm11587_vm1, %v9481_v6  ;;  %v11680_v6 = vmul.f32 %v11437_v35, %v11653_v47  ;;  %v10625_v45 = vpack.i.bf16 %v1673_v0, %v1672_v39  ;;  %v987_v0 = vld [vmem:[%s11308_s26 + $0x8] sm:$0xff]  ;;  %v11708_v37 = vmul.f32 %v11442_v36, %v11553_v38  ;;  %v988_v39 = vld [vmem:[%s11308_s26 + $0x10] sm:$0xff] }
 0x263   : > { %9489 = vmatprep.subr.msk.bf16.mxu0 %vm11587_vm1, %v9487_v54  ;;  %v10615_v7 = vpack.i.bf16 %v1665_v51, %v1664_v58  ;;  %v1677_v51 = vmul.f32 %v11620_v59, %v11647_v32  ;;  %v11712_v40 = vmul.f32 %v11550_v5, %v987_v0  ;;  %v989_v5 = vld [vmem:[%s11308_s26 + $0x18] sm:$0xff] }
 0x264   : > { %v9493_v58 = vpack.c.bf16 %v11684_v42, %v11680_v6 }
 0x265   : > { %10621 = vrot.lane.b32.xlu1 %v10620_v63, %s11101_s6  ;;  %10616 = vrot.lane.b32.xlu0 %v10615_v7, %s11101_s6  ;;  %v10635_v63 = vpack.i.bf16 %v1677_v51, %v1676_v49  ;;  %v11704_v7 = vmul.f32 %v11442_v36, %v11559_v10  ;;  %v11733_v49 = vmul.f32 %v11442_v36, %v11591_v43 }
 0x266   : > { %v11737_v51 = vmul.f32 %v11442_v36, %v11583_v31 }
 0x268   : > { %v9505_v0 = vpack.c.bf16 %v11737_v51, %v11733_v49 }
 0x269   : > { %10631 = vrot.lane.b32.xlu1 %v10630_v44, %s11101_s6  ;;  %10626 = vrot.lane.b32.xlu0 %v10625_v45, %s11101_s6  ;;  %v9499_v44 = vpack.c.bf16 %v11708_v37, %v11704_v7  ;;  %v11724_v45 = vmul.f32 %v988_v39, %v11575_v15  ;;  %v11741_v15 = vmul.f32 %v11562_v11, %v989_v5 }
 0x26a   : > { %9492 = vmatpush3.bf16.xpose.msk.msra.mxu0 %vm11587_vm1, %v9487_v54  ;;  %v14613_v54 = vmov 1   ;;  %v11759_v11 = vmul.f32 %v11442_v36, %v11622_v61  ;;  %v11763_v5 = vmul.f32 %v11442_v36, %v11616_v56 }
 0x26b   : > { %9495 = vmatprep.subr.msk.bf16.mxu0 %vm11587_vm1, %v9493_v58  ;;  %10681 = vset.pattern.permute.xlu1 %v14613_v54 }
 0x26d   : > { %10636 = vrot.lane.b32.xlu1 %v10635_v63, %s11101_s6  ;;  %2347 = vrot.lane.b32.xlu0 %v11442_v36, %s11102_s5  ;;  %v14615_v63 = vmov 0  }
 0x26e   : > { %10680 = vset.pattern.permute.xlu0 %v14615_v63  ;;  %v992_v63 = vld [vmem:[%s11308_s26 + $0x30] sm:$0xff] }
 0x271   : > { %1680 = vrot.lane.b32.xlu1 %v11712_v40, %s11101_s6  ;;  %1678 = vrot.lane.b32.xlu0 %v11555_v8, %s11101_s6 }
 0x272   : > { %9498 = vmatpush3.bf16.xpose.msk.msra.mxu0 %vm11587_vm1, %v9493_v58  ;;  %v991_v58 = vld [vmem:[%s11308_s26 + $0x28] sm:$0xff] }
 0x273   : > { %9501 = vmatprep.subr.msk.bf16.mxu0 %vm11587_vm1, %v9499_v44  ;;  %v11751_v39 = vmul.f32 %v11596_v46, %v991_v58  ;;  %v11773_v46 = vmul.f32 %v11442_v36, %v11653_v47  ;;  %v11777_v58 = vmul.f32 %v11442_v36, %v11647_v32 }
 0x275   : > { %1682 = vrot.lane.b32.xlu1 %v11724_v45, %s11101_s6  ;;  %v9517_v34 = vpack.c.bf16 %v11777_v58, %v11773_v46 }
 0x279   : > { %1684 = vrot.lane.b32.xlu1 %v11741_v15, %s11101_s6 }
 0x27a   : > { %9504 = vmatpush3.bf16.xpose.msk.msra.mxu0 %vm11587_vm1, %v9499_v44  ;;  %v9511_v44 = vpack.c.bf16 %v11763_v5, %v11759_v11 }
 0x27b   : > { %9507 = vmatprep.subr.msk.bf16.mxu0 %vm11587_vm1, %v9505_v0 }
 0x27d   : > { %1688 = vrot.lane.b32.xlu1 %v11751_v39, %s11101_s6 }
 0x282   : > { %9510 = vmatpush3.bf16.xpose.msk.msra.mxu0 %vm11587_vm1, %v9505_v0  ;;  %v990_v0 = vld [vmem:[%s11308_s26 + $0x20] sm:$0xff] }
 0x283   : > { %9513 = vmatprep.subr.msk.bf16.mxu0 %vm11587_vm1, %v9511_v44  ;;  %v11793_v54 = vmul.f32 %v990_v0, %v11608_v53 }
 0x28a   : > { %9516 = vmatpush3.bf16.xpose.msk.msra.mxu0 %vm11587_vm1, %v9511_v44  ;;  %v993_v44 = vld [vmem:[%s11308_s26 + $0x38] sm:$0xff] }
 0x28b   : > { %9519 = vmatprep.subr.msk.bf16.mxu0 %vm11587_vm1, %v9517_v34  ;;  %v11809_v53 = vmul.f32 %v11627_v62, %v993_v44 }
 0x292   : > { %9522 = vmatpush3.bf16.xpose.msk.msra.mxu0 %vm11587_vm1, %v9517_v34  ;;  %v11802_v34 = vmul.f32 %v992_v63, %v11635_v12 }
 0x294   : > { %14815 = vst [vmem:[#allocation29_spill] sm:$0xff] %v11802_v34 }
 0x299   : > { %8268 = vmatmul.mubr.msk.f32.vlgmr.msra.gmra.mrb[16].mxu0 %vm1050_vm15, %v11712_v40 }
 0x29a   : > { %8270 = vmatprep.mubr.msk.f32.mxu0 %vm1050_vm15, %v11724_v45 }
 0x29d   : > { %8271 = vmatmul.mubr.msk.f32.gmra.mrb[18].mxu0 %vm1050_vm15, %v11741_v15 }
 0x29e   : > { %8273 = vmatprep.mubr.msk.f32.mxu0 %vm1050_vm15, %v11793_v54 }
 0x2a1   : > { %8274 = vmatmul.mubr.msk.f32.gmra.mrb[20].mxu0 %vm1050_vm15, %v11751_v39 }
 0x2a2   : > { %8276 = vmatprep.mubr.msk.f32.mxu0 %vm1050_vm15, %v11802_v34 }
 0x2a5   : > { %8277 = vmatmul.mubr.msk.f32.gmra.mrb[22].mxu0 %vm1050_vm15, %v11809_v53 }
 0x2cb   : > { %v11813_v0 = vpop.permute.xlu1 %10601 }
 0x2cc   : > { %v14624_v3 = vunpack.i.h.bf16 %v11813_v0  ;;  %v14625_v60 = vunpack.i.l.bf16 %v11813_v0 }
 0x2ce   : > { %v9595_v12 = vpack.c.bf16 %v14624_v3, %v14625_v60 }
 0x2cf   : > { %v11821_v63 = vpop.permute.xlu1 %10606 }
 0x2d0   : > { %v14629_v57 = vunpack.i.h.bf16 %v11821_v63  ;;  %v14630_v62 = vunpack.i.l.bf16 %v11821_v63  ;;  %9597 = vmatprep.subr.msk.bf16.mxu0 %vm11587_vm1, %v9595_v12 }
 0x2d1   : > { %9600 = vmatpush3.bf16.xpose.msk.msra.mxu0 %vm11587_vm1, %v9595_v12 }
 0x2d2   : > { %v9601_v44 = vpack.c.bf16 %v14629_v57, %v14630_v62 }
 0x2d3   : > { %v11833_v59 = vpop.permute.xlu1 %2336  ;;  %v11835_v3 = vpop.permute.xlu0 %10611 }
 0x2d4   : > { %14816 = vst [vmem:[#allocation30_spill] sm:$0xff] %v11833_v59  ;;  %9603 = vmatprep.subr.msk.bf16.mxu0 %vm11587_vm1, %v9601_v44  ;;  %v2339_v30 = vmul.f32 %v11833_v59, %v11559_v10  ;;  %v2340_v12 = vmul.f32 %v11833_v59, %v11553_v38  ;;  %v2343_v57 = vmul.f32 %v11833_v59, %v11622_v61  ;;  %v14817_v21 = vunpack.i.l.bf16 %v11835_v3 }
 0x2d5   : > { %v2344_v62 = vmul.f32 %v11833_v59, %v11616_v56  ;;  %v2341_v60 = vmul.f32 %v11833_v59, %v11591_v43  ;;  %v2342_v9 = vmul.f32 %v11833_v59, %v11583_v31  ;;  %v2345_v25 = vmul.f32 %v11833_v59, %v11653_v47 }
 0x2d6   : > { %v10640_v29 = vpack.i.bf16 %v2340_v12, %v2339_v30  ;;  %v2346_v22 = vmul.f32 %v11833_v59, %v11647_v32  ;;  %v14818_v4 = vunpack.i.h.bf16 %v11835_v3 }
 0x2d7   : > { %v11853_v28 = vpop.permute.xlu0 %10616  ;;  %v10650_v26 = vpack.i.bf16 %v2344_v62, %v2343_v57  ;;  %v10645_v57 = vpack.i.bf16 %v2342_v9, %v2341_v60 }
 0x2d8   : > { %v9607_v30 = vpack.c.bf16 %v14818_v4, %v14817_v21  ;;  %10641 = vrot.lane.b32.xlu0 %v10640_v29, %s11102_s5  ;;  %v10655_v12 = vpack.i.bf16 %v2346_v22, %v2345_v25  ;;  %v14642_v59 = vunpack.i.h.bf16 %v11853_v28  ;;  %v10618_v33 = vunpack.i.l.bf16 %v11853_v28  ;;  %v11888_v29 = vpop.permute.xlu1 %10621 }
 0x2d9   : > { %10651 = vrot.lane.b32.xlu1 %v10650_v26, %s11102_s5  ;;  %9606 = vmatpush3.bf16.xpose.msk.msra.mxu0 %vm11587_vm1, %v9601_v44  ;;  %v694_v26 = vmul.f32 1.442695, %v11490_v52  ;;  %v10623_v52 = vunpack.i.l.bf16 %v11888_v29 }
 0x2da   : > { %9609 = vmatprep.subr.msk.bf16.mxu0 %vm11587_vm1, %v9607_v30  ;;  %v9613_v21 = vpack.c.bf16 %v14642_v59, %v10618_v33 }
 0x2db   : > { %v11869_v62 = vpop.permute.xlu0 %10626  ;;  %10906 = vpow2.f32 %v694_v26 }
 0x2dc   : > { %10646 = vrot.lane.b32.xlu0 %v10645_v57, %s11102_s5 }
 0x2dd   : > { %10656 = vrot.lane.b32.xlu1 %v10655_v12, %s11102_s5  ;;  %v14643_v12 = vunpack.i.h.bf16 %v11888_v29 }
 0x2df   : > { %v11875_v4 = vpop.permute.xlu0 %2347  ;;  %v9619_v59 = vpack.c.bf16 %v14643_v12, %v10623_v52 }
 0x2e0   : > { %14819 = vst [vmem:[#allocation31_spill] sm:$0xff] %v11875_v4  ;;  %1686 = vrot.lane.b32.xlu0 %v11793_v54, %s11101_s6  ;;  %v2352_v22 = vmul.f32 %v11875_v4, %v11591_v43  ;;  %v2353_v25 = vmul.f32 %v11875_v4, %v11583_v31  ;;  %v2356_v9 = vmul.f32 %v11875_v4, %v11653_v47 }
 0x2e1   : > { %9612 = vmatpush3.bf16.xpose.msk.msra.mxu0 %vm11587_vm1, %v9607_v30  ;;  %v2357_v44 = vmul.f32 %v11875_v4, %v11647_v32 }
 0x2e2   : > { %9615 = vmatprep.subr.msk.bf16.mxu0 %vm11587_vm1, %v9613_v21  ;;  %v10665_v60 = vpack.i.bf16 %v2353_v25, %v2352_v22  ;;  %v2350_v22 = vmul.f32 %v11875_v4, %v11559_v10  ;;  %v2351_v25 = vmul.f32 %v11875_v4, %v11553_v38 }
 0x2e3   : > { %v11898_v57 = vpop.permute.xlu0 %1678  ;;  %v10675_v30 = vpack.i.bf16 %v2357_v44, %v2356_v9  ;;  %v2355_v9 = vmul.f32 %v11875_v4, %v11616_v56  ;;  %v14646_v44 = vunpack.i.h.bf16 %v11869_v62 }
 0x2e4   : > { %14820 = vst [vmem:[#allocation32_spill] sm:$0xff] %v11898_v57  ;;  %10666 = vrot.lane.b32.xlu1 %v10665_v60, %s11102_s5  ;;  %1690 = vrot.lane.b32.xlu0 %v11802_v34, %s11101_s6  ;;  %v10660_v26 = vpack.i.bf16 %v2351_v25, %v2350_v22  ;;  %v2354_v60 = vmul.f32 %v11875_v4, %v11622_v61  ;;  %v11939_v25 = vpop.permute.xlu1 %10631 }
 0x2e5   : > { %8413 = vmatprep.mubr.msk.f32.mxu0 %vm1050_vm15, %v11898_v57  ;;  %v11931_v12 = vpop.eup %10906 }
 0x2e8   : > { %10676 = vrot.lane.b32.xlu1 %v10675_v30, %s11102_s5  ;;  %1692 = vrot.lane.b32.xlu0 %v11809_v53, %s11101_s6  ;;  %v14653_v30 = vunpack.i.l.bf16 %v11869_v62 }
 0x2e9   : > { %9618 = vmatpush3.bf16.xpose.msk.msra.mxu0 %vm11587_vm1, %v9613_v21  ;;  %v10670_v21 = vpack.i.bf16 %v2355_v9, %v2354_v60  ;;  %v14652_v60 = vunpack.i.l.bf16 %v11939_v25  ;;  %v14644_v9 = vmov 2  }
 0x2ea   : > { %9621 = vmatprep.subr.msk.bf16.mxu0 %vm11587_vm1, %v9619_v59  ;;  %v9625_v22 = vpack.c.bf16 %v14646_v44, %v14653_v30  ;;  %v14654_v30 = vmov 5  }
 0x2ec   : > { %2360 = vrot.lane.b32.xlu1 %v11712_v40, %s11102_s5  ;;  %10661 = vrot.lane.b32.xlu0 %v10660_v26, %s11102_s5  ;;  %v14647_v26 = vunpack.i.h.bf16 %v11939_v25 }
 0x2f0   : > { %1266 = vperm.xlu1 %10681, %v11931_v12   ;;  %10671 = vrot.lane.b32.xlu0 %v10670_v21, %s11102_s5  ;;  %v11959_v21 = vpop.permute.xlu1 %10636 }
 0x2f1   : > { %9624 = vmatpush3.bf16.xpose.msk.msra.mxu0 %vm11587_vm1, %v9619_v59  ;;  %v9631_v59 = vpack.c.bf16 %v14647_v26, %v14652_v60  ;;  %v14651_v44 = vunpack.i.l.bf16 %v11959_v21  ;;  %v14648_v26 = vmov 3  }
 0x2f2   : > { %9627 = vmatprep.subr.msk.bf16.mxu0 %vm11587_vm1, %v9625_v22 }
 0x2f4   : > { %2362 = vrot.lane.b32.xlu1 %v11724_v45, %s11102_s5  ;;  %2358 = vrot.lane.b32.xlu0 %v11555_v8, %s11102_s5 }
 0x2f5   : > { %10682 = vset.pattern.permute.xlu1 %v14644_v9  ;;  %v14650_v9 = vunpack.i.h.bf16 %v11959_v21 }
 0x2f8   : > { %2366 = vrot.lane.b32.xlu1 %v11793_v54, %s11102_s5  ;;  %1261 = vperm.xlu0 %10680, %v11931_v12  }
 0x2f9   : > { %9630 = vmatpush3.bf16.xpose.msk.msra.mxu0 %vm11587_vm1, %v9625_v22  ;;  %v9637_v22 = vpack.c.bf16 %v14650_v9, %v14651_v44  ;;  %v10684_v9 = vpack.i.bf16 %v11442_v36, %v11437_v35 }
 0x2fa   : > { %9633 = vmatprep.subr.msk.bf16.mxu0 %vm11587_vm1, %v9631_v59 }
 0x2fc   : > { %2370 = vrot.lane.b32.xlu1 %v11802_v34, %s11102_s5  ;;  %2364 = vrot.lane.b32.xlu0 %v11741_v15, %s11102_s5 }
 0x2fd   : > { %10683 = vset.pattern.permute.xlu0 %v14648_v26  ;;  %v11985_v26 = vpop.permute.xlu1 %1680 }
 0x2fe   : > { %14821 = vst [vmem:[#allocation33_spill] sm:$0xff] %v11985_v26 }
 0x300   : > { %1926 = vperm.xlu1 %10682, %v11931_v12   ;;  %2368 = vrot.lane.b32.xlu0 %v11751_v39, %s11102_s5 }
 0x301   : > { %9636 = vmatpush3.bf16.xpose.msk.msra.mxu0 %vm11587_vm1, %v9631_v59  ;;  %v11993_v44 = vpop.permute.xlu1 %1682  ;;  %v14656_v59 = vmov 4  }
 0x302   : > { %9639 = vmatprep.subr.msk.bf16.mxu0 %vm11587_vm1, %v9637_v22  ;;  %14822 = vst [vmem:[#allocation34_spill] sm:$0xff] %v11993_v44 }
 0x304   : > { %2372 = vrot.lane.b32.xlu0 %v11809_v53, %s11102_s5 }
 0x305   : > { %v12001_v60 = vpop.permute.xlu1 %1684 }
 0x306   : > { %14823 = vst [vmem:[#allocation35_spill] sm:$0xff] %v12001_v60 }
 0x308   : > { %1931 = vperm.xlu0 %10683, %v11931_v12  }
 0x309   : > { %9642 = vmatpush3.bf16.xpose.msk.msra.mxu0 %vm11587_vm1, %v9637_v22  ;;  %v14825_v22 = vunpack.i.h.bf16 %v11813_v0 }
 0x30c   : > { %10685 = vrot.lane.b32.xlu0 %v10684_v9, %s11101_s6  ;;  %v14824_v9 = vunpack.i.l.bf16 %v11813_v0 }
 0x30d   : > { %10689 = vset.pattern.permute.xlu0 %v14656_v59 }
 0x310   : > { %2606 = vperm.xlu0 %10689, %v11931_v12   ;;  %8414 = vmatmul.mubr.msk.f32.vlgmr.msra.gmra.mrb[24].mxu0 %vm1050_vm15, %v11985_v26 }
 0x311   : > { %8416 = vmatprep.mubr.msk.f32.mxu0 %vm1050_vm15, %v11993_v44 }
 0x314   : > { %10690 = vset.pattern.permute.xlu0 %v14654_v30  ;;  %8417 = vmatmul.mubr.msk.f32.gmra.mrb[26].mxu0 %vm1050_vm15, %v12001_v60  ;;  %v14826_v30 = vunpack.i.l.bf16 %v11821_v63  ;;  %v12236_v60 = vld [vmem:[%s11300_s24 + $0xe0] sm:$0xff] }
 0x315   : > { %2611 = vperm.xlu0 %10690, %v11931_v12  }
 0x329   : > { %1489 = vxpose.xlu1.b32.start [1/16] (narrow) %v11581_v16, 32  ;;  %v14827_v16 = vunpack.i.h.bf16 %v11821_v63 }
 0x32d   : > { %1490 = vxpose.xlu1.b32.cont [2/16] (narrow) %v11573_v13, 32  ;;  %v14828_v13 = vunpack.i.l.bf16 %v11835_v3 }
 0x331   : > { %1491 = vxpose.xlu1.b32.cont [3/16] (narrow) %v11614_v55, 32 }
 0x333   : > { %2171 = vxpose.xlu0.b32.start [1/16] (narrow) %v14824_v9, 32 }
 0x335   : > { %1492 = vxpose.xlu1.b32.cont [4/16] (narrow) %v11603_v50, 32  ;;  %v14829_v50 = vunpack.i.h.bf16 %v11835_v3 }
 0x337   : > { %2172 = vxpose.xlu0.b32.cont [2/16] (narrow) %v14825_v22, 32 }
 0x339   : > { %1493 = vxpose.xlu1.b32.cont [5/16] (narrow) %v11641_v14, 32 }
 0x33b   : > { %2173 = vxpose.xlu0.b32.cont [3/16] (narrow) %v14826_v30, 32 }
 0x33d   : > { %1494 = vxpose.xlu1.b32.cont [6/16] (narrow) %v11645_v48, 32 }
 0x33f   : > { %2174 = vxpose.xlu0.b32.cont [4/16] (narrow) %v14827_v16, 32 }
 0x341   : > { %1495 = vxpose.xlu1.b32.cont [7/16] (narrow) %v11680_v6, 32  ;;  %v12034_v6 = vpop.permute.xlu1 %1688 }
 0x342   : > { %14831 = vst [vmem:[#allocation37_spill] sm:$0xff] %v12034_v6 }
 0x343   : > { %2175 = vxpose.xlu0.b32.cont [5/16] (narrow) %v14828_v13, 32 }
 0x345   : > { %1496 = vxpose.xlu1.b32.cont [8/16] (narrow) %v11684_v42, 32 }
 0x347   : > { %2176 = vxpose.xlu0.b32.cont [6/16] (narrow) %v14829_v50, 32  ;;  %v14840_v50 = vunpack.i.l.bf16 %v11869_v62 }
 0x349   : > { %1497 = vxpose.xlu1.b32.cont [9/16] (narrow) %v11704_v7, 32 }
 0x34a   : > { %v12028_v55 = vpop.permute.xlu0 %10641 }
 0x34b   : > { %14830 = vst [vmem:[#allocation36_spill] sm:$0xff] %v12028_v55  ;;  %v14668_v14 = vunpack.i.h.bf16 %v12028_v55  ;;  %v14669_v48 = vunpack.i.l.bf16 %v12028_v55  ;;  %2177 = vxpose.xlu0.b32.cont [7/16] (narrow) %v10618_v33, 32  ;;  %v14833_v33 = vunpack.i.h.bf16 %v11853_v28  ;;  %v12049_v63 = vpop.permute.xlu1 %10651  ;;  %v12219_v55 = vld [vmem:[%s11300_s24 + $0xa0] sm:$0xff] }
 0x34c   : > { %14834 = vst [vmem:[#allocation39_spill] sm:$0xff] %v12049_v63  ;;  %v14662_v9 = vunpack.i.h.bf16 %v12049_v63  ;;  %v14665_v22 = vunpack.i.l.bf16 %v12049_v63  ;;  %v962_v63 = vld [vmem:[%s11300_s24 + $0x40] sm:$0xff] }
 0x34d   : > { %v9715_v42 = vpack.c.bf16 %v14668_v14, %v14669_v48  ;;  %1498 = vxpose.xlu1.b32.cont [10/16] (narrow) %v11708_v37, 32 }
 0x34e   : > { %v12041_v3 = vpop.permute.xlu0 %10646 }
 0x34f   : > { %14832 = vst [vmem:[#allocation38_spill] sm:$0xff] %v12041_v3  ;;  %v14666_v7 = vunpack.i.h.bf16 %v12041_v3  ;;  %v14667_v0 = vunpack.i.l.bf16 %v12041_v3  ;;  %9717 = vmatprep.subr.msk.bf16.mxu0 %vm11587_vm1, %v9715_v42  ;;  %2178 = vxpose.xlu0.b32.cont [8/16] (narrow) %v14833_v33, 32  ;;  %v12081_v16 = vpop.permute.xlu1 %10656  ;;  %v14842_v33 = vunpack.i.h.bf16 %v11869_v62  ;;  %v966_v3 = vld [vmem:[%s11300_s24 + $0x60] sm:$0xff] }
 0x350   : > { %9720 = vmatpush3.bf16.xpose.msk.msra.mxu0 %vm11587_vm1, %v9715_v42  ;;  %14838 = vst [vmem:[#allocation42_spill] sm:$0xff] %v12081_v16  ;;  %v14660_v13 = vunpack.i.h.bf16 %v12081_v16 }
 0x351   : > { %v9721_v37 = vpack.c.bf16 %v14666_v7, %v14667_v0  ;;  %1499 = vxpose.xlu1.b32.cont [11/16] (narrow) %v11733_v49, 32  ;;  %v9727_v49 = vpack.c.bf16 %v14662_v9, %v14665_v22 }
 0x352   : > { %v12058_v30 = vpop.permute.xlu0 %1686 }
 0x353   : > { %14835 = vst [vmem:[#allocation40_spill] sm:$0xff] %v12058_v30  ;;  %2179 = vxpose.xlu0.b32.cont [9/16] (narrow) %v10623_v52, 32  ;;  %8419 = vmatprep.mubr.msk.f32.mxu0 %vm1050_vm15, %v12058_v30  ;;  %v14837_v52 = vunpack.i.h.bf16 %v11888_v29  ;;  %v14661_v29 = vunpack.i.l.bf16 %v12081_v16  ;;  %v12233_v30 = vld [vmem:[%s11300_s24 + $0xc0] sm:$0xff] }
 0x354   : > { %9723 = vmatprep.subr.msk.bf16.mxu0 %vm11587_vm1, %v9721_v37  ;;  %8420 = vmatmul.mubr.msk.f32.gmra.mrb[28].mxu0 %vm1050_vm15, %v12034_v6 }
 0x355   : > { %1500 = vxpose.xlu1.b32.cont [12/16] (narrow) %v11737_v51, 32 }
 0x356   : > { %v12071_v28 = vpop.permute.xlu0 %1690  ;;  %v12116_v59 = vpop.permute.xlu1 %10666 }
 0x357   : > { %14836 = vst [vmem:[#allocation41_spill] sm:$0xff] %v12071_v28  ;;  %2180 = vxpose.xlu0.b32.cont [10/16] (narrow) %v14837_v52, 32  ;;  %8422 = vmatprep.mubr.msk.f32.mxu0 %vm1050_vm15, %v12071_v28  ;;  %14845 = vst [vmem:[#allocation46_spill] sm:$0xff] %v12116_v59 }
 0x358   : > { %9726 = vmatpush3.bf16.xpose.msk.msra.mxu0 %vm11587_vm1, %v9721_v37 }
 0x359   : > { %1501 = vxpose.xlu1.b32.cont [13/16] (narrow) %v11759_v11, 32  ;;  %9729 = vmatprep.subr.msk.bf16.mxu0 %vm11587_vm1, %v9727_v49  ;;  %v9733_v11 = vpack.c.bf16 %v14660_v13, %v14661_v29 }
 0x35a   : > { %v12088_v51 = vpop.permute.xlu0 %1692 }
 0x35b   : > { %14839 = vst [vmem:[#allocation43_spill] sm:$0xff] %v12088_v51  ;;  %2181 = vxpose.xlu0.b32.cont [11/16] (narrow) %v14840_v50, 32  ;;  %8423 = vmatmul.mubr.msk.f32.gmra.mrb[30].mxu0 %vm1050_vm15, %v12088_v51  ;;  %v14844_v50 = vunpack.i.l.bf16 %v11939_v25  ;;  %v14853_v51 = vmov 0  }
 0x35c   : > { %v417_v28 = vsel %vm416_vm3, 64, %v14853_v51 }
 0x35d   : > { %1502 = vxpose.xlu1.b32.cont [14/16] (narrow) %v11763_v5, 32 }
 0x35e   : > { %v12097_v42 = vpop.permute.xlu0 %10661 }
 0x35f   : > { %14841 = vst [vmem:[#allocation44_spill] sm:$0xff] %v12097_v42  ;;  %2182 = vxpose.xlu0.b32.cont [12/16] (narrow) %v14842_v33, 32  ;;  %v14658_v5 = vunpack.i.h.bf16 %v12097_v42  ;;  %v14659_v52 = vunpack.i.l.bf16 %v12097_v42  ;;  %v14664_v33 = vunpack.i.l.bf16 %v12116_v59 }
 0x360   : > { %9732 = vmatpush3.bf16.xpose.msk.msra.mxu0 %vm11587_vm1, %v9727_v49  ;;  %v14847_v49 = vunpack.i.h.bf16 %v11939_v25 }
 0x361   : > { %1503 = vxpose.xlu1.b32.cont [15/16] (narrow) %v11773_v46, 32  ;;  %9735 = vmatprep.subr.msk.bf16.mxu0 %vm11587_vm1, %v9733_v11  ;;  %v9739_v46 = vpack.c.bf16 %v14658_v5, %v14659_v52  ;;  %v14849_v5 = vunpack.i.l.bf16 %v11959_v21  ;;  %v14850_v52 = vunpack.i.h.bf16 %v11959_v21 }
 0x362   : > { %v12110_v37 = vpop.permute.xlu0 %10671 }
 0x363   : > { %14843 = vst [vmem:[#allocation45_spill] sm:$0xff] %v12110_v37  ;;  %2183 = vxpose.xlu0.b32.cont [13/16] (narrow) %v14844_v50, 32  ;;  %v12135_v50 = vpop.permute.xlu1 %10676  ;;  %v14677_v9 = vunpack.i.h.bf16 %v12110_v37 }
 0x364   : > { %14848 = vst [vmem:[#allocation48_spill] sm:$0xff] %v12135_v50 }
 0x365   : > { %1504 = vxpose.xlu1.b32.end [16/16] (narrow) %v11777_v58, 32  ;;  %v14663_v58 = vunpack.i.h.bf16 %v12116_v59 }
 0x366   : > { %v12119_v62 = vpop.permute.xlu0 %2358 }
 0x367   : > { %14846 = vst [vmem:[#allocation47_spill] sm:$0xff] %v12119_v62  ;;  %2184 = vxpose.xlu0.b32.cont [14/16] (narrow) %v14847_v49, 32  ;;  %8559 = vmatprep.mubr.msk.f32.mxu0 %vm1050_vm15, %v12119_v62  ;;  %v12153_v29 = vpop.permute.xlu1 %2360 }
 0x368   : > { %9738 = vmatpush3.bf16.xpose.msk.msra.mxu0 %vm11587_vm1, %v9733_v11  ;;  %v9745_v11 = vpack.c.bf16 %v14663_v58, %v14664_v33  ;;  %14851 = vst [vmem:[#allocation49_spill] sm:$0xff] %v12153_v29  ;;  %v14678_v58 = vunpack.i.l.bf16 %v12110_v37  ;;  %v958_v37 = vld [vmem:[%s11300_s24 + $0x20] sm:$0xff] }
 0x369   : > { %9741 = vmatprep.subr.msk.bf16.mxu0 %vm11587_vm1, %v9739_v46 }
 0x36a   : > { %v9751_v0 = vpack.c.bf16 %v14677_v9, %v14678_v58  ;;  %v14691_v9 = vunpack.i.h.bf16 %v12135_v50  ;;  %v14692_v58 = vunpack.i.l.bf16 %v12135_v50  ;;  %v12216_v50 = vld [vmem:[%s11300_s24 + $0x80] sm:$0xff] }
 0x36b   : > { %2185 = vxpose.xlu0.b32.cont [15/16] (narrow) %v14849_v5, 32 }
 0x36c   : > { %v12139_v25 = vpop.f32.mrb[16].mxu0 }
 0x36d   : > { %v12141_v49 = vpop.f32.mrb[17].mxu0 }
 0x36f   : > { %2186 = vxpose.xlu0.b32.end [16/16] (narrow) %v14850_v52, 32  ;;  %v14852_v52 = vmov 0.0   ;;  %v1267_v22 = vpop.permute.xlu1 %1266 }
 0x370   : > { %v12149_v13 = vpop.f32.mrb[18].mxu0  ;;  %9744 = vmatpush3.bf16.xpose.msk.msra.mxu0 %vm11587_vm1, %v9739_v46  ;;  %v12166_v33 = vsel %vm450_vm2, 1.0, %v14852_v52  ;;  %v12171_v46 = vsel %vm416_vm3, 1.0, %v14852_v52 }
 0x371   : > { %v12155_v5 = vpop.f32.mrb[19].mxu0  ;;  %9747 = vmatprep.subr.msk.bf16.mxu0 %vm11587_vm1, %v9745_v11  ;;  %v1269_v48 = vmul.f32 %v12171_v46, %v1267_v22  ;;  %v1019_v16 = vmul.f32 %v12166_v33, %v958_v37  ;;  %v1023_v6 = vmul.f32 %v12166_v33, %v12219_v55  ;;  %v1027_v26 = vmul.f32 %v12171_v46, %v958_v37 }
 0x372   : > { %v1029_v57 = vmul.f32 %v12171_v46, %v966_v3 }
 0x373   : > { %v12257_v41 = vpop.permute.xlu1 %2362 }
 0x374   : > { %v12163_v21 = vpop.f32.mrb[20].mxu0  ;;  %14854 = vst [vmem:[#allocation50_spill] sm:$0xff] %v12257_v41 }
 0x375   : > { %v12173_v7 = vpop.f32.mrb[21].mxu0 }
 0x377   : > { %v1262_v14 = vpop.permute.xlu0 %1261  ;;  %v12290_v37 = vpop.permute.xlu1 %2366 }
 0x378   : > { %v1264_v36 = vmul.f32 %v12166_v33, %v1262_v14  ;;  %v12181_v4 = vpop.f32.mrb[22].mxu0  ;;  %9750 = vmatpush3.bf16.xpose.msk.msra.mxu0 %vm11587_vm1, %v9745_v11  ;;  %v954_v14 = vld [vmem:[%s11300_s24] sm:$0xff] }
 0x379   : > { %v12185_v35 = vpop.f32.mrb[23].mxu0  ;;  %9753 = vmatprep.subr.msk.bf16.mxu0 %vm11587_vm1, %v9751_v0  ;;  %v1018_v11 = vmul.f32 %v12166_v33, %v954_v14  ;;  %v1026_v44 = vmul.f32 %v12171_v46, %v954_v14 }
 0x37a   : > { %v1270_v62 = vadd.f32 %v1269_v48, %v1264_v36  ;;  %v9757_v36 = vpack.c.bf16 %v14691_v9, %v14692_v58  ;;  %v1021_v9 = vmul.f32 %v12166_v33, %v966_v3 }
 0x37b   : > { %v12191_v22 = vpop.permute.xlu0 %2364 }
 0x37c   : > { %v1275_v59 = vmul.f32 0.0, %v1270_v62  ;;  %v1020_v62 = vmul.f32 %v12166_v33, %v962_v63 }
 0x37e   : > { %v9523_v42 = vpack.c.bf16 %v1275_v59, %v1275_v59  ;;  %v12209_v59 = vpack.c.bf16 %v1019_v16, %v1018_v11  ;;  %v12226_v16 = vpack.c.bf16 %v1021_v9, %v1020_v62  ;;  %v1022_v11 = vmul.f32 %v12166_v33, %v12216_v50 }
 0x37f   : > { %v12201_v48 = vpop.permute.xlu0 %2368  ;;  %v12245_v9 = vsub.s32 %v11320_v2, %v417_v28  ;;  %v1025_v62 = vmul.f32 %v12166_v33, %v12236_v60 }
 0x380   : > { %9524 = vmatprep.subr.bf16.mxu1 %v9523_v42  ;;  %9756 = vmatpush3.bf16.xpose.msk.msra.mxu0 %vm11587_vm1, %v9751_v0  ;;  %v14702_v0 = vmov 6   ;;  %v12255_v51 = vpack.c.bf16 %v1023_v6, %v1022_v11 }
 0x381   : > { %9526 = vmatpush3.bf16.msra.mxu1 %v9523_v42  ;;  %9759 = vmatprep.subr.msk.bf16.mxu0 %vm11587_vm1, %v9757_v36  ;;  %vm419_vm4 = vcmp.le.s32.totalorder %v12245_v9, %v11318_v1  ;;  %vm420_vm5 = vcmp.le.s32.totalorder %v12245_v9, %v11346_v17  ;;  %vm421_vm6 = vcmp.le.s32.totalorder %v12245_v9, %v11349_v18 }
 0x382   : > { %9528 = vmatprep.subr.bf16.mxu1 %v9523_v42  ;;  %v12280_v1 = vsel %vm419_vm4, 1.0, %v14852_v52  ;;  %v12376_v17 = vsel %vm420_vm5, 1.0, %v14852_v52  ;;  %vm422_vm7 = vcmp.le.s32.totalorder %v12245_v9, %v11354_v19  ;;  %vm423_vm8 = vcmp.le.s32.totalorder %v12245_v9, %v11359_v20 }
 0x383   : > { %v12213_v58 = vpop.permute.xlu0 %2372  ;;  %10731 = vset.pattern.permute.xlu1 %v14702_v0  ;;  %14855 = vst [vmem:[#allocation51_spill] sm:$0xff] %v12280_v1  ;;  %14856 = vst [vmem:[#allocation52_spill] sm:$0xff] %v12376_v17  ;;  %v1229_v19 = vmul.f32 %v12139_v25, %v12376_v17  ;;  %vm424_vm9 = vcmp.le.s32.totalorder %v12245_v9, %v11370_v23  ;;  %v12404_v20 = vsel %vm423_vm8, 1.0, %v14852_v52  ;;  %v960_v25 = vld [vmem:[%s11300_s24 + $0x30] sm:$0xff] }
 0x384   : > { %14859 = vst [vmem:[#allocation55_spill] sm:$0xff] %v12404_v20  ;;  %vm425_vm10 = vcmp.le.s32.totalorder %v12245_v9, %v11375_v24  ;;  %v12420_v24 = vsel %vm424_vm9, 1.0, %v14852_v52  ;;  %vm426_vm12 = vcmp.le.s32.totalorder %v12245_v9, %v11390_v27 }
 0x385   : > { %9530 = vmatpush3.bf16.msra.mxu1 %v9523_v42  ;;  %v1024_v42 = vmul.f32 %v12166_v33, %v12233_v30  ;;  %14860 = vst [vmem:[#allocation56_spill] sm:$0xff] %v12420_v24  ;;  %v1233_v27 = vmul.f32 %v12163_v21, %v12420_v24  ;;  %v12443_v9 = vsel %vm426_vm12, 1.0, %v14852_v52  ;;  %v972_v21 = vld [vmem:[%s11300_s24 + $0x90] sm:$0xff] }
 0x386   : > { %9532 = vmatprep.subr.bf16.mxu1 %v12209_v59  ;;  %14862 = vst [vmem:[#allocation58_spill] sm:$0xff] %v12443_v9 }
 0x387   : > { %v12238_v0 = vpop.permute.xlu0 %1931  ;;  %v12268_v28 = vpack.c.bf16 %v1025_v62, %v1024_v42 }
 0x388   : > { %8288 = vmatmul.mubr.msk.f32.vlgmr.msra.gmra.mrb[8].mxu1 %vm1050_vm15, %v11712_v40  ;;  %9762 = vmatpush3.bf16.xpose.msk.msra.mxu0 %vm11587_vm1, %v9757_v36 }
 0x389   : > { %8290 = vmatprep.mubr.msk.f32.mxu1 %vm1050_vm15, %v11724_v45  ;;  %9534 = vmatpush3.bf16.msra.mxu1 %v12209_v59 }
 0x38a   : > { %9536 = vmatprep.subr.bf16.mxu1 %v12226_v16 }
 0x38b   : > { %v10686_v36 = vpop.permute.xlu0 %10685 }
 0x38c   : > { %v12259_v2 = vunpack.i.l.bf16 %v10686_v36  ;;  %8291 = vmatmul.mubr.msk.f32.gmra.mrb[10].mxu1 %vm1050_vm15, %v11741_v15 }
 0x38d   : > { %8293 = vmatprep.mubr.msk.f32.mxu1 %vm1050_vm15, %v11793_v54  ;;  %9538 = vmatpush3.bf16.msra.mxu1 %v12226_v16 }
 0x38e   : > { %9540 = vmatprep.subr.bf16.mxu1 %v12255_v51  ;;  %v3019_v6 = vmul.f32 %v12259_v2, %v11559_v10  ;;  %v3020_v11 = vmul.f32 %v12259_v2, %v11553_v38  ;;  %v3023_v62 = vmul.f32 %v12259_v2, %v11622_v61  ;;  %v3024_v14 = vmul.f32 %v12259_v2, %v11616_v56 }
 0x38f   : > { %8560 = vmatmul.mubr.msk.f32.vlgmr.msra.gmra.mrb[32].mxu0 %vm1050_vm15, %v12153_v29  ;;  %v1028_v29 = vmul.f32 %v12171_v46, %v962_v63  ;;  %v12309_v63 = vunpack.i.h.bf16 %v10686_v36  ;;  %v3026_v3 = vmul.f32 %v12259_v2, %v11647_v32 }
 0x390   : > { %8294 = vmatmul.mubr.msk.f32.gmra.mrb[12].mxu1 %vm1050_vm15, %v11751_v39  ;;  %8562 = vmatprep.mubr.msk.f32.mxu0 %vm1050_vm15, %v12257_v41  ;;  %v10691_v42 = vpack.i.bf16 %v3020_v11, %v3019_v6  ;;  %v12299_v6 = vpack.c.bf16 %v1027_v26, %v1026_v44  ;;  %v3021_v11 = vmul.f32 %v12259_v2, %v11591_v43 }
 0x391   : > { %8296 = vmatprep.mubr.msk.f32.mxu1 %vm1050_vm15, %v11802_v34  ;;  %9542 = vmatpush3.bf16.msra.mxu1 %v12255_v51  ;;  %v3022_v41 = vmul.f32 %v12259_v2, %v11583_v31  ;;  %v1228_v34 = vmul.f32 %v12280_v1, %v12141_v49  ;;  %v10701_v44 = vpack.i.bf16 %v3024_v14, %v3023_v62  ;;  %v12328_v14 = vpop.permute.xlu1 %2370 }
 0x392   : > { %10692 = vrot.lane.b32.xlu1 %v10691_v42, %s11100_s9  ;;  %9544 = vmatprep.subr.bf16.mxu1 %v12268_v28  ;;  %v3025_v26 = vmul.f32 %v12259_v2, %v11653_v47  ;;  %v12320_v49 = vpack.c.bf16 %v1029_v57, %v1028_v29  ;;  %v1030_v42 = vmul.f32 %v12171_v46, %v12216_v50 }
 0x393   : > { %8563 = vmatmul.mubr.msk.f32.gmra.mrb[34].mxu0 %vm1050_vm15, %v12191_v22  ;;  %v10696_v36 = vpack.i.bf16 %v3022_v41, %v3021_v11  ;;  %v1031_v62 = vmul.f32 %v12171_v46, %v12219_v55  ;;  %v3030_v41 = vmul.f32 %v12309_v63, %v11559_v10  ;;  %v3031_v57 = vmul.f32 %v12309_v63, %v11553_v38 }
 0x394   : > { %8297 = vmatmul.mubr.msk.f32.gmra.mrb[14].mxu1 %vm1050_vm15, %v11809_v53  ;;  %8565 = vmatprep.mubr.msk.f32.mxu0 %vm1050_vm15, %v12290_v37  ;;  %v14713_v55 = vmov 7   ;;  %v1032_v50 = vmul.f32 %v12171_v46, %v12233_v30  ;;  %v1033_v10 = vmul.f32 %v12171_v46, %v12236_v60  ;;  %v3032_v11 = vmul.f32 %v12309_v63, %v11591_v43  ;;  %v956_v30 = vld [vmem:[%s11300_s24 + $0x10] sm:$0xff] }
 0x395   : > { %9546 = vmatpush3.bf16.msra.mxu1 %v12268_v28  ;;  %8331 = vmatprep.mubr.f32.mxu1 %v1228_v34  ;;  %v10706_v34 = vpack.i.bf16 %v3026_v3, %v3025_v26  ;;  %v12343_v29 = vpack.c.bf16 %v1031_v62, %v1030_v42  ;;  %v10711_v38 = vpack.i.bf16 %v3031_v57, %v3030_v41  ;;  %v12427_v26 = vsel %vm425_vm10, 1.0, %v14852_v52  ;;  %v964_v3 = vld [vmem:[%s11300_s24 + $0x50] sm:$0xff] }
 0x396   : > { %10702 = vrot.lane.b32.xlu1 %v10701_v44, %s11100_s9  ;;  %9548 = vmatprep.subr.bf16.mxu1 %v12299_v6  ;;  %v3033_v44 = vmul.f32 %v12309_v63, %v11583_v31  ;;  %v12360_v60 = vpack.c.bf16 %v1033_v10, %v1032_v50  ;;  %v3034_v43 = vmul.f32 %v12309_v63, %v11622_v61  ;;  %v12381_v61 = vsel %vm421_vm6, 1.0, %v14852_v52  ;;  %v984_v10 = vld [vmem:[%s11300_s24 + $0xf0] sm:$0xff] }
 0x397   : > { %8566 = vmatmul.mubr.msk.f32.gmra.mrb[36].mxu0 %vm1050_vm15, %v12201_v48  ;;  %v3035_v31 = vmul.f32 %v12309_v63, %v11616_v56  ;;  %14857 = vst [vmem:[#allocation53_spill] sm:$0xff] %v12381_v61  ;;  %v3036_v18 = vmul.f32 %v12309_v63, %v11653_v47  ;;  %14861 = vst [vmem:[#allocation57_spill] sm:$0xff] %v12427_v26  ;;  %v1234_v62 = vmul.f32 %v12427_v26, %v12185_v35 }
 0x398   : > { %10697 = vrot.lane.b32.xlu0 %v10696_v36, %s11100_s9  ;;  %8568 = vmatprep.mubr.msk.f32.mxu0 %vm1050_vm15, %v12328_v14  ;;  %v968_v36 = vld [vmem:[%s11300_s24 + $0x70] sm:$0xff]  ;;  %v1235_v35 = vmul.f32 %v12181_v4, %v12443_v9 }
 0x399   : > { %9550 = vmatpush3.bf16.msra.mxu1 %v12299_v6  ;;  %10732 = vset.pattern.permute.xlu0 %v14713_v55  ;;  %v10721_v56 = vpack.i.bf16 %v3035_v31, %v3034_v43  ;;  %v2323_v42 = vmul.f32 %v12166_v33, %v968_v36  ;;  %v2330_v31 = vmul.f32 %v12171_v46, %v964_v3 }
 0x39a   : > { %10707 = vrot.lane.b32.xlu1 %v10706_v34, %s11100_s9  ;;  %9552 = vmatprep.subr.bf16.mxu1 %v12320_v49  ;;  %v1927_v34 = vpop.permute.xlu1 %1926 }
 0x39b   : > { %8569 = vmatmul.mubr.msk.f32.gmra.mrb[38].mxu0 %vm1050_vm15, %v12213_v58 }
 0x39c   : > { %3040 = vrot.lane.b32.xlu0 %v11712_v40, %s11100_s9  ;;  %v10716_v40 = vpack.i.bf16 %v3033_v44, %v3032_v11  ;;  %v2328_v44 = vmul.f32 %v12171_v46, %v956_v30 }
 0x39d   : > { %9554 = vmatpush3.bf16.msra.mxu1 %v12320_v49 }
 0x39e   : > { %10712 = vrot.lane.b32.xlu1 %v10711_v38, %s11100_s9  ;;  %9556 = vmatprep.subr.bf16.mxu1 %v12343_v29  ;;  %v2327_v38 = vmul.f32 %v12166_v33, %v984_v10 }
 0x3a0   : > { %3044 = vrot.lane.b32.xlu0 %v11741_v15, %s11100_s9  ;;  %v3037_v15 = vmul.f32 %v12309_v63, %v11647_v32  ;;  %v1230_v32 = vmul.f32 %v12381_v61, %v12155_v5  ;;  %v2321_v5 = vmul.f32 %v12166_v33, %v960_v25 }
 0x3a1   : > { %9558 = vmatpush3.bf16.msra.mxu1 %v12343_v29 }
 0x3a2   : > { %10717 = vrot.lane.b32.xlu1 %v10716_v40, %s11100_s9  ;;  %9560 = vmatprep.subr.bf16.mxu1 %v12360_v60  ;;  %v10726_v47 = vpack.i.bf16 %v3037_v15, %v3036_v18  ;;  %v14863_v40 = vld [vmem:[#allocation29_spill] sm:$0xff] }
 0x3a4   : > { %3048 = vrot.lane.b32.xlu0 %v11751_v39, %s11100_s9  ;;  %v12397_v39 = vsel %vm422_vm7, 1.0, %v14852_v52  ;;  %v2324_v52 = vmul.f32 %v12166_v33, %v972_v21 }
 0x3a5   : > { %9562 = vmatpush3.bf16.msra.mxu1 %v12360_v60  ;;  %14858 = vst [vmem:[#allocation54_spill] sm:$0xff] %v12397_v39  ;;  %v1231_v23 = vmul.f32 %v12149_v13, %v12397_v39 }
 0x3a6   : > { %10722 = vrot.lane.b32.xlu1 %v10721_v56, %s11100_s9  ;;  %9564 = vmatprep.subr.bf16.mxu1 %v12209_v59 }
 0x3a8   : > { %8332 = vmatmul.mubr.f32.vlgmr.msra.gmra.mrb[8].mxu1 %v1229_v19  ;;  %3052 = vrot.lane.b32.xlu0 %v11809_v53, %s11100_s9  ;;  %v2320_v53 = vmul.f32 %v12166_v33, %v956_v30 }
 0x3a9   : > { %8334 = vmatprep.mubr.f32.mxu1 %v1230_v32  ;;  %9566 = vmatpush3.bf16.msra.mxu1 %v12209_v59  ;;  %v1232_v59 = vmul.f32 %v12404_v20, %v12173_v7  ;;  %v2322_v7 = vmul.f32 %v12166_v33, %v964_v3  ;;  %v1505_v50 = vpop.trf.xlu1  ;;  %v955_v32 = vld [vmem:[%s11300_s24 + $0x8] sm:$0xff] }
 0x3aa   : > { %10727 = vrot.lane.b32.xlu1 %v10726_v47, %s11100_s9  ;;  %9568 = vmatprep.subr.bf16.mxu1 %v12226_v16  ;;  %v12430_v13 = vpack.c.bf16 %v2321_v5, %v2320_v53  ;;  %v959_v47 = vld [vmem:[%s11300_s24 + $0x28] sm:$0xff] }
 0x3ab   : > { %v1639_v53 = vmul.f32 %v12166_v33, %v959_v47  ;;  %v967_v3 = vld [vmem:[%s11300_s24 + $0x68] sm:$0xff] }
 0x3ac   : > { %8335 = vmatmul.mubr.f32.gmra.mrb[10].mxu1 %v1231_v23  ;;  %3291 = vperm.xlu0 %10732, %v11931_v12   ;;  %v1638_v23 = vmul.f32 %v12166_v33, %v955_v32 }
 0x3ad   : > { %8337 = vmatprep.mubr.f32.mxu1 %v1232_v59  ;;  %9570 = vmatpush3.bf16.msra.mxu1 %v12226_v16  ;;  %v12448_v16 = vpack.c.bf16 %v2323_v42, %v2322_v7  ;;  %v1506_v56 = vpop.trf.xlu1  ;;  %v963_v59 = vld [vmem:[%s11300_s24 + $0x48] sm:$0xff] }
 0x3ae   : > { %3038 = vrot.lane.b32.xlu1 %v11555_v8, %s11100_s9  ;;  %9572 = vmatprep.subr.bf16.mxu1 %v12255_v51  ;;  %v976_v8 = vld [vmem:[%s11300_s24 + $0xb0] sm:$0xff]  ;;  %v1640_v42 = vmul.f32 %v12166_v33, %v963_v59 }
 0x3af   : > { %9804 = vmatprep.subr.bf16.mxu0 %v12430_v13  ;;  %v2325_v41 = vmul.f32 %v12166_v33, %v976_v8  ;;  %v2333_v30 = vmul.f32 %v12171_v46, %v976_v8 }
 0x3b0   : > { %8338 = vmatmul.mubr.f32.gmra.mrb[12].mxu1 %v1233_v27  ;;  %9806 = vmatpush3.bf16.msra.mxu0 %v12430_v13  ;;  %v1641_v27 = vmul.f32 %v12166_v33, %v967_v3 }
 0x3b1   : > { %8340 = vmatprep.mubr.f32.mxu1 %v1234_v62  ;;  %9574 = vmatpush3.bf16.msra.mxu1 %v12255_v51  ;;  %v12462_v57 = vpack.c.bf16 %v2325_v41, %v2324_v52  ;;  %v980_v51 = vld [vmem:[%s11300_s24 + $0xd0] sm:$0xff]  ;;  %v1507_v19 = vpop.trf.xlu1  ;;  %v971_v62 = vld [vmem:[%s11300_s24 + $0x88] sm:$0xff] }
 0x3b2   : > { %3042 = vrot.lane.b32.xlu1 %v11724_v45, %s11100_s9  ;;  %9576 = vmatprep.subr.bf16.mxu1 %v12268_v28  ;;  %v2326_v4 = vmul.f32 %v12166_v33, %v980_v51  ;;  %v1934_v45 = vmul.f32 %v12171_v46, %v12238_v0  ;;  %v12530_v8 = vpack.c.bf16 %v1641_v27, %v1640_v42 }
 0x3b3   : > { %9808 = vmatprep.subr.bf16.mxu0 %v12448_v16  ;;  %v1642_v52 = vmul.f32 %v12166_v33, %v971_v62 }
 0x3b4   : > { %8341 = vmatmul.mubr.f32.gmra.mrb[14].mxu1 %v1235_v35  ;;  %9810 = vmatpush3.bf16.msra.mxu0 %v12448_v16  ;;  %v12476_v11 = vpack.c.bf16 %v2327_v38, %v2326_v4  ;;  %v979_v35 = vld [vmem:[%s11300_s24 + $0xc8] sm:$0xff] }
 0x3b5   : > { %9578 = vmatpush3.bf16.msra.mxu1 %v12268_v28  ;;  %8375 = vmatprep.mubr.f32.mxu1 %v1505_v50  ;;  %v1929_v28 = vmul.f32 %v12166_v33, %v1927_v34  ;;  %v1508_v7 = vpop.trf.xlu1  ;;  %v975_v34 = vld [vmem:[%s11300_s24 + $0xa8] sm:$0xff]  ;;  %v1644_v38 = vmul.f32 %v12166_v33, %v979_v35 }
 0x3b6   : > { %3046 = vrot.lane.b32.xlu1 %v11793_v54, %s11100_s9  ;;  %9580 = vmatprep.subr.bf16.mxu1 %v12299_v6  ;;  %v2329_v54 = vmul.f32 %v12171_v46, %v960_v25  ;;  %v2334_v25 = vmul.f32 %v12171_v46, %v980_v51  ;;  %v1643_v41 = vmul.f32 %v12166_v33, %v975_v34  ;;  %v983_v50 = vld [vmem:[%s11300_s24 + $0xe8] sm:$0xff] }
 0x3b7   : > { %9812 = vmatprep.subr.bf16.mxu0 %v12462_v57  ;;  %v1935_v0 = vadd.f32 %v1934_v45, %v1929_v28  ;;  %v14865_v51 = vld [vmem:[#allocation33_spill] sm:$0xff]  ;;  %v1645_v45 = vmul.f32 %v12166_v33, %v983_v50  ;;  %v14867_v28 = vld [vmem:[#allocation35_spill] sm:$0xff] }
 0x3b8   : > { %9814 = vmatpush3.bf16.msra.mxu0 %v12462_v57  ;;  %v12487_v43 = vpack.c.bf16 %v2329_v54, %v2328_v44  ;;  %v9659_v4 = vpack.c.bf16 %v1643_v41, %v1642_v52  ;;  %v14868_v44 = vld [vmem:[#allocation40_spill] sm:$0xff] }
 0x3b9   : > { %9582 = vmatpush3.bf16.msra.mxu1 %v12299_v6  ;;  %9816 = vmatprep.subr.bf16.mxu0 %v12476_v11  ;;  %v2331_v6 = vmul.f32 %v12171_v46, %v968_v36  ;;  %v1941_v15 = vmul.f32 0.0, %v1935_v0  ;;  %v9663_v54 = vpack.c.bf16 %v1645_v45, %v1644_v38  ;;  %v1647_v0 = vmul.f32 %v12171_v46, %v959_v47 }
 0x3ba   : > { %3050 = vrot.lane.b32.xlu1 %v14863_v40, %s11100_s9  ;;  %9584 = vmatprep.subr.bf16.mxu1 %v12320_v49  ;;  %v1646_v40 = vmul.f32 %v12171_v46, %v955_v32  ;;  %v1650_v47 = vmul.f32 %v12171_v46, %v971_v62  ;;  %v2607_v62 = vpop.permute.xlu0 %2606 }
 0x3bb   : > { %v12496_v18 = vpack.c.bf16 %v2331_v6, %v2330_v31  ;;  %v14869_v31 = vld [vmem:[#allocation37_spill] sm:$0xff] }
 0x3bc   : > { %9818 = vmatpush3.bf16.msra.mxu0 %v12476_v11  ;;  %v14870_v6 = vld [vmem:[#allocation41_spill] sm:$0xff] }
 0x3bd   : > { %9586 = vmatpush3.bf16.msra.mxu1 %v12320_v49  ;;  %9820 = vmatprep.subr.bf16.mxu0 %v12487_v43  ;;  %v9643_v49 = vpack.c.bf16 %v1941_v15, %v1941_v15  ;;  %v1648_v15 = vmul.f32 %v12171_v46, %v963_v59 }
 0x3be   : > { %3286 = vperm.xlu1 %10731, %v11931_v12   ;;  %9588 = vmatprep.subr.bf16.mxu1 %v12343_v29  ;;  %v2332_v12 = vmul.f32 %v12171_v46, %v972_v21  ;;  %v14864_v21 = vld [vmem:[#allocation32_spill] sm:$0xff]  ;;  %v2612_v52 = vpop.permute.xlu0 %2611 }
 0x3c0   : > { %9822 = vmatpush3.bf16.msra.mxu0 %v12487_v43  ;;  %v12512_v5 = vpack.c.bf16 %v2333_v30, %v2332_v12  ;;  %v1651_v12 = vmul.f32 %v12171_v46, %v975_v34 }
 0x3c1   : > { %9590 = vmatpush3.bf16.msra.mxu1 %v12343_v29  ;;  %9824 = vmatprep.subr.bf16.mxu0 %v12496_v18  ;;  %v2335_v29 = vmul.f32 %v12171_v46, %v984_v10  ;;  %v14866_v10 = vld [vmem:[#allocation34_spill] sm:$0xff] }
 0x3c2   : > { %9592 = vmatprep.subr.bf16.mxu1 %v12360_v60  ;;  %v9675_v30 = vpack.c.bf16 %v1651_v12, %v1650_v47  ;;  %v12581_v38 = vpop.trf.xlu0 }
 0x3c3   : > { %v12516_v36 = vpack.c.bf16 %v2335_v29, %v2334_v25  ;;  %v1652_v25 = vmul.f32 %v12171_v46, %v979_v35  ;;  %v1653_v29 = vmul.f32 %v12171_v46, %v983_v50  ;;  %v14875_v50 = vld [vmem:[#allocation38_spill] sm:$0xff] }
 0x3c4   : > { %9826 = vmatpush3.bf16.msra.mxu0 %v12496_v18  ;;  %v14877_v45 = vunpack.i.h.bf16 %v14875_v50 }
 0x3c5   : > { %9594 = vmatpush3.bf16.msra.mxu1 %v12360_v60  ;;  %9828 = vmatprep.subr.bf16.mxu0 %v12512_v5  ;;  %v12519_v60 = vpack.c.bf16 %v1639_v53, %v1638_v23 }
 0x3c6   : > { %9644 = vmatprep.subr.bf16.mxu1 %v9643_v49 }
 0x3c8   : > { %8376 = vmatmul.mubr.f32.vlgmr.msra.gmra.mrb[16].mxu1 %v1506_v56  ;;  %9830 = vmatpush3.bf16.msra.mxu0 %v12512_v5  ;;  %v9667_v56 = vpack.c.bf16 %v1647_v0, %v1646_v40  ;;  %v12588_v40 = vpop.trf.xlu0 }
 0x3c9   : > { %9646 = vmatpush3.bf16.msra.mxu1 %v9643_v49  ;;  %8378 = vmatprep.mubr.f32.mxu1 %v1507_v19  ;;  %v14871_v19 = vld [vmem:[#allocation43_spill] sm:$0xff] }
 0x3ca   : > { %9648 = vmatprep.subr.bf16.mxu1 %v9643_v49  ;;  %9832 = vmatprep.subr.bf16.mxu0 %v12516_v36 }
 0x3cc   : > { %8379 = vmatmul.mubr.f32.gmra.mrb[18].mxu1 %v1508_v7  ;;  %9834 = vmatpush3.bf16.msra.mxu0 %v12516_v36  ;;  %v14872_v7 = vld [vmem:[#allocation36_spill] sm:$0xff]  ;;  %v12592_v0 = vpop.trf.xlu0 }
 0x3cd   : > { %9650 = vmatpush3.bf16.msra.mxu1 %v9643_v49  ;;  %8433 = vmatprep.mubr.msk.f32.mxu1 %vm1050_vm15, %v14864_v21  ;;  %v1649_v49 = vmul.f32 %v12171_v46, %v967_v3  ;;  %v12565_v3 = vpack.c.bf16 %v1653_v29, %v1652_v25  ;;  %v14873_v42 = vunpack.i.l.bf16 %v14872_v7  ;;  %v14874_v21 = vunpack.i.h.bf16 %v14872_v7  ;;  %v14884_v29 = vld [vmem:[#allocation44_spill] sm:$0xff] }
 0x3ce   : > { %9652 = vmatprep.subr.bf16.mxu1 %v12519_v60 }
 0x3cf   : > { %v9671_v32 = vpack.c.bf16 %v1649_v49, %v1648_v15  ;;  %v2609_v15 = vmul.f32 %v12166_v33, %v2607_v62 }
 0x3d0   : > { %8434 = vmatmul.mubr.msk.f32.vlgmr.msra.gmra.mrb[20].mxu1 %vm1050_vm15, %v14865_v51  ;;  %v14876_v51 = vunpack.i.l.bf16 %v14875_v50  ;;  %v12600_v47 = vpop.trf.xlu0 }
 0x3d1   : > { %8436 = vmatprep.mubr.msk.f32.mxu1 %vm1050_vm15, %v14866_v10  ;;  %9654 = vmatpush3.bf16.msra.mxu1 %v12519_v60 }
 0x3d2   : > { %9656 = vmatprep.subr.bf16.mxu1 %v12530_v8 }
 0x3d4   : > { %8437 = vmatmul.mubr.msk.f32.gmra.mrb[22].mxu1 %vm1050_vm15, %v14867_v28  ;;  %v14878_v28 = vld [vmem:[#allocation39_spill] sm:$0xff] }
 0x3d5   : > { %8439 = vmatprep.mubr.msk.f32.mxu1 %vm1050_vm15, %v14868_v44  ;;  %9658 = vmatpush3.bf16.msra.mxu1 %v12530_v8  ;;  %v14879_v44 = vunpack.i.l.bf16 %v14878_v28 }
 0x3d6   : > { %9660 = vmatprep.subr.bf16.mxu1 %v9659_v4 }
 0x3d8   : > { %8440 = vmatmul.mubr.msk.f32.gmra.mrb[24].mxu1 %vm1050_vm15, %v14869_v31  ;;  %v14881_v31 = vld [vmem:[#allocation42_spill] sm:$0xff] }
 0x3d9   : > { %8442 = vmatprep.mubr.msk.f32.mxu1 %vm1050_vm15, %v14870_v6  ;;  %9662 = vmatpush3.bf16.msra.mxu1 %v9659_v4  ;;  %v14882_v6 = vunpack.i.l.bf16 %v14881_v31  ;;  %v14883_v49 = vunpack.i.h.bf16 %v14881_v31 }
 0x3da   : > { %9664 = vmatprep.subr.bf16.mxu1 %v9663_v54 }
 0x3dc   : > { %8443 = vmatmul.mubr.msk.f32.gmra.mrb[26].mxu1 %vm1050_vm15, %v14871_v19 }
 0x3dd   : > { %9666 = vmatpush3.bf16.msra.mxu1 %v9663_v54 }
 0x3de   : > { %9668 = vmatprep.subr.bf16.mxu1 %v9667_v56 }
 0x3e1   : > { %9670 = vmatpush3.bf16.msra.mxu1 %v9667_v56 }
 0x3e2   : > { %9672 = vmatprep.subr.bf16.mxu1 %v9671_v32 }
 0x3e3   : > { %v8415_v23 = vpop.f32.mrb[24].mxu0 }
 0x3e4   : > { %v1856_v53 = vpop.f32.mrb[25].mxu0  ;;  %v1896_v41 = vmul.f32 %v8415_v23, %v12376_v17  ;;  %v14885_v23 = vunpack.i.l.bf16 %v14884_v29 }
 0x3e5   : > { %v1895_v59 = vmul.f32 %v12280_v1, %v1856_v53  ;;  %9674 = vmatpush3.bf16.msra.mxu1 %v9671_v32 }
 0x3e6   : > { %9676 = vmatprep.subr.bf16.mxu1 %v9675_v30 }
 0x3e7   : > { %2851 = vxpose.xlu1.b32.start [1/16] (narrow) %v14873_v42, 32  ;;  %v8418_v27 = vpop.f32.mrb[26].mxu0  ;;  %8477 = vmatprep.mubr.f32.mxu1 %v1895_v59 }
 0x3e8   : > { %v1866_v34 = vpop.f32.mrb[27].mxu0  ;;  %v1898_v10 = vmul.f32 %v8418_v27, %v12397_v39 }
 0x3e9   : > { %9678 = vmatpush3.bf16.msra.mxu1 %v9675_v30  ;;  %v1897_v35 = vmul.f32 %v12381_v61, %v1866_v34 }
 0x3ea   : > { %9680 = vmatprep.subr.bf16.mxu1 %v12565_v3 }
 0x3eb   : > { %2852 = vxpose.xlu1.b32.cont [2/16] (narrow) %v14874_v21, 32 }
 0x3ed   : > { %9682 = vmatpush3.bf16.msra.mxu1 %v12565_v3 }
 0x3ee   : > { %9684 = vmatprep.subr.bf16.mxu1 %v12519_v60 }
 0x3ef   : > { %2853 = vxpose.xlu1.b32.cont [3/16] (narrow) %v14876_v51, 32  ;;  %v14887_v51 = vld [vmem:[#allocation46_spill] sm:$0xff] }
 0x3f0   : > { %8478 = vmatmul.mubr.f32.vlgmr.msra.gmra.mrb[20].mxu1 %v1896_v41  ;;  %v14889_v31 = vunpack.i.h.bf16 %v14887_v51 }
 0x3f1   : > { %8480 = vmatprep.mubr.f32.mxu1 %v1897_v35  ;;  %9686 = vmatpush3.bf16.msra.mxu1 %v12519_v60  ;;  %v14880_v60 = vunpack.i.h.bf16 %v14878_v28 }
 0x3f2   : > { %9688 = vmatprep.subr.bf16.mxu1 %v12530_v8 }
 0x3f3   : > { %2854 = vxpose.xlu1.b32.cont [4/16] (narrow) %v14877_v45, 32 }
 0x3f4   : > { %8481 = vmatmul.mubr.f32.gmra.mrb[22].mxu1 %v1898_v10  ;;  %v14888_v10 = vunpack.i.l.bf16 %v14887_v51 }
 0x3f5   : > { %9690 = vmatpush3.bf16.msra.mxu1 %v12530_v8  ;;  %v2614_v8 = vmul.f32 %v12171_v46, %v2612_v52 }
 0x3f6   : > { %9692 = vmatprep.subr.bf16.mxu1 %v9659_v4 }
 0x3f7   : > { %2855 = vxpose.xlu1.b32.cont [5/16] (narrow) %v14879_v44, 32 }
 0x3f9   : > { %9694 = vmatpush3.bf16.msra.mxu1 %v9659_v4  ;;  %v2615_v4 = vadd.f32 %v2614_v8, %v2609_v15 }
 0x3fa   : > { %9696 = vmatprep.subr.bf16.mxu1 %v9663_v54 }
 0x3fb   : > { %2856 = vxpose.xlu1.b32.cont [6/16] (narrow) %v14880_v60, 32 }
 0x3fd   : > { %9698 = vmatpush3.bf16.msra.mxu1 %v9663_v54 }
 0x3fe   : > { %9700 = vmatprep.subr.bf16.mxu1 %v9667_v56 }
 0x3ff   : > { %2857 = vxpose.xlu1.b32.cont [7/16] (narrow) %v14882_v6, 32 }
 0x401   : > { %9702 = vmatpush3.bf16.msra.mxu1 %v9667_v56  ;;  %v2621_v56 = vmul.f32 0.0, %v2615_v4 }
 0x402   : > { %9704 = vmatprep.subr.bf16.mxu1 %v9671_v32 }
 0x403   : > { %2858 = vxpose.xlu1.b32.cont [8/16] (narrow) %v14883_v49, 32  ;;  %v12611_v21 = vpack.c.bf16 %v2621_v56, %v2621_v56  ;;  %v14890_v49 = vld [vmem:[#allocation45_spill] sm:$0xff] }
 0x404   : > { %v10693_v19 = vpop.permute.xlu1 %10692  ;;  %v14891_v4 = vunpack.i.l.bf16 %v14890_v49 }
 0x405   : > { %v10695_v54 = vunpack.i.h.bf16 %v10693_v19  ;;  %v10694_v12 = vunpack.i.l.bf16 %v10693_v19  ;;  %9706 = vmatpush3.bf16.msra.mxu1 %v9671_v32  ;;  %v14886_v32 = vunpack.i.h.bf16 %v14884_v29 }
 0x406   : > { %9708 = vmatprep.subr.bf16.mxu1 %v9675_v30 }
 0x407   : > { %v12602_v25 = vpack.c.bf16 %v10695_v54, %v10694_v12  ;;  %3531 = vxpose.xlu0.b32.start [1/16] (narrow) %v10694_v12, 32  ;;  %2859 = vxpose.xlu1.b32.cont [9/16] (narrow) %v14885_v23, 32  ;;  %v14892_v23 = vunpack.i.h.bf16 %v14890_v49 }
 0x408   : > { %v10703_v53 = vpop.permute.xlu1 %10702 }
 0x409   : > { %v10705_v59 = vunpack.i.h.bf16 %v10703_v53  ;;  %v10704_v7 = vunpack.i.l.bf16 %v10703_v53  ;;  %9710 = vmatpush3.bf16.msra.mxu1 %v9675_v30 }
 0x40a   : > { %v10698_v42 = vpop.permute.xlu0 %10697  ;;  %9712 = vmatprep.subr.bf16.mxu1 %v12565_v3 }
 0x40b   : > { %v12607_v27 = vpack.c.bf16 %v10705_v59, %v10704_v7  ;;  %v10700_v62 = vunpack.i.h.bf16 %v10698_v42  ;;  %v10699_v34 = vunpack.i.l.bf16 %v10698_v42  ;;  %3532 = vxpose.xlu0.b32.cont [2/16] (narrow) %v10695_v54, 32  ;;  %2860 = vxpose.xlu1.b32.cont [10/16] (narrow) %v14886_v32, 32 }
 0x40c   : > { %v10708_v52 = vpop.permute.xlu1 %10707 }
 0x40d   : > { %v12613_v41 = vpack.c.bf16 %v10700_v62, %v10699_v34  ;;  %v10710_v35 = vunpack.i.h.bf16 %v10708_v52  ;;  %v10709_v50 = vunpack.i.l.bf16 %v10708_v52  ;;  %9714 = vmatpush3.bf16.msra.mxu1 %v12565_v3 }
 0x40e   : > { %9764 = vmatprep.subr.bf16.mxu1 %v12611_v21  ;;  %v12639_v52 = vpop.permute.xlu0 %3040 }
 0x40f   : > { %v12617_v30 = vpack.c.bf16 %v10710_v35, %v10709_v50  ;;  %3533 = vxpose.xlu0.b32.cont [3/16] (narrow) %v10699_v34, 32  ;;  %2861 = vxpose.xlu1.b32.cont [11/16] (narrow) %v14888_v10, 32  ;;  %v14893_v34 = vld [vmem:[#allocation48_spill] sm:$0xff] }
 0x410   : > { %v10713_v45 = vpop.permute.xlu1 %10712  ;;  %v14895_v32 = vunpack.i.h.bf16 %v14893_v34 }
 0x411   : > { %v10715_v28 = vunpack.i.h.bf16 %v10713_v45  ;;  %v10714_v44 = vunpack.i.l.bf16 %v10713_v45 }
 0x413   : > { %v12621_v60 = vpack.c.bf16 %v10715_v28, %v10714_v44  ;;  %3534 = vxpose.xlu0.b32.cont [4/16] (narrow) %v10700_v62, 32  ;;  %2862 = vxpose.xlu1.b32.cont [12/16] (narrow) %v14889_v31, 32 }
 0x414   : > { %v10718_v6 = vpop.permute.xlu1 %10717 }
 0x415   : > { %v10720_v8 = vunpack.i.h.bf16 %v10718_v6  ;;  %v10719_v3 = vunpack.i.l.bf16 %v10718_v6  ;;  %v12645_v6 = vpop.permute.xlu0 %3044 }
 0x417   : > { %v12625_v15 = vpack.c.bf16 %v10720_v8, %v10719_v3  ;;  %3535 = vxpose.xlu0.b32.cont [5/16] (narrow) %v10704_v7, 32  ;;  %2863 = vxpose.xlu1.b32.cont [13/16] (narrow) %v14891_v4, 32  ;;  %v14894_v7 = vunpack.i.l.bf16 %v14893_v34 }
 0x418   : > { %v10723_v19 = vpop.permute.xlu1 %10722 }
 0x419   : > { %v10725_v54 = vunpack.i.h.bf16 %v10723_v19  ;;  %v10724_v12 = vunpack.i.l.bf16 %v10723_v19  ;;  %v12650_v19 = vpop.permute.xlu0 %3048 }
 0x41b   : > { %v12629_v29 = vpack.c.bf16 %v10725_v54, %v10724_v12  ;;  %3536 = vxpose.xlu0.b32.cont [6/16] (narrow) %v10705_v59, 32  ;;  %2864 = vxpose.xlu1.b32.cont [14/16] (narrow) %v14892_v23, 32 }
 0x41c   : > { %v10728_v56 = vpop.permute.xlu1 %10727 }
 0x41d   : > { %v10730_v53 = vunpack.i.h.bf16 %v10728_v56  ;;  %v10729_v42 = vunpack.i.l.bf16 %v10728_v56 }
 0x41f   : > { %v12633_v62 = vpack.c.bf16 %v10730_v53, %v10729_v42  ;;  %3537 = vxpose.xlu0.b32.cont [7/16] (narrow) %v10709_v50, 32  ;;  %2865 = vxpose.xlu1.b32.cont [15/16] (narrow) %v14894_v7, 32 }
 0x420   : > { %v12641_v51 = vpop.permute.xlu1 %3038 }
 0x423   : > { %3538 = vxpose.xlu0.b32.cont [8/16] (narrow) %v10710_v35, 32  ;;  %2866 = vxpose.xlu1.b32.end [16/16] (narrow) %v14895_v32, 32 }
 0x424   : > { %v12647_v35 = vpop.permute.xlu1 %3042 }
 0x427   : > { %3539 = vxpose.xlu0.b32.cont [9/16] (narrow) %v10714_v44, 32  ;;  %v8421_v59 = vpop.f32.mrb[28].mxu0 }
 0x428   : > { %v1876_v10 = vpop.f32.mrb[29].mxu0  ;;  %v1900_v31 = vmul.f32 %v8421_v59, %v12420_v24  ;;  %v12653_v23 = vpop.permute.xlu1 %3046 }
 0x429   : > { %v1899_v45 = vmul.f32 %v12404_v20, %v1876_v10 }
 0x42b   : > { %3540 = vxpose.xlu0.b32.cont [10/16] (narrow) %v10715_v28, 32  ;;  %8483 = vmatprep.mubr.f32.mxu1 %v1899_v45  ;;  %v12656_v28 = vpop.permute.xlu0 %3052 }
 0x42c   : > { %8484 = vmatmul.mubr.f32.gmra.mrb[24].mxu1 %v1900_v31 }
 0x42e   : > { %v8424_v50 = vpop.f32.mrb[30].mxu0 }
 0x42f   : > { %3541 = vxpose.xlu0.b32.cont [11/16] (narrow) %v10719_v3, 32  ;;  %v1886_v49 = vpop.f32.mrb[31].mxu0  ;;  %v1902_v44 = vmul.f32 %v8424_v50, %v12443_v9  ;;  %v12661_v3 = vpop.permute.xlu1 %3050 }
 0x430   : > { %v1901_v4 = vmul.f32 %v12427_v26, %v1886_v49  ;;  %v3292_v56 = vpop.permute.xlu0 %3291 }
 0x432   : > { %8486 = vmatprep.mubr.f32.mxu1 %v1901_v4 }
 0x433   : > { %3542 = vxpose.xlu0.b32.cont [12/16] (narrow) %v10720_v8, 32  ;;  %8487 = vmatmul.mubr.f32.gmra.mrb[26].mxu1 %v1902_v44 }
 0x434   : > { %8521 = vmatprep.mubr.f32.mxu1 %v12581_v38  ;;  %v14896_v38 = vld [vmem:[#allocation47_spill] sm:$0xff] }
 0x437   : > { %3543 = vxpose.xlu0.b32.cont [13/16] (narrow) %v10724_v12, 32  ;;  %8522 = vmatmul.mubr.f32.vlgmr.msra.gmra.mrb[28].mxu1 %v12588_v40  ;;  %v3294_v40 = vmul.f32 %v12171_v46, %v3292_v56  ;;  %v14897_v12 = vld [vmem:[#allocation49_spill] sm:$0xff] }
 0x438   : > { %9766 = vmatpush3.bf16.msra.mxu1 %v12611_v21  ;;  %8524 = vmatprep.mubr.f32.mxu1 %v12592_v0 }
 0x439   : > { %9768 = vmatprep.subr.bf16.mxu1 %v12611_v21 }
 0x43b   : > { %3544 = vxpose.xlu0.b32.cont [14/16] (narrow) %v10725_v54, 32  ;;  %8525 = vmatmul.mubr.f32.gmra.mrb[30].mxu1 %v12600_v47  ;;  %v14898_v47 = vld [vmem:[#allocation50_spill] sm:$0xff] }
 0x43c   : > { %9770 = vmatpush3.bf16.msra.mxu1 %v12611_v21  ;;  %8579 = vmatprep.mubr.msk.f32.mxu1 %vm1050_vm15, %v14896_v38  ;;  %v14899_v21 = vmov 1  }
 0x43d   : > { %v3287_v8 = vpop.permute.xlu1 %3286  ;;  %9772 = vmatprep.subr.bf16.mxu1 %v12430_v13 }
 0x43e   : > { %v3289_v0 = vmul.f32 %v12166_v33, %v3287_v8 }
 0x43f   : > { %3545 = vxpose.xlu0.b32.cont [15/16] (narrow) %v10729_v42, 32  ;;  %8580 = vmatmul.mubr.msk.f32.vlgmr.msra.gmra.mrb[32].mxu1 %vm1050_vm15, %v14897_v12  ;;  %v14901_v42 = vmov 0   ;;  %v973_v12 = vld [vmem:[%s11300_s24 + $0x98] sm:$0xff] }
 0x440   : > { %v3295_v34 = vadd.f32 %v3294_v40, %v3289_v0  ;;  %9774 = vmatpush3.bf16.msra.mxu1 %v12430_v13  ;;  %8582 = vmatprep.mubr.msk.f32.mxu1 %vm1050_vm15, %v14898_v47 }
 0x441   : > { %9776 = vmatprep.subr.bf16.mxu1 %v12448_v16  ;;  %10814 = vset.pattern.permute.xlu1 %v14899_v21 }
 0x442   : > { %v3301_v54 = vmul.f32 0.0, %v3295_v34  ;;  %v977_v34 = vld [vmem:[%s11300_s24 + $0xb8] sm:$0xff] }
 0x443   : > { %3546 = vxpose.xlu0.b32.end [16/16] (narrow) %v10730_v53, 32  ;;  %8583 = vmatmul.mubr.msk.f32.gmra.mrb[34].mxu1 %vm1050_vm15, %v12191_v22 }
 0x444   : > { %v9883_v7 = vpack.c.bf16 %v3301_v54, %v3301_v54  ;;  %9778 = vmatpush3.bf16.msra.mxu1 %v12448_v16  ;;  %8585 = vmatprep.mubr.msk.f32.mxu1 %vm1050_vm15, %v12290_v37 }
 0x445   : > { %9780 = vmatprep.subr.bf16.mxu1 %v12462_v57 }
 0x446   : > { %9884 = vmatprep.subr.bf16.mxu0 %v9883_v7 }
 0x447   : > { %8586 = vmatmul.mubr.msk.f32.gmra.mrb[36].mxu1 %vm1050_vm15, %v12201_v48 }
 0x448   : > { %9782 = vmatpush3.bf16.msra.mxu1 %v12462_v57  ;;  %8588 = vmatprep.mubr.msk.f32.mxu1 %vm1050_vm15, %v12328_v14 }
 0x449   : > { %9784 = vmatprep.subr.bf16.mxu1 %v12476_v11 }
 0x44b   : > { %8589 = vmatmul.mubr.msk.f32.gmra.mrb[38].mxu1 %vm1050_vm15, %v12213_v58  ;;  %v7256_v58 = vld [vmem:[%s11300_s24 + $0x118] sm:$0xff] }
 0x44c   : > { %9786 = vmatpush3.bf16.msra.mxu1 %v12476_v11 }
 0x44d   : > { %9788 = vmatprep.subr.bf16.mxu1 %v12487_v43 }
 0x450   : > { %9790 = vmatpush3.bf16.msra.mxu1 %v12487_v43 }
 0x451   : > { %9792 = vmatprep.subr.bf16.mxu1 %v12496_v18 }
 0x454   : > { %9794 = vmatpush3.bf16.msra.mxu1 %v12496_v18 }
 0x455   : > { %9796 = vmatprep.subr.bf16.mxu1 %v12512_v5 }
 0x458   : > { %9798 = vmatpush3.bf16.msra.mxu1 %v12512_v5 }
 0x459   : > { %9800 = vmatprep.subr.bf16.mxu1 %v12516_v36 }
 0x45c   : > { %9802 = vmatpush3.bf16.msra.mxu1 %v12516_v36 }
 0x45d   : > { %9837 = vmatprep.subr.msk.bf16.mxu1 %vm11587_vm1, %v12602_v25 }
 0x462   : > { %v8561_v22 = vpop.f32.mrb[32].mxu0 }
 0x463   : > { %v2536_v48 = vpop.f32.mrb[33].mxu0  ;;  %v2576_v14 = vmul.f32 %v8561_v22, %v12376_v17  ;;  %v3005_v22 = vmul.f32 %v12166_v33, %v977_v34 }
 0x464   : > { %v2575_v37 = vmul.f32 %v12280_v1, %v2536_v48 }
 0x466   : > { %v8564_v13 = vpop.f32.mrb[34].mxu0  ;;  %8623 = vmatprep.mubr.f32.mxu1 %v2575_v37  ;;  %v981_v37 = vld [vmem:[%s11300_s24 + $0xd8] sm:$0xff] }
 0x467   : > { %v2867_v16 = vpop.trf.xlu1  ;;  %v2546_v57 = vpop.f32.mrb[35].mxu0  ;;  %8624 = vmatmul.mubr.f32.vlgmr.msra.gmra.mrb[32].mxu1 %v2576_v14  ;;  %v2578_v43 = vmul.f32 %v8564_v13, %v12397_v39  ;;  %v985_v14 = vld [vmem:[%s11300_s24 + $0xf8] sm:$0xff] }
 0x468   : > { %v2577_v11 = vmul.f32 %v12381_v61, %v2546_v57  ;;  %9840 = vmatpush3.bf16.xpose.msk.msra.mxu1 %vm11587_vm1, %v12602_v25  ;;  %8667 = vmatprep.mubr.f32.mxu0 %v2867_v16  ;;  %v3006_v16 = vmul.f32 %v12166_v33, %v981_v37  ;;  %v3007_v57 = vmul.f32 %v12166_v33, %v985_v14 }
 0x469   : > { %9843 = vmatprep.subr.msk.bf16.mxu1 %vm11587_vm1, %v12613_v41 }
 0x46a   : > { %v8567_v18 = vpop.f32.mrb[36].mxu0  ;;  %8626 = vmatprep.mubr.f32.mxu1 %v2577_v11  ;;  %v9903_v11 = vpack.c.bf16 %v3007_v57, %v3006_v16 }
 0x46b   : > { %v2868_v5 = vpop.trf.xlu1  ;;  %v2556_v36 = vpop.f32.mrb[37].mxu0  ;;  %8627 = vmatmul.mubr.f32.gmra.mrb[34].mxu1 %v2578_v43  ;;  %v2580_v32 = vmul.f32 %v8567_v18, %v12420_v24 }
 0x46c   : > { %v2579_v53 = vmul.f32 %v12404_v20, %v2556_v36  ;;  %8668 = vmatmul.mubr.f32.vlgmr.msra.gmra.mrb[40].mxu0 %v2868_v5  ;;  %10813 = vset.pattern.permute.xlu0 %v14901_v42 }
 0x46d   : > { %9886 = vmatpush3.bf16.msra.mxu0 %v9883_v7 }
 0x46e   : > { %9888 = vmatprep.subr.bf16.mxu0 %v9883_v7  ;;  %v8570_v25 = vpop.f32.mrb[38].mxu0  ;;  %8629 = vmatprep.mubr.f32.mxu1 %v2579_v53 }
 0x46f   : > { %v2869_v59 = vpop.trf.xlu1  ;;  %v2566_v10 = vpop.f32.mrb[39].mxu0  ;;  %8630 = vmatmul.mubr.f32.gmra.mrb[36].mxu1 %v2580_v32  ;;  %v2582_v31 = vmul.f32 %v8570_v25, %v12443_v9  ;;  %v3012_v25 = vmul.f32 %v12171_v46, %v973_v12 }
 0x470   : > { %v2581_v45 = vmul.f32 %v12427_v26, %v2566_v10  ;;  %9846 = vmatpush3.bf16.xpose.msk.msra.mxu1 %vm11587_vm1, %v12613_v41  ;;  %8670 = vmatprep.mubr.f32.mxu0 %v2869_v59  ;;  %v3013_v59 = vmul.f32 %v12171_v46, %v977_v34 }
 0x471   : > { %9849 = vmatprep.subr.msk.bf16.mxu1 %vm11587_vm1, %v12607_v27  ;;  %9890 = vmatpush3.bf16.msra.mxu0 %v9883_v7  ;;  %v3004_v7 = vmul.f32 %v12166_v33, %v973_v12 }
 0x472   : > { %8632 = vmatprep.mubr.f32.mxu1 %v2581_v45  ;;  %v9915_v10 = vpack.c.bf16 %v3013_v59, %v3012_v25  ;;  %v3014_v45 = vmul.f32 %v12171_v46, %v981_v37  ;;  %v7221_v37 = vld [vmem:[%s11330_s7 + $0x50] sm:$0xff] }
 0x473   : > { %v2870_v50 = vpop.trf.xlu1  ;;  %8633 = vmatmul.mubr.f32.gmra.mrb[38].mxu1 %v2582_v31  ;;  %v9899_v13 = vpack.c.bf16 %v3005_v22, %v3004_v7  ;;  %v3015_v31 = vmul.f32 %v12171_v46, %v985_v14  ;;  %v7222_v14 = vld [vmem:[%s11330_s7 + $0x58] sm:$0xff] }
 0x474   : > { %8671 = vmatmul.mubr.f32.gmra.mrb[42].mxu0 %v2870_v50  ;;  %8705 = vmatprep.mubr.msk.f32.mxu1 %vm1050_vm15, %v12641_v51 }
 0x475   : > { %8725 = vmatprep.mubr.msk.f32.mxu0 %vm1050_vm15, %v12641_v51  ;;  %v9919_v50 = vpack.c.bf16 %v3015_v31, %v3014_v45  ;;  %v7226_v45 = vld [vmem:[%s11330_s7 + $0x78] sm:$0xff] }
 0x478   : > { %9852 = vmatpush3.bf16.xpose.msk.msra.mxu1 %vm11587_vm1, %v12607_v27  ;;  %8726 = vmatmul.mubr.msk.f32.vlgmr.msra.gmra.mrb[44].mxu0 %vm1050_vm15, %v12639_v52 }
 0x479   : > { %9855 = vmatprep.subr.msk.bf16.mxu1 %vm11587_vm1, %v12617_v30  ;;  %8728 = vmatprep.mubr.msk.f32.mxu0 %vm1050_vm15, %v12647_v35 }
 0x47b   : > { %v8333_v41 = vpop.f32.mrb[8].mxu1 }
 0x47c   : > { %1631 = vst [vmem:[%s12741_s13 + $0x20] sm:$0xff] %v8333_v41  ;;  %v1450_v27 = vpop.f32.mrb[9].mxu1  ;;  %8729 = vmatmul.mubr.msk.f32.gmra.mrb[46].mxu0 %vm1050_vm15, %v12645_v6 }
 0x47d   : > { %1630 = vst [vmem:[%s12741_s13] sm:$0xff] %v1450_v27  ;;  %8731 = vmatprep.mubr.msk.f32.mxu0 %vm1050_vm15, %v12653_v23  ;;  %v7219_v27 = vld [vmem:[%s11330_s7 + $0x40] sm:$0xff] }
 0x47f   : > { %v8336_v51 = vpop.f32.mrb[10].mxu1 }
 0x480   : > { %1633 = vst [vmem:[%s12741_s13 + $0x60] sm:$0xff] %v8336_v51  ;;  %9858 = vmatpush3.bf16.xpose.msk.msra.mxu1 %vm11587_vm1, %v12617_v30  ;;  %v1460_v49 = vpop.f32.mrb[11].mxu1  ;;  %8732 = vmatmul.mubr.msk.f32.gmra.mrb[48].mxu0 %vm1050_vm15, %v12650_v19  ;;  %v7220_v51 = vld [vmem:[%s11330_s7 + $0x48] sm:$0xff] }
 0x481   : > { %1632 = vst [vmem:[%s12741_s13 + $0x40] sm:$0xff] %v1460_v49  ;;  %9861 = vmatprep.subr.msk.bf16.mxu1 %vm11587_vm1, %v12621_v60  ;;  %8734 = vmatprep.mubr.msk.f32.mxu0 %vm1050_vm15, %v12661_v3 }
 0x483   : > { %v8339_v4 = vpop.f32.mrb[12].mxu1 }
 0x484   : > { %1635 = vst [vmem:[%s12741_s13 + $0xa0] sm:$0xff] %v8339_v4  ;;  %v1470_v44 = vpop.f32.mrb[13].mxu1  ;;  %8735 = vmatmul.mubr.msk.f32.gmra.mrb[50].mxu0 %vm1050_vm15, %v12656_v28  ;;  %v9955_v4 = vpack.c.bf16 %v7220_v51, %v7219_v27 }
 0x485   : > { %1634 = vst [vmem:[%s12741_s13 + $0x80] sm:$0xff] %v1470_v44  ;;  %v14902_v44 = vmov 1.0  }
 0x487   : > { %v8342_v30 = vpop.f32.mrb[14].mxu1 }
 0x488   : > { %1637 = vst [vmem:[%s12741_s13 + $0xe0] sm:$0xff] %v8342_v30  ;;  %9864 = vmatpush3.bf16.xpose.msk.msra.mxu1 %vm11587_vm1, %v12621_v60  ;;  %v1480_v56 = vpop.f32.mrb[15].mxu1 }
 0x489   : > { %1636 = vst [vmem:[%s12741_s13 + $0xc0] sm:$0xff] %v1480_v56  ;;  %9867 = vmatprep.subr.msk.bf16.mxu1 %vm11587_vm1, %v12625_v15 }
 0x490   : > { %9870 = vmatpush3.bf16.xpose.msk.msra.mxu1 %vm11587_vm1, %v12625_v15 }
 0x491   : > { %9873 = vmatprep.subr.msk.bf16.mxu1 %vm11587_vm1, %v12629_v29 }
 0x498   : > { %9876 = vmatpush3.bf16.xpose.msk.msra.mxu1 %vm11587_vm1, %v12629_v29 }
 0x499   : > { %9879 = vmatprep.subr.msk.bf16.mxu1 %vm11587_vm1, %v12633_v62 }
 0x49b   : > { %v12785_v60 = vpop.f32.mrb[16].mxu1 }
 0x49c   : > { %v12787_v38 = vpop.f32.mrb[17].mxu1 }
 0x49f   : > { %v12789_v15 = vpop.f32.mrb[18].mxu1 }
 0x4a0   : > { %9882 = vmatpush3.bf16.xpose.msk.msra.mxu1 %vm11587_vm1, %v12633_v62  ;;  %v12794_v8 = vpop.f32.mrb[19].mxu1 }
 0x4a7   : > { %8706 = vmatmul.mubr.msk.f32.vlgmr.msra.gmra.mrb[40].mxu1 %vm1050_vm15, %v12639_v52 }
 0x4a8   : > { %8708 = vmatprep.mubr.msk.f32.mxu1 %vm1050_vm15, %v12647_v35  ;;  %v957_v35 = vld [vmem:[%s11300_s24 + $0x18] sm:$0xff] }
 0x4a9   : > { %v3008_v43 = vmul.f32 %v12171_v46, %v957_v35 }
 0x4ab   : > { %8709 = vmatmul.mubr.msk.f32.gmra.mrb[42].mxu1 %vm1050_vm15, %v12645_v6 }
 0x4ac   : > { %8711 = vmatprep.mubr.msk.f32.mxu1 %vm1050_vm15, %v12653_v23  ;;  %v965_v23 = vld [vmem:[%s11300_s24 + $0x58] sm:$0xff] }
 0x4ad   : > { %v3002_v0 = vmul.f32 %v12166_v33, %v965_v23  ;;  %v3010_v36 = vmul.f32 %v12171_v46, %v965_v23 }
 0x4af   : > { %8712 = vmatmul.mubr.msk.f32.gmra.mrb[44].mxu1 %vm1050_vm15, %v12650_v19  ;;  %v961_v19 = vld [vmem:[%s11300_s24 + $0x38] sm:$0xff] }
 0x4b0   : > { %8714 = vmatprep.mubr.msk.f32.mxu1 %vm1050_vm15, %v12661_v3  ;;  %v3000_v3 = vmul.f32 %v12166_v33, %v957_v35  ;;  %v3001_v40 = vmul.f32 %v12166_v33, %v961_v19  ;;  %v3009_v18 = vmul.f32 %v12171_v46, %v961_v19 }
 0x4b2   : > { %v9891_v54 = vpack.c.bf16 %v3001_v40, %v3000_v3  ;;  %v9907_v5 = vpack.c.bf16 %v3009_v18, %v3008_v43  ;;  %v7223_v18 = vld [vmem:[%s11330_s7 + $0x60] sm:$0xff] }
 0x4b3   : > { %8715 = vmatmul.mubr.msk.f32.gmra.mrb[46].mxu1 %vm1050_vm15, %v12656_v28  ;;  %v969_v28 = vld [vmem:[%s11300_s24 + $0x78] sm:$0xff] }
 0x4b4   : > { %v3003_v47 = vmul.f32 %v12166_v33, %v969_v28  ;;  %9892 = vmatprep.subr.bf16.mxu0 %v9891_v54  ;;  %9924 = vmatprep.subr.bf16.mxu1 %v9891_v54  ;;  %v3011_v53 = vmul.f32 %v12171_v46, %v969_v28 }
 0x4b5   : > { %9894 = vmatpush3.bf16.msra.mxu0 %v9891_v54  ;;  %9926 = vmatpush3.bf16.msra.mxu1 %v9891_v54 }
 0x4b6   : > { %v9895_v48 = vpack.c.bf16 %v3003_v47, %v3002_v0  ;;  %v9911_v32 = vpack.c.bf16 %v3011_v53, %v3010_v36 }
 0x4b8   : > { %9896 = vmatprep.subr.bf16.mxu0 %v9895_v48  ;;  %9928 = vmatprep.subr.bf16.mxu1 %v9895_v48 }
 0x4b9   : > { %9898 = vmatpush3.bf16.msra.mxu0 %v9895_v48  ;;  %9930 = vmatpush3.bf16.msra.mxu1 %v9895_v48 }
 0x4ba   : > { %9900 = vmatprep.subr.bf16.mxu0 %v9899_v13  ;;  %9932 = vmatprep.subr.bf16.mxu1 %v9899_v13 }
 0x4bd   : > { %9902 = vmatpush3.bf16.msra.mxu0 %v9899_v13  ;;  %9934 = vmatpush3.bf16.msra.mxu1 %v9899_v13 }
 0x4be   : > { %9904 = vmatprep.subr.bf16.mxu0 %v9903_v11  ;;  %9936 = vmatprep.subr.bf16.mxu1 %v9903_v11 }
 0x4c1   : > { %9906 = vmatpush3.bf16.msra.mxu0 %v9903_v11  ;;  %9938 = vmatpush3.bf16.msra.mxu1 %v9903_v11  ;;  %v9959_v11 = vpack.c.bf16 %v7222_v14, %v7221_v37 }
 0x4c2   : > { %9908 = vmatprep.subr.bf16.mxu0 %v9907_v5  ;;  %9940 = vmatprep.subr.bf16.mxu1 %v9907_v5 }
 0x4c3   : > { %v8479_v29 = vpop.f32.mrb[20].mxu1 }
 0x4c4   : > { %2313 = vst [vmem:[%s12741_s13 + $0x28] sm:$0xff] %v8479_v29  ;;  %v2116_v62 = vpop.f32.mrb[21].mxu1 }
 0x4c5   : > { %2312 = vst [vmem:[%s12741_s13 + $0x8] sm:$0xff] %v2116_v62  ;;  %9910 = vmatpush3.bf16.msra.mxu0 %v9907_v5  ;;  %9942 = vmatpush3.bf16.msra.mxu1 %v9907_v5  ;;  %v7224_v5 = vld [vmem:[%s11330_s7 + $0x68] sm:$0xff] }
 0x4c6   : > { %9912 = vmatprep.subr.bf16.mxu0 %v9911_v32  ;;  %9944 = vmatprep.subr.bf16.mxu1 %v9911_v32  ;;  %v9963_v25 = vpack.c.bf16 %v7224_v5, %v7223_v18 }
 0x4c7   : > { %v8482_v52 = vpop.f32.mrb[22].mxu1 }
 0x4c8   : > { %2315 = vst [vmem:[%s12741_s13 + $0x68] sm:$0xff] %v8482_v52  ;;  %v2126_v6 = vpop.f32.mrb[23].mxu1 }
 0x4c9   : > { %2314 = vst [vmem:[%s12741_s13 + $0x48] sm:$0xff] %v2126_v6  ;;  %9914 = vmatpush3.bf16.msra.mxu0 %v9911_v32  ;;  %9946 = vmatpush3.bf16.msra.mxu1 %v9911_v32 }
 0x4ca   : > { %9916 = vmatprep.subr.bf16.mxu0 %v9915_v10  ;;  %9948 = vmatprep.subr.bf16.mxu1 %v9915_v10 }
 0x4cd   : > { %9918 = vmatpush3.bf16.msra.mxu0 %v9915_v10  ;;  %9950 = vmatpush3.bf16.msra.mxu1 %v9915_v10  ;;  %v7225_v10 = vld [vmem:[%s11330_s7 + $0x70] sm:$0xff]  ;;  %s11008_s7 = sshll.u32 %s11111_s10, 4  ;;  %s11009_s7 = int_to_ptr.vmem [resolvable:$false] %s11008_s7 }
 0x4ce   : > { %9920 = vmatprep.subr.bf16.mxu0 %v9919_v50  ;;  %9952 = vmatprep.subr.bf16.mxu1 %v9919_v50  ;;  %v9967_v27 = vpack.c.bf16 %v7226_v45, %v7225_v10  ;;  %s11010_s14 = scalar_lea.vmem %s11009_s7, 16384 }
 0x4d1   : > { %9922 = vmatpush3.bf16.msra.mxu0 %v9919_v50  ;;  %9954 = vmatpush3.bf16.msra.mxu1 %v9919_v50 }
 0x4d2   : > { %8861 = vmatprep.subr.msk.mxu1 %vm11418_vm11, %v14902_v44  ;;  %9956 = vmatprep.subr.bf16.mxu0 %v9955_v4 }
 0x4ff   : > { %v8485_v41 = vpop.f32.mrb[24].mxu1 }
 0x500   : > { %2317 = vst [vmem:[%s12741_s13 + $0xa8] sm:$0xff] %v8485_v41  ;;  %v2136_v49 = vpop.f32.mrb[25].mxu1 }
 0x501   : > { %2316 = vst [vmem:[%s12741_s13 + $0x88] sm:$0xff] %v2136_v49 }
 0x506   : > { %v8488_v56 = vpop.f32.mrb[26].mxu1 }
 0x507   : > { %2319 = vst [vmem:[%s12741_s13 + $0xe8] sm:$0xff] %v8488_v56  ;;  %v2146_v29 = vpop.f32.mrb[27].mxu1 }
 0x508   : > { %2318 = vst [vmem:[%s12741_s13 + $0xc8] sm:$0xff] %v2146_v29  ;;  %v14912_v29 = vld [vmem:[#allocation13_spill] sm:$0xff] }
 0x50a   : > { %v12847_v62 = vpop.f32.mrb[28].mxu1 }
 0x50b   : > { %14904 = vst [vmem:[#allocation29_spill] sm:$0xff] %v12847_v62  ;;  %v12849_v52 = vpop.f32.mrb[29].mxu1 }
 0x50c   : > { %14905 = vst [vmem:[#allocation32_spill] sm:$0xff] %v12849_v52 }
 0x50e   : > { %v12851_v6 = vpop.f32.mrb[30].mxu1 }
 0x50f   : > { %14906 = vst [vmem:[#allocation33_spill] sm:$0xff] %v12851_v6  ;;  %v12853_v35 = vpop.f32.mrb[31].mxu1 }
 0x510   : > { %14907 = vst [vmem:[#allocation34_spill] sm:$0xff] %v12853_v35 }
 0x53a   : > { %v8625_v19 = vpop.f32.mrb[32].mxu1 }
 0x53b   : > { %2993 = vst [vmem:[%s12741_s13 + $0x30] sm:$0xff] %v8625_v19  ;;  %v2796_v23 = vpop.f32.mrb[33].mxu1  ;;  %v14913_v19 = vld [vmem:[#allocation14_spill] sm:$0xff] }
 0x53c   : > { %2992 = vst [vmem:[%s12741_s13 + $0x10] sm:$0xff] %v2796_v23  ;;  %v14914_v23 = vld [vmem:[#allocation15_spill] sm:$0xff] }
 0x53e   : > { %v8628_v3 = vpop.f32.mrb[34].mxu1 }
 0x53f   : > { %2995 = vst [vmem:[%s12741_s13 + $0x70] sm:$0xff] %v8628_v3  ;;  %v2806_v40 = vpop.f32.mrb[35].mxu1  ;;  %v12858_v28 = vpop.f32.mrb[40].mxu0  ;;  %v14915_v3 = vld [vmem:[#allocation16_spill] sm:$0xff] }
 0x540   : > { %14908 = vst [vmem:[#allocation35_spill] sm:$0xff] %v12858_v28  ;;  %2994 = vst [vmem:[%s12741_s13 + $0x50] sm:$0xff] %v2806_v40  ;;  %v12861_v0 = vpop.f32.mrb[41].mxu0  ;;  %v14916_v40 = vld [vmem:[#allocation17_spill] sm:$0xff] }
 0x541   : > { %14909 = vst [vmem:[#allocation40_spill] sm:$0xff] %v12861_v0 }
 0x542   : > { %v8631_v12 = vpop.f32.mrb[36].mxu1 }
 0x543   : > { %2997 = vst [vmem:[%s12741_s13 + $0xb0] sm:$0xff] %v8631_v12  ;;  %v2816_v34 = vpop.f32.mrb[37].mxu1  ;;  %v14917_v12 = vld [vmem:[#allocation18_spill] sm:$0xff] }
 0x544   : > { %2996 = vst [vmem:[%s12741_s13 + $0x90] sm:$0xff] %v2816_v34  ;;  %v14918_v34 = vld [vmem:[#allocation19_spill] sm:$0xff] }
 0x546   : > { %v8634_v47 = vpop.f32.mrb[38].mxu1 }
 0x547   : > { %2999 = vst [vmem:[%s12741_s13 + $0xf0] sm:$0xff] %v8634_v47  ;;  %v2826_v54 = vpop.f32.mrb[39].mxu1  ;;  %v12866_v7 = vpop.f32.mrb[42].mxu0  ;;  %v14919_v47 = vld [vmem:[#allocation20_spill] sm:$0xff] }
 0x548   : > { %14910 = vst [vmem:[#allocation37_spill] sm:$0xff] %v12866_v7  ;;  %2998 = vst [vmem:[%s12741_s13 + $0xd0] sm:$0xff] %v2826_v54  ;;  %v12869_v22 = vpop.f32.mrb[43].mxu0  ;;  %v3547_v54 = vpop.trf.xlu0 }
 0x549   : > { %14911 = vst [vmem:[#allocation41_spill] sm:$0xff] %v12869_v22  ;;  %8813 = vmatprep.mubr.f32.mxu1 %v3547_v54 }
 0x57a   : > { %v8707_v48 = vpop.f32.mrb[40].mxu1 }
 0x57b   : > { %v3216_v13 = vpop.f32.mrb[41].mxu1  ;;  %v3256_v57 = vmul.f32 %v8707_v48, %v12376_v17  ;;  %v3548_v48 = vpop.trf.xlu0 }
 0x57c   : > { %v3255_v16 = vmul.f32 %v12280_v1, %v3216_v13  ;;  %8814 = vmatmul.mubr.f32.vlgmr.msra.gmra.mrb[48].mxu1 %v3548_v48 }
 0x57d   : > { %8862 = vmatpush3.msk.msra.mxu1 %vm11418_vm11, %v14902_v44 }
 0x57e   : > { %v8710_v43 = vpop.f32.mrb[42].mxu1  ;;  %8769 = vmatprep.mubr.f32.mxu0 %v3255_v16 }
 0x57f   : > { %v3226_v36 = vpop.f32.mrb[43].mxu1  ;;  %8770 = vmatmul.mubr.f32.vlgmr.msra.gmra.mrb[44].mxu0 %v3256_v57  ;;  %v3258_v32 = vmul.f32 %v8710_v43, %v12397_v39  ;;  %v3549_v37 = vpop.trf.xlu0 }
 0x580   : > { %v3257_v53 = vmul.f32 %v12381_v61, %v3226_v36  ;;  %9958 = vmatpush3.bf16.msra.mxu0 %v9955_v4  ;;  %8816 = vmatprep.mubr.f32.mxu1 %v3549_v37 }
 0x581   : > { %9960 = vmatprep.subr.bf16.mxu0 %v9959_v11 }
 0x582   : > { %v8713_v59 = vpop.f32.mrb[44].mxu1  ;;  %8772 = vmatprep.mubr.f32.mxu0 %v3257_v53 }
 0x583   : > { %v3236_v31 = vpop.f32.mrb[45].mxu1  ;;  %8773 = vmatmul.mubr.f32.gmra.mrb[46].mxu0 %v3258_v32  ;;  %v3260_v41 = vmul.f32 %v8713_v59, %v12420_v24  ;;  %v3550_v14 = vpop.trf.xlu0 }
 0x584   : > { %v3259_v50 = vmul.f32 %v12404_v20, %v3236_v31  ;;  %9962 = vmatpush3.bf16.msra.mxu0 %v9959_v11  ;;  %8817 = vmatmul.mubr.f32.gmra.mrb[50].mxu1 %v3550_v14 }
 0x585   : > { %9964 = vmatprep.subr.bf16.mxu0 %v9963_v25 }
 0x586   : > { %v8716_v51 = vpop.f32.mrb[46].mxu1  ;;  %8775 = vmatprep.mubr.f32.mxu0 %v3259_v50 }
 0x587   : > { %v3246_v49 = vpop.f32.mrb[47].mxu1  ;;  %8776 = vmatmul.mubr.f32.gmra.mrb[48].mxu0 %v3260_v41  ;;  %v3262_v56 = vmul.f32 %v8716_v51, %v12443_v9 }
 0x588   : > { %v3261_v4 = vmul.f32 %v12427_v26, %v3246_v49  ;;  %9966 = vmatpush3.bf16.msra.mxu0 %v9963_v25 }
 0x589   : > { %9968 = vmatprep.subr.bf16.mxu0 %v9967_v27 }
 0x58a   : > { %8778 = vmatprep.mubr.f32.mxu0 %v3261_v4 }
 0x58b   : > { %8779 = vmatmul.mubr.f32.gmra.mrb[50].mxu0 %v3262_v56 }
 0x58c   : > { %9970 = vmatpush3.bf16.msra.mxu0 %v9967_v27  ;;  %8835 = vmatprep.mubr.msk.f32.mxu0 %vm469_vm0, %v14912_v29 }
 0x58d   : > { %8847 = vmatprep.subr.msk.mxu0 %vm11418_vm11, %v14902_v44 }
 0x58f   : > { %8836 = vmatmul.mubr.msk.f32.vlgmr.msra.gmra.mrb[52].mxu0 %vm469_vm0, %v14913_v19 }
 0x590   : > { %8838 = vmatprep.mubr.msk.f32.mxu0 %vm469_vm0, %v14914_v23  ;;  %8848 = vmatpush3.msk.msra.mxu0 %vm11418_vm11, %v14902_v44 }
 0x593   : > { %8839 = vmatmul.mubr.msk.f32.gmra.mrb[54].mxu0 %vm469_vm0, %v14915_v3 }
 0x594   : > { %8841 = vmatprep.mubr.msk.f32.mxu0 %vm469_vm0, %v14916_v40 }
 0x597   : > { %8842 = vmatmul.mubr.msk.f32.gmra.mrb[56].mxu0 %vm469_vm0, %v14917_v12 }
 0x598   : > { %8844 = vmatprep.mubr.msk.f32.mxu0 %vm469_vm0, %v14918_v34 }
 0x59b   : > { %8845 = vmatmul.mubr.msk.f32.gmra.mrb[58].mxu0 %vm469_vm0, %v14919_v47 }
 0x652   : > { %v8771_v13 = vpop.f32.mrb[44].mxu0 }
 0x653   : > { %3673 = vst [vmem:[%s12741_s13 + $0x38] sm:$0xff] %v8771_v13  ;;  %v3476_v16 = vpop.f32.mrb[45].mxu0 }
 0x654   : > { %3672 = vst [vmem:[%s12741_s13 + $0x18] sm:$0xff] %v3476_v16 }
 0x656   : > { %v8774_v57 = vpop.f32.mrb[46].mxu0 }
 0x657   : > { %3675 = vst [vmem:[%s12741_s13 + $0x78] sm:$0xff] %v8774_v57  ;;  %v3486_v11 = vpop.f32.mrb[47].mxu0 }
 0x658   : > { %3674 = vst [vmem:[%s12741_s13 + $0x58] sm:$0xff] %v3486_v11 }
 0x65a   : > { %v8777_v43 = vpop.f32.mrb[48].mxu0 }
 0x65b   : > { %3677 = vst [vmem:[%s12741_s13 + $0xb8] sm:$0xff] %v8777_v43  ;;  %v3496_v18 = vpop.f32.mrb[49].mxu0 }
 0x65c   : > { %3676 = vst [vmem:[%s12741_s13 + $0x98] sm:$0xff] %v3496_v18 }
 0x65e   : > { %v8780_v44 = vpop.f32.mrb[50].mxu0 }
 0x65f   : > { %3679 = vst [vmem:[%s12741_s13 + $0xf8] sm:$0xff] %v8780_v44  ;;  %v3506_v30 = vpop.f32.mrb[51].mxu0 }
 0x660   : > { %3678 = vst [vmem:[%s12741_s13 + $0xd8] sm:$0xff] %v3506_v30 }
 0x662   : > { %v12918_v5 = vpop.f32.mrb[52].mxu0 }
 0x663   : > { %v3755_v36 = vpop.f32.mrb[53].mxu0  ;;  %v3795_v25 = vsel %vm599_vm14, %v12918_v5, -inf  ;;  %v3816_v59 = vsel %vm599_vm14, %v12918_v5, inf }
 0x664   : > { %v3794_v45 = vsel %vm599_vm14, %v3755_v36, -inf  ;;  %v3815_v31 = vsel %vm599_vm14, %v3755_v36, inf }
 0x666   : > { %v12920_v53 = vpop.f32.mrb[54].mxu0 }
 0x667   : > { %v12922_v32 = vpop.f32.mrb[55].mxu0  ;;  %v3797_v23 = vsel %vm599_vm14, %v12920_v53, -inf  ;;  %v3818_v3 = vsel %vm599_vm14, %v12920_v53, inf }
 0x668   : > { %v3796_v40 = vsel %vm599_vm14, %v12922_v32, -inf  ;;  %v3817_v12 = vsel %vm599_vm14, %v12922_v32, inf }
 0x66a   : > { %v12928_v10 = vpop.f32.mrb[56].mxu0 }
 0x66b   : > { %v3800_v50 = vsel %vm599_vm14, %v12928_v10, -inf  ;;  %v3821_v41 = vsel %vm599_vm14, %v12928_v10, inf  ;;  %v12936_v27 = vpop.f32.mrb[57].mxu0 }
 0x66c   : > { %v3801_v51 = vmax.f32 %v3795_v25, %v3800_v50  ;;  %v3822_v49 = vmin.f32 %v3816_v59, %v3821_v41  ;;  %v3798_v4 = vsel %vm599_vm14, %v12936_v27, -inf  ;;  %v3819_v56 = vsel %vm599_vm14, %v12936_v27, inf }
 0x66d   : > { %v3799_v29 = vmax.f32 %v3794_v45, %v3798_v4  ;;  %v3820_v19 = vmin.f32 %v3815_v31, %v3819_v56 }
 0x66e   : > { %v12950_v34 = vpop.f32.mrb[58].mxu0 }
 0x66f   : > { %v3806_v47 = vmax.f32 %v3799_v29, %v3801_v51  ;;  %v3827_v54 = vmin.f32 %v3820_v19, %v3822_v49  ;;  %v3804_v48 = vsel %vm599_vm14, %v12950_v34, -inf  ;;  %v3825_v37 = vsel %vm599_vm14, %v12950_v34, inf  ;;  %v12956_v14 = vpop.f32.mrb[59].mxu0 }
 0x670   : > { %v3805_v13 = vmax.f32 %v3797_v23, %v3804_v48  ;;  %v3826_v16 = vmin.f32 %v3818_v3, %v3825_v37  ;;  %v3802_v57 = vsel %vm599_vm14, %v12956_v14, -inf  ;;  %v3823_v11 = vsel %vm599_vm14, %v12956_v14, inf }
 0x671   : > { %v3803_v43 = vmax.f32 %v3796_v40, %v3802_v57  ;;  %v3824_v18 = vmin.f32 %v3817_v12, %v3823_v11 }
 0x673   : > { %v3807_v44 = vmax.f32 %v3803_v43, %v3805_v13  ;;  %v3828_v30 = vmin.f32 %v3824_v18, %v3826_v16 }
 0x675   : > { %v3808_v25 = vmax.f32 %v3806_v47, %v3807_v44  ;;  %v3829_v59 = vmin.f32 %v3827_v54, %v3828_v30 }
 0x677   : > { %v3809_v45 = vrot.slane %v3808_v25, 4  ;;  %v3830_v31 = vrot.slane %v3829_v59, 4 }
 0x679   : > { %v3810_v50 = vmax.f32 %v3808_v25, %v3809_v45  ;;  %v3831_v41 = vmin.f32 %v3829_v59, %v3830_v31 }
 0x67b   : > { %v3811_v51 = vrot.slane %v3810_v50, 2  ;;  %v3832_v49 = vrot.slane %v3831_v41, 2 }
 0x67d   : > { %v3812_v4 = vmax.f32 %v3810_v50, %v3811_v51  ;;  %v3833_v56 = vmin.f32 %v3831_v41, %v3832_v49 }
 0x67f   : > { %v3813_v29 = vrot.slane %v3812_v4, 1  ;;  %v3834_v19 = vrot.slane %v3833_v56, 1 }
 0x681   : > { %v3814_v23 = vmax.f32 %v3812_v4, %v3813_v29  ;;  %v3835_v3 = vmin.f32 %v3833_v56, %v3834_v19 }
 0x683   : > { %v3836_v48 = vadd.f32 %v3835_v3, %v3814_v23 }
 0x685   : > { %v12962_v37 = vmul.f32 0.5, %v3836_v48 }
 0x687   : > { %v3844_v40 = vsub.f32 %v12956_v14, %v12962_v37  ;;  %v3868_v12 = vsub.f32 %v12962_v37, %v12956_v14  ;;  %v3838_v47 = vsub.f32 %v3755_v36, %v12962_v37  ;;  %v3862_v54 = vsub.f32 %v12962_v37, %v3755_v36 }
 0x688   : > { %v3839_v13 = vsub.f32 %v12918_v5, %v12962_v37  ;;  %v3863_v16 = vsub.f32 %v12962_v37, %v12918_v5  ;;  %v3840_v57 = vsub.f32 %v12922_v32, %v12962_v37  ;;  %v3864_v44 = vsub.f32 %v12962_v37, %v12922_v32 }
 0x689   : > { %v3858_v11 = vmul.f32 1.442695, %v3844_v40  ;;  %v3846_v43 = vmul.f32 1.442695, %v3838_v47  ;;  %v3870_v18 = vmul.f32 1.442695, %v3862_v54  ;;  %v3841_v30 = vsub.f32 %v12920_v53, %v12962_v37 }
 0x68a   : > { %v3848_v14 = vmul.f32 1.442695, %v3839_v13  ;;  %v3865_v36 = vsub.f32 %v12962_v37, %v12920_v53  ;;  %v3872_v25 = vmul.f32 1.442695, %v3863_v16  ;;  %v3842_v5 = vsub.f32 %v12936_v27, %v12962_v37 }
 0x68b   : > { %10908 = vpow2.f32 %v3858_v11  ;;  %v3866_v59 = vsub.f32 %v12962_v37, %v12936_v27  ;;  %v3850_v45 = vmul.f32 1.442695, %v3840_v57  ;;  %v3843_v32 = vsub.f32 %v12928_v10, %v12962_v37 }
 0x68c   : > { %10910 = vpow2.f32 %v3846_v43  ;;  %v3874_v31 = vmul.f32 1.442695, %v3864_v44  ;;  %v3867_v50 = vsub.f32 %v12962_v37, %v12928_v10  ;;  %v3852_v53 = vmul.f32 1.442695, %v3841_v30 }
 0x68d   : > { %10912 = vpow2.f32 %v3870_v18  ;;  %v3845_v41 = vsub.f32 %v12950_v34, %v12962_v37  ;;  %v3869_v51 = vsub.f32 %v12962_v37, %v12950_v34  ;;  %v3876_v27 = vmul.f32 1.442695, %v3865_v36  ;;  %v13010_v36 = vpop.f32.mrb[48].mxu1 }
 0x68e   : > { %10914 = vpow2.f32 %v3848_v14  ;;  %v3854_v49 = vmul.f32 1.442695, %v3842_v5  ;;  %v3878_v4 = vmul.f32 1.442695, %v3866_v59  ;;  %v3856_v56 = vmul.f32 1.442695, %v3843_v32 }
 0x68f   : > { %10916 = vpow2.f32 %v3872_v25  ;;  %v3880_v29 = vmul.f32 1.442695, %v3867_v50  ;;  %v3882_v19 = vmul.f32 1.442695, %v3868_v12  ;;  %v3860_v3 = vmul.f32 1.442695, %v3845_v41 }
 0x690   : > { %10918 = vpow2.f32 %v3850_v45  ;;  %v3884_v34 = vmul.f32 1.442695, %v3869_v51  ;;  %14920 = vst [vmem:[#allocation43_spill] sm:$0xff] %v13010_v36  ;;  %v13012_v25 = vpop.f32.mrb[49].mxu1  ;;  %v7294_v45 = vld [vmem:[%s11546_s21 + $0x48] sm:$0xff]  ;;  %v7285_v32 = vld [vmem:[%s11308_s26 + $0x40] sm:$0xff] }
 0x691   : > { %10920 = vpow2.f32 %v3874_v31  ;;  %14921 = vst [vmem:[#allocation36_spill] sm:$0xff] %v13012_v25  ;;  %v13014_v5 = vpop.f32.mrb[50].mxu1  ;;  %v7293_v50 = vld [vmem:[%s11546_s21 + $0x40] sm:$0xff]  ;;  %v7300_v36 = vld [vmem:[%s11546_s21 + $0x78] sm:$0xff] }
 0x692   : > { %10922 = vpow2.f32 %v3852_v53  ;;  %14922 = vst [vmem:[#allocation38_spill] sm:$0xff] %v13014_v5  ;;  %v13016_v59 = vpop.f32.mrb[51].mxu1 }
 0x693   : > { %10924 = vpow2.f32 %v3876_v27  ;;  %14923 = vst [vmem:[#allocation39_spill] sm:$0xff] %v13016_v59 }
 0x694   : > { %10926 = vpow2.f32 %v3854_v49 }
 0x695   : > { %v10909_v10 = vpop.eup %10908  ;;  %10928 = vpow2.f32 %v3878_v4 }
 0x696   : > { %v10911_v23 = vpop.eup %10910  ;;  %10930 = vpow2.f32 %v3856_v56  ;;  %v7296_v56 = vld [vmem:[%s11546_s21 + $0x58] sm:$0xff] }
 0x697   : > { %v10913_v48 = vpop.eup %10912  ;;  %8849 = vmatprep.mubr.msk.f32.mxu0 %vm599_vm14, %v10911_v23  ;;  %10932 = vpow2.f32 %v3880_v29 }
 0x698   : > { %v10915_v40 = vpop.eup %10914  ;;  %10934 = vpow2.f32 %v3882_v19  ;;  %8863 = vmatprep.mubr.msk.f32.mxu1 %vm599_vm14, %v10913_v48  ;;  %v7295_v19 = vld [vmem:[%s11546_s21 + $0x50] sm:$0xff] }
 0x699   : > { %v10917_v47 = vpop.eup %10916  ;;  %8850 = vmatmul.mubr.msk.f32.vlgmr.msra.gmra.mrb[60].mxu0 %vm599_vm14, %v10915_v40  ;;  %10936 = vpow2.f32 %v3860_v3  ;;  %v14925_v3 = vld [vmem:[#allocation22_spill] sm:$0xff] }
 0x69a   : > { %v10919_v54 = vpop.eup %10918  ;;  %8864 = vmatmul.mubr.msk.f32.vlgmr.msra.gmra.mrb[52].mxu1 %vm599_vm14, %v10917_v47  ;;  %10938 = vpow2.f32 %v3884_v34  ;;  %v14926_v34 = vld [vmem:[#allocation28_spill] sm:$0xff] }
 0x69b   : > { %v10921_v12 = vpop.eup %10920  ;;  %8852 = vmatprep.mubr.msk.f32.mxu0 %vm599_vm14, %v10919_v54 }
 0x69c   : > { %v10923_v13 = vpop.eup %10922  ;;  %8866 = vmatprep.mubr.msk.f32.mxu1 %vm599_vm14, %v10921_v12 }
 0x69d   : > { %v10925_v16 = vpop.eup %10924  ;;  %8853 = vmatmul.mubr.msk.f32.gmra.mrb[62].mxu0 %vm599_vm14, %v10923_v13 }
 0x69e   : > { %v10927_v57 = vpop.eup %10926  ;;  %8867 = vmatmul.mubr.msk.f32.gmra.mrb[54].mxu1 %vm599_vm14, %v10925_v16 }
 0x69f   : > { %v10929_v11 = vpop.eup %10928  ;;  %8855 = vmatprep.mubr.msk.f32.mxu0 %vm599_vm14, %v10927_v57 }
 0x6a0   : > { %v10931_v43 = vpop.eup %10930  ;;  %8869 = vmatprep.mubr.msk.f32.mxu1 %vm599_vm14, %v10929_v11 }
 0x6a1   : > { %v10933_v18 = vpop.eup %10932  ;;  %8856 = vmatmul.mubr.msk.f32.gmra.mrb[64].mxu0 %vm599_vm14, %v10931_v43  ;;  %v14927_v43 = vld [vmem:[#allocation30_spill] sm:$0xff] }
 0x6a2   : > { %v10935_v44 = vpop.eup %10934  ;;  %8870 = vmatmul.mubr.msk.f32.gmra.mrb[56].mxu1 %vm599_vm14, %v10933_v18  ;;  %8858 = vmatprep.mubr.msk.f32.mxu0 %vm599_vm14, %v10909_v10  ;;  %v14924_v10 = vld [vmem:[#allocation26_spill] sm:$0xff] }
 0x6a3   : > { %8872 = vmatprep.mubr.msk.f32.mxu1 %vm599_vm14, %v10935_v44  ;;  %v10937_v14 = vpop.eup %10936 }
 0x6a4   : > { %v10939_v30 = vpop.eup %10938 }
 0x6a5   : > { %8859 = vmatmul.mubr.msk.f32.gmra.mrb[66].mxu0 %vm599_vm14, %v10937_v14 }
 0x6a6   : > { %8873 = vmatmul.mubr.msk.f32.gmra.mrb[58].mxu1 %vm599_vm14, %v10939_v30 }
 0x76c   : > { %v13020_v31 = vpop.f32.mrb[60].mxu0 }
 0x76d   : > { %v8865_v53 = vpop.f32.mrb[52].mxu1  ;;  %v3980_v41 = vpop.f32.mrb[61].mxu0 }
 0x76e   : > { %v13023_v51 = vmul.f32 %v8865_v53, %v7294_v45  ;;  %v13025_v27 = vmul.f32 %v7285_v32, %v3980_v41  ;;  %v4109_v49 = vpop.f32.mrb[53].mxu1  ;;  %v7298_v45 = vld [vmem:[%s11546_s21 + $0x68] sm:$0xff]  ;;  %v7297_v41 = vld [vmem:[%s11546_s21 + $0x60] sm:$0xff] }
 0x76f   : > { %v13027_v4 = vmul.f32 %v7293_v50, %v4109_v49 }
 0x770   : > { %v13030_v29 = vpop.f32.mrb[62].mxu0  ;;  %8907 = vmatprep.mubr.msk.f32.mxu0 %vm1050_vm15, %v13025_v27  ;;  %8927 = vmatprep.mubr.msk.f32.mxu1 %vm1050_vm15, %v13025_v27  ;;  %v4852_v23 = vmul.f32 %v13023_v51, %v14924_v10  ;;  %v13041_v48 = vmul.f32 %v14925_v3, %v13023_v51  ;;  %v4860_v40 = vmul.f32 %v13023_v51, %v14926_v34 }
 0x771   : > { %v8868_v47 = vpop.f32.mrb[54].mxu1  ;;  %v13045_v54 = vpop.f32.mrb[63].mxu0  ;;  %v4851_v12 = vmul.f32 %v13027_v4, %v14924_v10  ;;  %v13051_v13 = vmul.f32 %v14925_v3, %v13027_v4  ;;  %v4859_v16 = vmul.f32 %v13027_v4, %v14926_v34  ;;  %v13059_v18 = vmul.f32 %v13027_v4, %v14927_v43 }
 0x772   : > { %v13055_v57 = vmul.f32 %v8868_v47, %v7296_v56  ;;  %v4119_v11 = vpop.f32.mrb[55].mxu1  ;;  %v13063_v44 = vmul.f32 %v13023_v51, %v14927_v43  ;;  %v13289_v62 = vmul.f32 %v12309_v63, %v13027_v4 }
 0x773   : > { %v13065_v14 = vmul.f32 %v7295_v19, %v4119_v11  ;;  %v10733_v30 = vpack.i.bf16 %v4852_v23, %v4851_v12  ;;  %v9971_v32 = vpack.c.bf16 %v13041_v48, %v13051_v13  ;;  %v10753_v50 = vpack.i.bf16 %v4860_v40, %v4859_v16 }
 0x774   : > { %v13070_v53 = vpop.f32.mrb[64].mxu0  ;;  %v4854_v49 = vmul.f32 %v13055_v57, %v14924_v10  ;;  %v13077_v56 = vmul.f32 %v14925_v3, %v13055_v57  ;;  %v13081_v19 = vmul.f32 %v13055_v57, %v14926_v34  ;;  %v14930_v0 = vpack.i.bf16 %v13063_v44, %v13059_v18  ;;  %14935 = vst [vmem:[#allocation48_spill] sm:$0xff] %v13289_v62 }
 0x775   : > { %10734 = vrot.lane.b32.xlu0 %v10733_v30, %s11101_s6  ;;  %v8871_v40 = vpop.f32.mrb[56].mxu1  ;;  %9973 = vmatprep.subr.msk.bf16.mxu0 %vm11587_vm1, %v9971_v32  ;;  %v13088_v47 = vpop.f32.mrb[65].mxu0  ;;  %v4853_v12 = vmul.f32 %v13065_v14, %v14924_v10  ;;  %v13094_v16 = vmul.f32 %v14925_v3, %v13065_v14  ;;  %v4861_v30 = vmul.f32 %v13065_v14, %v14926_v34 }
 0x776   : > { %v13096_v11 = vmul.f32 %v8871_v40, %v7298_v45  ;;  %v4129_v55 = vpop.f32.mrb[57].mxu1  ;;  %9976 = vmatpush3.bf16.xpose.msk.msra.mxu0 %vm11587_vm1, %v9971_v32  ;;  %v13104_v23 = vmul.f32 %v13065_v14, %v14927_v43  ;;  %v13113_v45 = vmul.f32 %v13055_v57, %v14927_v43  ;;  %v7299_v32 = vld [vmem:[%s11546_s21 + $0x70] sm:$0xff]  ;;  %v13263_v18 = vmul.f32 %v12259_v2, %v13023_v51 }
 0x777   : > { %v13106_v5 = vmul.f32 %v7297_v41, %v4129_v55  ;;  %v10738_v59 = vpack.i.bf16 %v4854_v49, %v4853_v12  ;;  %v9977_v25 = vpack.c.bf16 %v13077_v56, %v13094_v16  ;;  %v10758_v55 = vpack.i.bf16 %v13081_v19, %v4861_v30 }
 0x778   : > { %v13115_v40 = vpop.f32.mrb[66].mxu0  ;;  %v4864_v9 = vmul.f32 %v13096_v11, %v14926_v34  ;;  %v4856_v26 = vmul.f32 %v13096_v11, %v14924_v10  ;;  %v13133_v20 = vmul.f32 %v14925_v3, %v13096_v11  ;;  %v10778_v19 = vpack.i.bf16 %v13113_v45, %v13104_v23  ;;  %14932 = vst [vmem:[#allocation44_spill] sm:$0xff] %v13263_v18 }
 0x779   : > { %10754 = vrot.lane.b32.xlu0 %v10753_v50, %s11101_s6  ;;  %10739 = vrot.lane.b32.xlu1 %v10738_v59, %s11101_s6  ;;  %v8874_v41 = vpop.f32.mrb[58].mxu1  ;;  %v13125_v49 = vpop.f32.mrb[67].mxu0  ;;  %v4863_v12 = vmul.f32 %v13106_v5, %v14926_v34  ;;  %v4855_v24 = vmul.f32 %v13106_v5, %v14924_v10  ;;  %v13141_v50 = vmul.f32 %v14925_v3, %v13106_v5 }
 0x77a   : > { %v13135_v39 = vmul.f32 %v8874_v41, %v7300_v36  ;;  %9979 = vmatprep.subr.msk.bf16.mxu0 %vm11587_vm1, %v9977_v25  ;;  %v4139_v59 = vpop.f32.mrb[59].mxu1  ;;  %v13267_v44 = vmul.f32 %v12259_v2, %v13106_v5  ;;  %v13297_v52 = vmul.f32 %v12309_v63, %v13065_v14  ;;  %v13313_v18 = vmul.f32 %v12309_v63, %v13106_v5 }
 0x77b   : > { %v13145_v30 = vmul.f32 %v7299_v32, %v4139_v59  ;;  %v10763_v61 = vpack.i.bf16 %v4864_v9, %v4863_v12  ;;  %v10743_v17 = vpack.i.bf16 %v4856_v26, %v4855_v24  ;;  %v9983_v1 = vpack.c.bf16 %v13133_v20, %v13141_v50  ;;  %v14928_v26 = vld [vmem:[#allocation31_spill] sm:$0xff]  ;;  %v7289_v59 = vld [vmem:[%s11308_s26 + $0x60] sm:$0xff] }
 0x77c   : > { %v4858_v36 = vmul.f32 %v13135_v39, %v14924_v10  ;;  %v4866_v41 = vmul.f32 %v13135_v39, %v14926_v34  ;;  %v13163_v9 = vmul.f32 %v13027_v4, %v14928_v26  ;;  %v13170_v32 = vmul.f32 %v13023_v51, %v14928_v26  ;;  %14937 = vst [vmem:[#allocation49_spill] sm:$0xff] %v13297_v52  ;;  %v7292_v52 = vld [vmem:[%s11308_s26 + $0x78] sm:$0xff] }
 0x77d   : > { %10764 = vrot.lane.b32.xlu0 %v10763_v61, %s11101_s6  ;;  %10744 = vrot.lane.b32.xlu1 %v10743_v17, %s11101_s6  ;;  %v4857_v23 = vmul.f32 %v13145_v30, %v14924_v10  ;;  %v4865_v24 = vmul.f32 %v13145_v30, %v14926_v34  ;;  %v7286_v61 = vld [vmem:[%s11308_s26 + $0x48] sm:$0xff]  ;;  %v13174_v10 = vmul.f32 %v14925_v3, %v13145_v30 }
 0x77e   : > { %9982 = vmatpush3.bf16.xpose.msk.msra.mxu0 %vm11587_vm1, %v9977_v25  ;;  %v13178_v25 = vmul.f32 %v14925_v3, %v13135_v39  ;;  %v13182_v34 = vmul.f32 %v13106_v5, %v14927_v43  ;;  %v13186_v12 = vmul.f32 %v13096_v11, %v14927_v43  ;;  %v13196_v3 = vmul.f32 %v13106_v5, %v14928_v26 }
 0x77f   : > { %9985 = vmatprep.subr.msk.bf16.mxu0 %vm11587_vm1, %v9983_v1  ;;  %v10748_v17 = vpack.i.bf16 %v4858_v36, %v4857_v23  ;;  %v10768_v45 = vpack.i.bf16 %v4866_v41, %v4865_v24  ;;  %v13200_v41 = vmul.f32 %v13096_v11, %v14928_v26  ;;  %v13203_v23 = vmul.f32 %v13020_v31, %v7286_v61  ;;  %v14929_v36 = vld [vmem:[#allocation23_spill] sm:$0xff] }
 0x780   : > { %v13215_v7 = vmul.f32 %v13135_v39, %v14927_v43  ;;  %v13219_v22 = vmul.f32 %v13065_v14, %v14928_v26  ;;  %v13223_v31 = vmul.f32 %v13055_v57, %v14928_v26  ;;  %v13226_v61 = vmul.f32 %v7289_v59, %v13088_v47  ;;  %14938 = vst [vmem:[#allocation50_spill] sm:$0xff] %v13313_v18 }
 0x781   : > { %10749 = vrot.lane.b32.xlu1 %v10748_v17, %s11101_s6  ;;  %4867 = vrot.lane.b32.xlu0 %v13025_v27, %s11101_s6  ;;  %v13209_v17 = vmul.f32 %v13145_v30, %v14927_v43  ;;  %v9989_v24 = vpack.c.bf16 %v13178_v25, %v13174_v10  ;;  %v13232_v28 = vmul.f32 %v14929_v36, %v13027_v4 }
 0x782   : > { %v13236_v43 = vmul.f32 %v13145_v30, %v14928_v26  ;;  %v13249_v6 = vmul.f32 %v13135_v39, %v14928_v26  ;;  %v13275_v26 = vmul.f32 %v12259_v2, %v13096_v11  ;;  %v13279_v59 = vmul.f32 %v12259_v2, %v13145_v30 }
 0x783   : > { %v13283_v47 = vmul.f32 %v12259_v2, %v13135_v39  ;;  %v13327_v35 = vmul.f32 %v12309_v63, %v13135_v39  ;;  %v13335_v62 = vmul.f32 %v12259_v2, %v13055_v57 }
 0x784   : > { %14933 = vst [vmem:[#allocation46_spill] sm:$0xff] %v13279_v59  ;;  %v7291_v59 = vld [vmem:[%s11308_s26 + $0x70] sm:$0xff] }
 0x785   : > { %10759 = vrot.lane.b32.xlu1 %v10758_v55, %s11101_s6  ;;  %10774 = vrot.lane.b32.xlu0 %v14930_v0, %s11102_s5  ;;  %v13255_v55 = vmul.f32 %v14929_v36, %v13023_v51  ;;  %v13259_v0 = vmul.f32 %v12259_v2, %v13027_v4  ;;  %14934 = vst [vmem:[#allocation45_spill] sm:$0xff] %v13283_v47 }
 0x786   : > { %9988 = vmatpush3.bf16.xpose.msk.msra.mxu0 %vm11587_vm1, %v9983_v1  ;;  %v13293_v1 = vmul.f32 %v12309_v63, %v13023_v51  ;;  %v13331_v51 = vmul.f32 %v12259_v2, %v13065_v14  ;;  %v13357_v18 = vmul.f32 %v7291_v59, %v13125_v49  ;;  %v13379_v59 = vmul.f32 %v13115_v40, %v7292_v52  ;;  %v14940_v2 = vld [vmem:[#allocation24_spill] sm:$0xff] }
 0x787   : > { %14931 = vst [vmem:[#allocation42_spill] sm:$0xff] %v13259_v0  ;;  %9991 = vmatprep.subr.msk.bf16.mxu0 %vm11587_vm1, %v9989_v24  ;;  %v13307_v0 = vmul.f32 %v12309_v63, %v13055_v57  ;;  %v692_v4 = vmul.f32 1.442695, %v14940_v2  ;;  %v14941_v52 = vpack.i.bf16 %v13170_v32, %v13163_v9  ;;  %v13408_v40 = vmul.f32 %v14929_v36, %v13096_v11 }
 0x788   : > { %14936 = vst [vmem:[#allocation47_spill] sm:$0xff] %v13293_v1  ;;  %v7287_v1 = vld [vmem:[%s11308_s26 + $0x50] sm:$0xff]  ;;  %v13436_v32 = vmul.f32 %v14929_v36, %v13135_v39  ;;  %v14946_v39 = vpack.i.bf16 %v13249_v6, %v13236_v43 }
 0x789   : > { %10769 = vrot.lane.b32.xlu1 %v10768_v45, %s11101_s6  ;;  %10779 = vrot.lane.b32.xlu0 %v10778_v19, %s11102_s5  ;;  %v13317_v19 = vmul.f32 %v12309_v63, %v13096_v11  ;;  %v13321_v45 = vmul.f32 %v12309_v63, %v13145_v30  ;;  %v9995_v63 = vpack.c.bf16 %v13255_v55, %v13232_v28  ;;  %10940 = vpow2.f32 %v692_v4 }
 0x78a   : > { %v13354_v47 = vmul.f32 %v7287_v1, %v13045_v54  ;;  %v13373_v54 = vmul.f32 %v14929_v36, %v13055_v57  ;;  %v7290_v1 = vld [vmem:[%s11308_s26 + $0x68] sm:$0xff]  ;;  %v13404_v57 = vmul.f32 %v14929_v36, %v13106_v5  ;;  %v14944_v5 = vpack.i.bf16 %v13215_v7, %v13209_v17 }
 0x78b   : > { %14939 = vst [vmem:[#allocation27_spill] sm:$0xff] %v13317_v19  ;;  %v7288_v19 = vld [vmem:[%s11308_s26 + $0x58] sm:$0xff]  ;;  %v13432_v11 = vmul.f32 %v14929_v36, %v13145_v30  ;;  %v3888_v30 = vmul.f32 1.442695, %v12962_v37  ;;  %v14951_v37 = vmov 5  }
 0x78c   : > { %v13376_v49 = vmul.f32 %v13030_v29, %v7288_v19  ;;  %v13392_v29 = vmul.f32 %v13070_v53, %v7290_v1  ;;  %v14942_v53 = vpack.i.bf16 %v13186_v12, %v13182_v34  ;;  %v14943_v19 = vpack.i.bf16 %v13200_v41, %v13196_v3 }
 0x78d   : > { %4869 = vrot.lane.b32.xlu1 %v13203_v23, %s11101_s6  ;;  %4875 = vrot.lane.b32.xlu0 %v13226_v61, %s11101_s6  ;;  %v10007_v9 = vpack.c.bf16 %v13408_v40, %v13404_v57  ;;  %v14945_v12 = vpack.i.bf16 %v13223_v31, %v13219_v22  ;;  %v10013_v7 = vpack.c.bf16 %v13436_v32, %v13432_v11  ;;  %v14947_v22 = vld [vmem:[#allocation25_spill] sm:$0xff]  ;;  %10942 = vpow2.f32 %v3888_v30 }
 0x78e   : > { %9994 = vmatpush3.bf16.xpose.msk.msra.mxu0 %vm11587_vm1, %v9989_v24  ;;  %v13369_v24 = vmul.f32 %v14929_v36, %v13065_v14  ;;  %v14948_v36 = vmov 2  }
 0x78f   : > { %9997 = vmatprep.subr.msk.bf16.mxu0 %vm11587_vm1, %v9995_v63 }
 0x790   : > { %v10001_v14 = vpack.c.bf16 %v13373_v54, %v13369_v24 }
 0x791   : > { %4871 = vrot.lane.b32.xlu1 %v13354_v47, %s11101_s6  ;;  %4879 = vrot.lane.b32.xlu0 %v13357_v18, %s11101_s6 }
 0x793   : > { %v13438_v34 = vpop.eup %10940 }
 0x795   : > { %4873 = vrot.lane.b32.xlu1 %v13376_v49, %s11101_s6  ;;  %4881 = vrot.lane.b32.xlu0 %v13379_v59, %s11101_s6 }
 0x796   : > { %10000 = vmatpush3.bf16.xpose.msk.msra.mxu0 %vm11587_vm1, %v9995_v63 }
 0x797   : > { %10003 = vmatprep.subr.msk.bf16.mxu0 %vm11587_vm1, %v10001_v14  ;;  %v13476_v6 = vpop.eup %10942 }
 0x799   : > { %4877 = vrot.lane.b32.xlu1 %v13392_v29, %s11101_s6  ;;  %10794 = vrot.lane.b32.xlu0 %v14941_v52, %s11102_s5 }
 0x79d   : > { %10784 = vrot.lane.b32.xlu1 %v14942_v53, %s11102_s5  ;;  %10804 = vrot.lane.b32.xlu0 %v14943_v19, %s11102_s5 }
 0x79e   : > { %10006 = vmatpush3.bf16.xpose.msk.msra.mxu0 %vm11587_vm1, %v10001_v14 }
 0x79f   : > { %10009 = vmatprep.subr.msk.bf16.mxu0 %vm11587_vm1, %v10007_v9 }
 0x7a1   : > { %10789 = vrot.lane.b32.xlu1 %v14944_v5, %s11102_s5  ;;  %5540 = vrot.lane.b32.xlu0 %v13025_v27, %s11102_s5 }
 0x7a5   : > { %10799 = vrot.lane.b32.xlu1 %v14945_v12, %s11102_s5  ;;  %1238 = vperm.xlu0 %10813, %v13438_v34  }
 0x7a6   : > { %10012 = vmatpush3.bf16.xpose.msk.msra.mxu0 %vm11587_vm1, %v10007_v9 }
 0x7a7   : > { %10015 = vmatprep.subr.msk.bf16.mxu0 %vm11587_vm1, %v10013_v7 }
 0x7a9   : > { %10809 = vrot.lane.b32.xlu1 %v14946_v39, %s11102_s5  ;;  %10816 = vset.pattern.permute.xlu0 %v14899_v21 }
 0x7aa   : > { %1254 = vperm.xlu0 %10816, %v14947_v22  }
 0x7ad   : > { %5542 = vrot.lane.b32.xlu1 %v13203_v23, %s11102_s5 }
 0x7ae   : > { %10018 = vmatpush3.bf16.xpose.msk.msra.mxu0 %vm11587_vm1, %v10013_v7  ;;  %5544 = vrot.lane.b32.xlu0 %v13354_v47, %s11102_s5 }
 0x7af   : > { %10818 = vset.pattern.permute.xlu0 %v14948_v36 }
 0x7b1   : > { %1243 = vperm.xlu1 %10814, %v13438_v34  }
 0x7b2   : > { %5548 = vrot.lane.b32.xlu0 %v13226_v61, %s11102_s5 }
 0x7b5   : > { %8908 = vmatmul.mubr.msk.f32.vlgmr.msra.gmra.mrb[68].mxu0 %vm1050_vm15, %v13203_v23  ;;  %10815 = vset.pattern.permute.xlu1 %v14901_v42  ;;  %v14949_v42 = vmov 3  }
 0x7b6   : > { %8910 = vmatprep.mubr.msk.f32.mxu0 %vm1050_vm15, %v13354_v47  ;;  %1249 = vperm.xlu1 %10815, %v14947_v22  }
 0x7b7   : > { %5552 = vrot.lane.b32.xlu0 %v13357_v18, %s11102_s5 }
 0x7b9   : > { %8911 = vmatmul.mubr.msk.f32.gmra.mrb[70].mxu0 %vm1050_vm15, %v13376_v49 }
 0x7ba   : > { %4457 = vperm.xlu1 %10815, %v13476_v6   ;;  %8913 = vmatprep.mubr.msk.f32.mxu0 %vm1050_vm15, %v13226_v61 }
 0x7bb   : > { %1904 = vperm.xlu0 %10818, %v13438_v34  }
 0x7bd   : > { %8914 = vmatmul.mubr.msk.f32.gmra.mrb[72].mxu0 %vm1050_vm15, %v13392_v29 }
 0x7be   : > { %10817 = vset.pattern.permute.xlu1 %v14899_v21  ;;  %8916 = vmatprep.mubr.msk.f32.mxu0 %vm1050_vm15, %v13357_v18  ;;  %v14950_v21 = vmov 4  }
 0x7bf   : > { %10821 = vset.pattern.permute.xlu0 %v14949_v42  ;;  %4462 = vperm.xlu1 %10817, %v13476_v6  }
 0x7c0   : > { %1920 = vperm.xlu0 %10821, %v14947_v22  }
 0x7c1   : > { %8917 = vmatmul.mubr.msk.f32.gmra.mrb[74].mxu0 %vm1050_vm15, %v13379_v59 }
 0x7c3   : > { %5546 = vrot.lane.b32.xlu1 %v13376_v49, %s11102_s5 }
 0x7c4   : > { %10819 = vset.pattern.permute.xlu1 %v14949_v42 }
 0x7c7   : > { %5550 = vrot.lane.b32.xlu1 %v13392_v29, %s11102_s5 }
 0x7cb   : > { %5554 = vrot.lane.b32.xlu1 %v13379_v59, %s11102_s5 }
 0x7cf   : > { %1909 = vperm.xlu1 %10819, %v13438_v34  }
 0x7d3   : > { %10820 = vset.pattern.permute.xlu1 %v14948_v36 }
 0x7d4   : > { %1915 = vperm.xlu1 %10820, %v14947_v22  }
 0x7d8   : > { %5115 = vperm.xlu1 %10820, %v13476_v6  }
 0x7dc   : > { %10822 = vset.pattern.permute.xlu1 %v14949_v42 }
 0x7dd   : > { %5120 = vperm.xlu1 %10822, %v13476_v6  }
 0x7de   : > { %4685 = vxpose.xlu0.b32.start [1/16] (narrow) %v13051_v13, 32 }
 0x7e1   : > { %10823 = vset.pattern.permute.xlu1 %v14950_v21 }
 0x7e2   : > { %4686 = vxpose.xlu0.b32.cont [2/16] (narrow) %v13041_v48, 32  ;;  %2584 = vperm.xlu1 %10823, %v13438_v34  }
 0x7e6   : > { %4687 = vxpose.xlu0.b32.cont [3/16] (narrow) %v13094_v16, 32  ;;  %10824 = vset.pattern.permute.xlu1 %v14951_v37 }
 0x7e7   : > { %v13513_v3 = vpop.permute.xlu0 %10734  ;;  %2589 = vperm.xlu1 %10824, %v13438_v34  }
 0x7e8   : > { %v10737_v41 = vunpack.i.h.bf16 %v13513_v3  ;;  %v10736_v17 = vunpack.i.l.bf16 %v13513_v3 }
 0x7ea   : > { %v10091_v13 = vpack.c.bf16 %v10737_v41, %v10736_v17  ;;  %4688 = vxpose.xlu0.b32.cont [4/16] (narrow) %v13077_v56, 32 }
 0x7eb   : > { %v13523_v48 = vpop.permute.xlu0 %10754  ;;  %v13525_v16 = vpop.permute.xlu1 %10739  ;;  %10825 = vset.pattern.permute.xlu1 %v14950_v21 }
 0x7ec   : > { %v10742_v31 = vunpack.i.h.bf16 %v13525_v16  ;;  %v10741_v43 = vunpack.i.l.bf16 %v13525_v16  ;;  %10093 = vmatprep.subr.msk.bf16.mxu0 %vm11587_vm1, %v10091_v13  ;;  %2595 = vperm.xlu1 %10825, %v14947_v22   ;;  %v14746_v12 = vunpack.i.h.bf16 %v13523_v48  ;;  %v14747_v7 = vunpack.i.l.bf16 %v13523_v48 }
 0x7ed   : > { %10096 = vmatpush3.bf16.xpose.msk.msra.mxu0 %vm11587_vm1, %v10091_v13 }
 0x7ee   : > { %v10097_v56 = vpack.c.bf16 %v10742_v31, %v10741_v43  ;;  %4689 = vxpose.xlu0.b32.cont [5/16] (narrow) %v13141_v50, 32 }
 0x7ef   : > { %v13540_v4 = vpop.permute.xlu0 %10764  ;;  %v13542_v63 = vpop.permute.xlu1 %10744 }
 0x7f0   : > { %v10747_v2 = vunpack.i.h.bf16 %v13542_v63  ;;  %v10746_v1 = vunpack.i.l.bf16 %v13542_v63  ;;  %10099 = vmatprep.subr.msk.bf16.mxu0 %vm11587_vm1, %v10097_v56  ;;  %10826 = vset.pattern.permute.xlu1 %v14951_v37  ;;  %v14741_v13 = vunpack.i.h.bf16 %v13540_v4 }
 0x7f1   : > { %2600 = vperm.xlu1 %10826, %v14947_v22  }
 0x7f2   : > { %4690 = vxpose.xlu0.b32.cont [6/16] (narrow) %v13133_v20, 32  ;;  %v10103_v52 = vpack.c.bf16 %v10747_v2, %v10746_v1 }
 0x7f3   : > { %v13551_v14 = vpop.permute.xlu1 %10749  ;;  %v13553_v50 = vpop.permute.xlu0 %4867 }
 0x7f4   : > { %14952 = vst [vmem:[#allocation21_spill] sm:$0xff] %v13553_v50  ;;  %9053 = vmatprep.mubr.msk.f32.mxu0 %vm1050_vm15, %v13553_v50  ;;  %v14752_v53 = vunpack.i.h.bf16 %v13551_v14  ;;  %v14753_v19 = vunpack.i.l.bf16 %v13551_v14 }
 0x7f5   : > { %10102 = vmatpush3.bf16.xpose.msk.msra.mxu0 %vm11587_vm1, %v10097_v56  ;;  %10827 = vset.pattern.permute.xlu1 %v14950_v21 }
 0x7f6   : > { %4691 = vxpose.xlu0.b32.cont [7/16] (narrow) %v13174_v10, 32  ;;  %10105 = vmatprep.subr.msk.bf16.mxu0 %vm11587_vm1, %v10103_v52  ;;  %v10109_v10 = vpack.c.bf16 %v14752_v53, %v14753_v19 }
 0x7f7   : > { %5788 = vperm.xlu1 %10827, %v13476_v6   ;;  %v13568_v20 = vpop.permute.xlu1 %10759 }
 0x7f8   : > { %v14740_v36 = vunpack.i.h.bf16 %v13568_v20 }
 0x7fa   : > { %4692 = vxpose.xlu0.b32.cont [8/16] (narrow) %v13178_v25, 32  ;;  %v13586_v25 = vpop.permute.xlu0 %10774 }
 0x7fb   : > { %10828 = vset.pattern.permute.xlu1 %v14951_v37  ;;  %v13574_v9 = vpop.permute.xlu1 %10769 }
 0x7fc   : > { %5793 = vperm.xlu1 %10828, %v13476_v6  }
 0x7fd   : > { %10108 = vmatpush3.bf16.xpose.msk.msra.mxu0 %vm11587_vm1, %v10103_v52 }
 0x7fe   : > { %4693 = vxpose.xlu0.b32.cont [9/16] (narrow) %v13232_v28, 32  ;;  %10111 = vmatprep.subr.msk.bf16.mxu0 %vm11587_vm1, %v10109_v10  ;;  %v10115_v28 = vpack.c.bf16 %v14746_v12, %v14747_v7  ;;  %v13599_v30 = vpop.permute.xlu0 %10779 }
 0x7ff   : > { %v13588_v5 = vpop.permute.xlu1 %4869  ;;  %v14750_v12 = vunpack.i.l.bf16 %v13599_v30 }
 0x800   : > { %14953 = vst [vmem:[#allocation13_spill] sm:$0xff] %v13588_v5 }
 0x802   : > { %4694 = vxpose.xlu0.b32.cont [10/16] (narrow) %v13255_v55, 32  ;;  %v14743_v55 = vunpack.i.l.bf16 %v13568_v20  ;;  %v13611_v21 = vpop.permute.xlu0 %4875 }
 0x803   : > { %v13593_v39 = vpop.permute.xlu1 %4871  ;;  %14956 = vst [vmem:[#allocation16_spill] sm:$0xff] %v13611_v21 }
 0x804   : > { %14954 = vst [vmem:[#allocation14_spill] sm:$0xff] %v13593_v39  ;;  %v10121_v37 = vpack.c.bf16 %v14740_v36, %v14743_v55 }
 0x805   : > { %10114 = vmatpush3.bf16.xpose.msk.msra.mxu0 %vm11587_vm1, %v10109_v10 }
 0x806   : > { %4695 = vxpose.xlu0.b32.cont [11/16] (narrow) %v13369_v24, 32  ;;  %10117 = vmatprep.subr.msk.bf16.mxu0 %vm11587_vm1, %v10115_v28  ;;  %v13626_v56 = vpop.permute.xlu0 %4879 }
 0x807   : > { %v13608_v42 = vpop.permute.xlu1 %4873  ;;  %14958 = vst [vmem:[#allocation18_spill] sm:$0xff] %v13626_v56 }
 0x808   : > { %14955 = vst [vmem:[#allocation15_spill] sm:$0xff] %v13608_v42 }
 0x80a   : > { %4696 = vxpose.xlu0.b32.cont [12/16] (narrow) %v13373_v54, 32  ;;  %v14742_v54 = vunpack.i.l.bf16 %v13540_v4 }
 0x80b   : > { %v13619_v24 = vpop.permute.xlu1 %4877 }
 0x80c   : > { %14957 = vst [vmem:[#allocation17_spill] sm:$0xff] %v13619_v24  ;;  %v10127_v52 = vpack.c.bf16 %v14741_v13, %v14742_v54  ;;  %v14751_v54 = vunpack.i.l.bf16 %v13586_v25 }
 0x80d   : > { %10120 = vmatpush3.bf16.xpose.msk.msra.mxu0 %vm11587_vm1, %v10115_v28  ;;  %v14744_v28 = vunpack.i.h.bf16 %v13574_v9 }
 0x80e   : > { %4697 = vxpose.xlu0.b32.cont [13/16] (narrow) %v13404_v57, 32  ;;  %10123 = vmatprep.subr.msk.bf16.mxu0 %vm11587_vm1, %v10121_v37  ;;  %v13640_v57 = vpop.permute.xlu0 %4881 }
 0x80f   : > { %v13633_v10 = vpop.permute.xlu1 %10784  ;;  %14959 = vst [vmem:[#allocation19_spill] sm:$0xff] %v13640_v57 }
 0x812   : > { %4698 = vxpose.xlu0.b32.cont [14/16] (narrow) %v13408_v40, 32  ;;  %v14745_v40 = vunpack.i.l.bf16 %v13574_v9  ;;  %v13651_v13 = vpop.permute.xlu0 %10794 }
 0x813   : > { %v13644_v36 = vpop.permute.xlu1 %10789  ;;  %14960 = vst [vmem:[#allocation20_spill] sm:$0xff] %v13651_v13 }
 0x815   : > { %10126 = vmatpush3.bf16.xpose.msk.msra.mxu0 %vm11587_vm1, %v10121_v37  ;;  %v10133_v37 = vpack.c.bf16 %v14744_v28, %v14745_v40  ;;  %v14749_v40 = vunpack.i.h.bf16 %v13599_v30 }
 0x816   : > { %4699 = vxpose.xlu0.b32.cont [15/16] (narrow) %v13432_v11, 32  ;;  %10129 = vmatprep.subr.msk.bf16.mxu0 %vm11587_vm1, %v10127_v52  ;;  %v14748_v11 = vunpack.i.h.bf16 %v13586_v25 }
 0x817   : > { %v13659_v55 = vpop.permute.xlu1 %10799 }
 0x818   : > { %14961 = vst [vmem:[#allocation26_spill] sm:$0xff] %v13659_v55  ;;  %v10211_v28 = vpack.c.bf16 %v14748_v11, %v14751_v54 }
 0x81a   : > { %4700 = vxpose.xlu0.b32.end [16/16] (narrow) %v13436_v32, 32  ;;  %v13661_v32 = vpop.permute.xlu0 %10804 }
 0x81b   : > { %v14985_v50 = vunpack.i.h.bf16 %v13661_v32 }
 0x81d   : > { %10132 = vmatpush3.bf16.xpose.msk.msra.mxu0 %vm11587_vm1, %v10127_v52  ;;  %v13671_v52 = vpop.permute.xlu1 %10809 }
 0x81e   : > { %10135 = vmatprep.subr.msk.bf16.mxu0 %vm11587_vm1, %v10133_v37  ;;  %v13677_v7 = vpop.permute.xlu0 %5540 }
 0x81f   : > { %14962 = vst [vmem:[#allocation22_spill] sm:$0xff] %v13677_v7 }
 0x821   : > { %v13681_v11 = vpop.permute.xlu1 %5542 }
 0x825   : > { %5359 = vxpose.xlu1.b32.start [1/16] (narrow) %v10736_v17, 32  ;;  %10138 = vmatpush3.bf16.xpose.msk.msra.mxu0 %vm11587_vm1, %v10133_v37  ;;  %v10217_v17 = vpack.c.bf16 %v14749_v40, %v14750_v12  ;;  %v1239_v37 = vpop.permute.xlu0 %1238  ;;  %v14755_v40 = vunpack.i.l.bf16 %v13633_v10 }
 0x826   : > { %10213 = vmatprep.subr.msk.bf16.mxu0 %vm11587_vm1, %v10211_v28  ;;  %v1241_v12 = vmul.f32 %v12166_v33, %v1239_v37 }
 0x829   : > { %5360 = vxpose.xlu1.b32.cont [2/16] (narrow) %v10737_v41, 32  ;;  %v14754_v41 = vunpack.i.h.bf16 %v13633_v10 }
 0x82b   : > { %v10223_v54 = vpack.c.bf16 %v14754_v41, %v14755_v40 }
 0x82c   : > { %9054 = vmatmul.mubr.msk.f32.vlgmr.msra.gmra.mrb[76].mxu0 %vm1050_vm15, %v13588_v5  ;;  %v14984_v5 = vunpack.i.l.bf16 %v13661_v32 }
 0x82d   : > { %5361 = vxpose.xlu1.b32.cont [3/16] (narrow) %v10741_v43, 32  ;;  %9056 = vmatprep.mubr.msk.f32.mxu0 %vm1050_vm15, %v13593_v39 }
 0x82e   : > { %10216 = vmatpush3.bf16.xpose.msk.msra.mxu0 %vm11587_vm1, %v10211_v28  ;;  %v1255_v28 = vpop.permute.xlu0 %1254 }
 0x82f   : > { %10219 = vmatprep.subr.msk.bf16.mxu0 %vm11587_vm1, %v10217_v17 }
 0x830   : > { %v1244_v3 = vpop.permute.xlu1 %1243  ;;  %9057 = vmatmul.mubr.msk.f32.gmra.mrb[78].mxu0 %vm1050_vm15, %v13608_v42 }
 0x831   : > { %5362 = vxpose.xlu1.b32.cont [4/16] (narrow) %v10742_v31, 32  ;;  %9059 = vmatprep.mubr.msk.f32.mxu0 %vm1050_vm15, %v13611_v21  ;;  %v1246_v43 = vmul.f32 %v12171_v46, %v1244_v3  ;;  %v1257_v31 = vmul.f32 %v12171_v46, %v1255_v28  ;;  %v14963_v3 = vld [vmem:[#allocation12_spill] sm:$0xff]  ;;  %v14758_v28 = vunpack.i.l.bf16 %v13644_v36 }
 0x832   : > { %v13719_v53 = vsub.s32 7, %v14963_v3  ;;  %v13730_v40 = vpop.permute.xlu0 %5544 }
 0x833   : > { %v1247_v37 = vadd.f32 %v1246_v43, %v1241_v12 }
 0x834   : > { %9060 = vmatmul.mubr.msk.f32.gmra.mrb[80].mxu0 %vm1050_vm15, %v13619_v24 }
 0x835   : > { %5363 = vxpose.xlu1.b32.cont [5/16] (narrow) %v10746_v1, 32  ;;  %v1250_v16 = vpop.permute.xlu1 %1249  ;;  %9062 = vmatprep.mubr.msk.f32.mxu0 %vm1050_vm15, %v13626_v56  ;;  %v14757_v1 = vunpack.i.h.bf16 %v13644_v36 }
 0x836   : > { %v1252_v19 = vmul.f32 %v12166_v33, %v1250_v16  ;;  %10222 = vmatpush3.bf16.xpose.msk.msra.mxu0 %vm11587_vm1, %v10217_v17  ;;  %v1609_v17 = vrot.slane %v1247_v37, %v13719_v53 }
 0x837   : > { %10225 = vmatprep.subr.msk.bf16.mxu0 %vm11587_vm1, %v10223_v54  ;;  %v10229_v16 = vpack.c.bf16 %v14757_v1, %v14758_v28 }
 0x838   : > { %v1258_v41 = vadd.f32 %v1257_v31, %v1252_v19  ;;  %9063 = vmatmul.mubr.msk.f32.gmra.mrb[82].mxu0 %vm1050_vm15, %v13640_v57  ;;  %v14964_v31 = vunpack.i.l.bf16 %v13551_v14  ;;  %v14967_v57 = vld [vmem:[#allocation42_spill] sm:$0xff] }
 0x839   : > { %5364 = vxpose.xlu1.b32.cont [6/16] (narrow) %v10747_v2, 32  ;;  %v4458_v12 = vpop.permute.xlu1 %4457  ;;  %9199 = vmatprep.mubr.msk.f32.mxu0 %vm1050_vm15, %v13677_v7  ;;  %v1610_v7 = vmul.f32 0.0, %v1609_v17 }
 0x83a   : > { %v1617_v19 = vrot.slane %v1258_v41, %v13719_v53  ;;  %v4460_v37 = vmul.f32 %v12166_v33, %v4458_v12 }
 0x83c   : > { %v1618_v43 = vmul.f32 %v1617_v19, %v12787_v38  ;;  %v1619_v63 = vmul.f32 %v12785_v60, %v1617_v19  ;;  %v1620_v2 = vmul.f32 %v1617_v19, %v12794_v8  ;;  %v1621_v3 = vmul.f32 %v12789_v15, %v1617_v19  ;;  %v13750_v38 = vpop.permute.xlu0 %5548 }
 0x83d   : > { %5365 = vxpose.xlu1.b32.cont [7/16] (narrow) %v14964_v31, 32  ;;  %v14766_v15 = vunpack.i.l.bf16 %v13651_v13 }
 0x83e   : > { %10228 = vmatpush3.bf16.xpose.msk.msra.mxu0 %vm11587_vm1, %v10223_v54  ;;  %v4463_v41 = vpop.permute.xlu1 %4462  ;;  %v1622_v8 = vadd.f32 %v1618_v43, %v1610_v7  ;;  %v14965_v54 = vunpack.i.h.bf16 %v13551_v14  ;;  %v1623_v19 = vadd.f32 %v1619_v63, %v1610_v7  ;;  %v1624_v31 = vadd.f32 %v1620_v2, %v1610_v7  ;;  %v13767_v43 = vld [vmem:[%s11300_s24 + $0x100] sm:$0xff] }
 0x83f   : > { %v4465_v1 = vmul.f32 %v12171_v46, %v4463_v41  ;;  %10231 = vmatprep.subr.msk.bf16.mxu0 %vm11587_vm1, %v10229_v16  ;;  %v1625_v28 = vadd.f32 %v1621_v3, %v1610_v7  ;;  %v14966_v41 = vld [vmem:[#allocation44_spill] sm:$0xff]  ;;  %v14970_v7 = vunpack.i.h.bf16 %v13651_v13  ;;  %v10247_v13 = vpack.c.bf16 %v14985_v50, %v14984_v5 }
 0x840   : > { %v14968_v56 = vpack.i.bf16 %v14966_v41, %v14967_v57  ;;  %v13770_v14 = vld [vmem:[%s11300_s24 + $0x120] sm:$0xff]  ;;  %v13777_v2 = vpop.permute.xlu0 %5552  ;;  %v4223_v5 = vmul.f32 %v13767_v43, %v12171_v46 }
 0x841   : > { %v4466_v17 = vadd.f32 %v4465_v1, %v4460_v37  ;;  %5366 = vxpose.xlu1.b32.cont [8/16] (narrow) %v14965_v54, 32  ;;  %v14969_v1 = vmov 6   ;;  %v10235_v63 = vpack.c.bf16 %v14970_v7, %v14766_v15  ;;  %v4215_v37 = vmul.f32 %v13767_v43, %v12166_v33 }
 0x842   : > { %v13760_v12 = vpop.permute.xlu1 %5546  ;;  %v10811_v43 = vunpack.i.l.bf16 %v13671_v52 }
 0x843   : > { %10830 = vrot.lane.b32.xlu0 %v14968_v56, %s11100_s9  ;;  %v4471_v24 = vmul.f32 %v4466_v17, %v1622_v8  ;;  %v4472_v21 = vmul.f32 %v4466_v17, %v1623_v19  ;;  %v4473_v60 = vmul.f32 %v4466_v17, %v1624_v31  ;;  %v4474_v42 = vmul.f32 %v4466_v17, %v1625_v28  ;;  %v14974_v19 = vld [vmem:[#allocation45_spill] sm:$0xff]  ;;  %v14975_v31 = vld [vmem:[#allocation46_spill] sm:$0xff] }
 0x844   : > { %10869 = vset.pattern.permute.xlu0 %v14969_v1  ;;  %v14971_v56 = vunpack.i.l.bf16 %v13523_v48  ;;  %v4216_v8 = vmul.f32 %v13770_v14, %v12166_v33  ;;  %v14972_v17 = vpack.i.bf16 %v13275_v26, %v13267_v44  ;;  %v1905_v54 = vpop.permute.xlu0 %1904  ;;  %v14976_v41 = vpack.i.bf16 %v14974_v19, %v14975_v31  ;;  %v14979_v19 = vld [vmem:[#allocation48_spill] sm:$0xff] }
 0x845   : > { %v10019_v57 = vpack.c.bf16 %v4472_v21, %v4471_v24  ;;  %v10023_v28 = vpack.c.bf16 %v4474_v42, %v4473_v60  ;;  %v7261_v42 = vld [vmem:[%s11300_s24 + $0x140] sm:$0xff]  ;;  %v14764_v24 = vunpack.i.h.bf16 %v13659_v55  ;;  %v14973_v60 = vunpack.i.h.bf16 %v13523_v48 }
 0x846   : > { %5367 = vxpose.xlu1.b32.cont [9/16] (narrow) %v14971_v56, 32  ;;  %10234 = vmatpush3.bf16.xpose.msk.msra.mxu0 %vm11587_vm1, %v10229_v16  ;;  %v13783_v3 = vpop.permute.xlu1 %5550  ;;  %v13797_v21 = vld [vmem:[%s11300_s24 + $0x160] sm:$0xff]  ;;  %v14765_v16 = vunpack.i.l.bf16 %v13659_v55  ;;  %v13805_v26 = vpack.c.bf16 %v4216_v8, %v4215_v37  ;;  %v4217_v7 = vmul.f32 %v7261_v42, %v12166_v33 }
 0x847   : > { %10840 = vrot.lane.b32.xlu0 %v14972_v17, %s11100_s9  ;;  %10237 = vmatprep.subr.msk.bf16.mxu0 %vm11587_vm1, %v10235_v63  ;;  %v4218_v48 = vmul.f32 %v13797_v21, %v12166_v33  ;;  %v13821_v37 = vld [vmem:[%s11300_s24 + $0x180] sm:$0xff] }
 0x848   : > { %10020 = vmatprep.subr.bf16.mxu1 %v10019_v57  ;;  %v10241_v56 = vpack.c.bf16 %v14764_v24, %v14765_v16  ;;  %v13824_v8 = vld [vmem:[%s11300_s24 + $0x1a0] sm:$0xff] }
 0x849   : > { %10022 = vmatpush3.bf16.msra.mxu1 %v10019_v57  ;;  %v14977_v57 = vunpack.i.l.bf16 %v13568_v20 }
 0x84a   : > { %5368 = vxpose.xlu1.b32.cont [10/16] (narrow) %v14973_v60, 32  ;;  %10024 = vmatprep.subr.bf16.mxu1 %v10023_v28  ;;  %v13803_v44 = vpop.permute.xlu1 %5554  ;;  %v14978_v60 = vld [vmem:[#allocation47_spill] sm:$0xff] }
 0x84b   : > { %10845 = vrot.lane.b32.xlu0 %v14976_v41, %s11100_s9  ;;  %v14980_v31 = vpack.i.bf16 %v14978_v60, %v14979_v19  ;;  %v13835_v41 = vpack.c.bf16 %v4218_v48, %v4217_v7  ;;  %v4220_v60 = vmul.f32 %v13824_v8, %v12166_v33  ;;  %v1921_v48 = vpop.permute.xlu0 %1920  ;;  %v14982_v19 = vld [vmem:[#allocation49_spill] sm:$0xff] }
 0x84c   : > { %v14983_v7 = vpack.i.bf16 %v13307_v0, %v14982_v19  ;;  %v14986_v0 = vunpack.i.l.bf16 %v13540_v4 }
 0x84d   : > { %10026 = vmatpush3.bf16.msra.mxu1 %v10023_v28  ;;  %v13838_v28 = vld [vmem:[%s11300_s24 + $0x1c0] sm:$0xff] }
 0x84e   : > { %5369 = vxpose.xlu1.b32.cont [11/16] (narrow) %v14977_v57, 32  ;;  %10240 = vmatpush3.bf16.xpose.msk.msra.mxu0 %vm11587_vm1, %v10235_v63  ;;  %v1910_v17 = vpop.permute.xlu1 %1909  ;;  %v13841_v57 = vld [vmem:[%s11300_s24 + $0x1e0] sm:$0xff]  ;;  %v4219_v63 = vmul.f32 %v13821_v37, %v12166_v33  ;;  %v4221_v16 = vmul.f32 %v13838_v28, %v12166_v33 }
 0x84f   : > { %10028 = vmatprep.subr.bf16.mxu1 %v13805_v26  ;;  %10850 = vrot.lane.b32.xlu0 %v14980_v31, %s11100_s9  ;;  %v1912_v24 = vmul.f32 %v12171_v46, %v1910_v17  ;;  %v14981_v31 = vunpack.i.h.bf16 %v13568_v20  ;;  %v1907_v17 = vmul.f32 %v12166_v33, %v1905_v54  ;;  %v4222_v15 = vmul.f32 %v13841_v57, %v12166_v33 }
 0x850   : > { %10243 = vmatprep.subr.msk.bf16.mxu0 %vm11587_vm1, %v10241_v56  ;;  %8928 = vmatmul.mubr.msk.f32.vlgmr.msra.gmra.mrb[60].mxu1 %vm1050_vm15, %v13203_v23  ;;  %v13871_v39 = vpack.c.bf16 %v4220_v60, %v4219_v63  ;;  %v14987_v63 = vld [vmem:[#allocation27_spill] sm:$0xff]  ;;  %v14988_v60 = vld [vmem:[#allocation50_spill] sm:$0xff] }
 0x851   : > { %8930 = vmatprep.mubr.msk.f32.mxu1 %vm1050_vm15, %v13354_v47  ;;  %10030 = vmatpush3.bf16.msra.mxu1 %v13805_v26  ;;  %v1913_v55 = vadd.f32 %v1912_v24, %v1907_v17  ;;  %v13884_v24 = vpack.c.bf16 %v4222_v15, %v4221_v16  ;;  %v4226_v17 = vmul.f32 %v13797_v21, %v12171_v46 }
 0x852   : > { %5370 = vxpose.xlu1.b32.cont [12/16] (narrow) %v14981_v31, 32  ;;  %10032 = vmatprep.subr.bf16.mxu1 %v13835_v41  ;;  %v1923_v31 = vmul.f32 %v12171_v46, %v1921_v48  ;;  %v4224_v48 = vmul.f32 %v13770_v14, %v12171_v46  ;;  %v14990_v14 = vunpack.i.h.bf16 %v13540_v4  ;;  %v14993_v21 = vpack.i.bf16 %v13327_v35, %v13321_v45  ;;  %v14995_v4 = vld [vmem:[#allocation33_spill] sm:$0xff] }
 0x853   : > { %10855 = vrot.lane.b32.xlu0 %v14983_v7, %s11100_s9  ;;  %v1916_v20 = vpop.permute.xlu1 %1915  ;;  %v14989_v7 = vpack.i.bf16 %v14987_v63, %v14988_v60  ;;  %v2291_v15 = vrot.slane %v1913_v55, %v13719_v53  ;;  %v14991_v55 = vld [vmem:[#allocation32_spill] sm:$0xff] }
 0x854   : > { %v1918_v54 = vmul.f32 %v12166_v33, %v1916_v20  ;;  %8931 = vmatmul.mubr.msk.f32.gmra.mrb[62].mxu1 %vm1050_vm15, %v13376_v49  ;;  %v10812_v20 = vunpack.i.h.bf16 %v13671_v52 }
 0x855   : > { %8933 = vmatprep.mubr.msk.f32.mxu1 %vm1050_vm15, %v13226_v61  ;;  %10034 = vmatpush3.bf16.msra.mxu1 %v13835_v41  ;;  %v2292_v60 = vmul.f32 0.0, %v2291_v15 }
 0x856   : > { %5371 = vxpose.xlu1.b32.cont [13/16] (narrow) %v14986_v0, 32  ;;  %v1924_v19 = vadd.f32 %v1923_v31, %v1918_v54  ;;  %10246 = vmatpush3.bf16.xpose.msk.msra.mxu0 %vm11587_vm1, %v10241_v56  ;;  %v4225_v56 = vmul.f32 %v7261_v42, %v12171_v46  ;;  %v14992_v31 = vld [vmem:[#allocation29_spill] sm:$0xff]  ;;  %v14994_v0 = vld [vmem:[#allocation34_spill] sm:$0xff]  ;;  %v10253_v35 = vpack.c.bf16 %v10812_v20, %v10811_v43 }
 0x857   : > { %10860 = vrot.lane.b32.xlu0 %v14989_v7, %s11100_s9  ;;  %10249 = vmatprep.subr.msk.bf16.mxu0 %vm11587_vm1, %v10247_v13  ;;  %v5116_v50 = vpop.permute.xlu1 %5115 }
 0x858   : > { %v2299_v16 = vrot.slane %v1924_v19, %v13719_v53  ;;  %8934 = vmatmul.mubr.msk.f32.gmra.mrb[64].mxu1 %vm1050_vm15, %v13392_v29  ;;  %10036 = vmatprep.subr.bf16.mxu1 %v13871_v39  ;;  %v5118_v45 = vmul.f32 %v12166_v33, %v5116_v50 }
 0x859   : > { %8936 = vmatprep.mubr.msk.f32.mxu1 %vm1050_vm15, %v13357_v18  ;;  %10038 = vmatpush3.bf16.msra.mxu1 %v13871_v39 }
 0x85a   : > { %5372 = vxpose.xlu1.b32.cont [14/16] (narrow) %v14990_v14, 32  ;;  %v2300_v42 = vmul.f32 %v2299_v16, %v14991_v55  ;;  %v2301_v54 = vmul.f32 %v14992_v31, %v2299_v16  ;;  %10040 = vmatprep.subr.bf16.mxu1 %v13884_v24  ;;  %v2302_v19 = vmul.f32 %v2299_v16, %v14994_v0  ;;  %v14996_v31 = vunpack.i.l.bf16 %v13574_v9 }
 0x85b   : > { %10865 = vrot.lane.b32.xlu0 %v14993_v21, %s11100_s9  ;;  %v2303_v63 = vmul.f32 %v14995_v4, %v2299_v16  ;;  %v13922_v14 = vpack.c.bf16 %v4224_v48, %v4223_v5  ;;  %v13924_v55 = vpack.c.bf16 %v4226_v17, %v4225_v56  ;;  %v4227_v16 = vmul.f32 %v13821_v37, %v12171_v46 }
 0x85c   : > { %8937 = vmatmul.mubr.msk.f32.gmra.mrb[66].mxu1 %vm1050_vm15, %v13379_v59  ;;  %v5121_v7 = vpop.permute.xlu1 %5120  ;;  %v4228_v5 = vmul.f32 %v13824_v8, %v12171_v46  ;;  %v2304_v48 = vadd.f32 %v2300_v42, %v2292_v60  ;;  %v2305_v56 = vadd.f32 %v2301_v54, %v2292_v60  ;;  %v2306_v50 = vadd.f32 %v2302_v19, %v2292_v60 }
 0x85d   : > { %v5123_v15 = vmul.f32 %v12171_v46, %v5121_v7  ;;  %10042 = vmatpush3.bf16.msra.mxu1 %v13884_v24  ;;  %v2307_v21 = vadd.f32 %v2303_v63, %v2292_v60 }
 0x85e   : > { %5373 = vxpose.xlu1.b32.cont [15/16] (narrow) %v14996_v31, 32  ;;  %10252 = vmatpush3.bf16.xpose.msk.msra.mxu0 %vm11587_vm1, %v10247_v13  ;;  %v14997_v13 = vunpack.i.h.bf16 %v13574_v9  ;;  %v13949_v54 = vpack.c.bf16 %v4228_v5, %v4227_v16  ;;  %v4230_v9 = vmul.f32 %v13841_v57, %v12171_v46  ;;  %v14998_v16 = vmov 7  }
 0x85f   : > { %v5124_v17 = vadd.f32 %v5123_v15, %v5118_v45  ;;  %6213 = vrot.lane.b32.xlu0 %v13025_v27, %s11100_s9  ;;  %10255 = vmatprep.subr.msk.bf16.mxu0 %vm11587_vm1, %v10253_v35  ;;  %v4229_v27 = vmul.f32 %v13838_v28, %v12171_v46 }
 0x860   : > { %10044 = vmatprep.subr.bf16.mxu1 %v13922_v14 }
 0x861   : > { %v2585_v37 = vpop.permute.xlu1 %2584  ;;  %v5129_v0 = vmul.f32 %v5124_v17, %v2304_v48  ;;  %v5130_v4 = vmul.f32 %v5124_v17, %v2305_v56  ;;  %v5131_v8 = vmul.f32 %v5124_v17, %v2306_v50  ;;  %v5132_v42 = vmul.f32 %v5124_v17, %v2307_v21  ;;  %10046 = vmatpush3.bf16.msra.mxu1 %v13922_v14  ;;  %v14999_v17 = vld [vmem:[#allocation40_spill] sm:$0xff]  ;;  %v15000_v21 = vld [vmem:[#allocation35_spill] sm:$0xff] }
 0x862   : > { %5374 = vxpose.xlu1.b32.end [16/16] (narrow) %v14997_v13, 32  ;;  %10048 = vmatprep.subr.bf16.mxu1 %v13924_v55  ;;  %v2587_v28 = vmul.f32 %v12166_v33, %v2585_v37  ;;  %v15001_v37 = vld [vmem:[#allocation41_spill] sm:$0xff] }
 0x863   : > { %6217 = vrot.lane.b32.xlu0 %v13354_v47, %s11100_s9  ;;  %v13958_v19 = vpack.c.bf16 %v5130_v4, %v5129_v0  ;;  %v13960_v63 = vpack.c.bf16 %v5132_v42, %v5131_v8  ;;  %v13970_v47 = vpack.c.bf16 %v4230_v9, %v4229_v27  ;;  %v15002_v4 = vld [vmem:[#allocation37_spill] sm:$0xff]  ;;  %v7255_v42 = vld [vmem:[%s11300_s24 + $0x110] sm:$0xff] }
 0x864   : > { %v7259_v27 = vld [vmem:[%s11300_s24 + $0x130] sm:$0xff] }
 0x865   : > { %10050 = vmatpush3.bf16.msra.mxu1 %v13924_v55 }
 0x866   : > { %10258 = vmatpush3.bf16.xpose.msk.msra.mxu0 %vm11587_vm1, %v10253_v35  ;;  %v2590_v60 = vpop.permute.xlu1 %2589  ;;  %10052 = vmatprep.subr.bf16.mxu1 %v13949_v54 }
 0x867   : > { %v2592_v7 = vmul.f32 %v12171_v46, %v2590_v60  ;;  %6221 = vrot.lane.b32.xlu0 %v13226_v61, %s11100_s9 }
 0x869   : > { %v2593_v57 = vadd.f32 %v2592_v7, %v2587_v28  ;;  %10054 = vmatpush3.bf16.msra.mxu1 %v13949_v54  ;;  %v5508_v7 = vmul.f32 %v7255_v42, %v12166_v33 }
 0x86a   : > { %10056 = vmatprep.subr.bf16.mxu1 %v13970_v47 }
 0x86b   : > { %6225 = vrot.lane.b32.xlu0 %v13357_v18, %s11100_s9  ;;  %v2596_v35 = vpop.permute.xlu1 %2595  ;;  %v2971_v31 = vrot.slane %v2593_v57, %v13719_v53  ;;  %v5509_v57 = vmul.f32 %v7259_v27, %v12166_v33 }
 0x86c   : > { %v2598_v45 = vmul.f32 %v12166_v33, %v2596_v35 }
 0x86d   : > { %9200 = vmatmul.mubr.msk.f32.vlgmr.msra.gmra.mrb[84].mxu0 %vm1050_vm15, %v13681_v11  ;;  %10058 = vmatpush3.bf16.msra.mxu1 %v13970_v47  ;;  %v2972_v56 = vmul.f32 0.0, %v2971_v31  ;;  %v14009_v31 = vpack.c.bf16 %v5509_v57, %v5508_v7 }
 0x86e   : > { %9202 = vmatprep.mubr.msk.f32.mxu0 %vm1050_vm15, %v13730_v40  ;;  %10060 = vmatprep.subr.bf16.mxu1 %v13805_v26 }
 0x86f   : > { %3264 = vperm.xlu0 %10869, %v13438_v34   ;;  %10300 = vmatprep.subr.bf16.mxu0 %v14009_v31 }
 0x870   : > { %v2601_v61 = vpop.permute.xlu1 %2600  ;;  %10302 = vmatpush3.bf16.msra.mxu0 %v14009_v31 }
 0x871   : > { %v2603_v18 = vmul.f32 %v12171_v46, %v2601_v61  ;;  %9203 = vmatmul.mubr.msk.f32.gmra.mrb[86].mxu0 %vm1050_vm15, %v13760_v12 }
 0x872   : > { %9205 = vmatprep.mubr.msk.f32.mxu0 %vm1050_vm15, %v13750_v38 }
 0x873   : > { %v2604_v15 = vadd.f32 %v2603_v18, %v2598_v45  ;;  %10872 = vset.pattern.permute.xlu0 %v14998_v16 }
 0x874   : > { %3280 = vperm.xlu0 %10872, %v14947_v22  }
 0x875   : > { %v2979_v5 = vrot.slane %v2604_v15, %v13719_v53  ;;  %9206 = vmatmul.mubr.msk.f32.gmra.mrb[88].mxu0 %vm1050_vm15, %v13783_v3  ;;  %v7263_v15 = vld [vmem:[%s11300_s24 + $0x150] sm:$0xff] }
 0x876   : > { %v5789_v48 = vpop.permute.xlu1 %5788  ;;  %9208 = vmatprep.mubr.msk.f32.mxu0 %vm1050_vm15, %v13777_v2 }
 0x877   : > { %v2980_v50 = vmul.f32 %v2979_v5, %v14999_v17  ;;  %v2981_v13 = vmul.f32 %v15000_v21, %v2979_v5  ;;  %v2982_v0 = vmul.f32 %v2979_v5, %v15001_v37  ;;  %v2983_v8 = vmul.f32 %v15002_v4, %v2979_v5  ;;  %v7267_v5 = vld [vmem:[%s11300_s24 + $0x170] sm:$0xff] }
 0x878   : > { %v5791_v45 = vmul.f32 %v12166_v33, %v5789_v48  ;;  %v5511_v21 = vmul.f32 %v7267_v5, %v12166_v33  ;;  %v14025_v37 = vld [vmem:[%s11300_s24 + $0x190] sm:$0xff] }
 0x879   : > { %9209 = vmatmul.mubr.msk.f32.gmra.mrb[90].mxu0 %vm1050_vm15, %v13803_v44  ;;  %v2984_v9 = vadd.f32 %v2980_v50, %v2972_v56  ;;  %v2985_v60 = vadd.f32 %v2981_v13, %v2972_v56  ;;  %v2986_v28 = vadd.f32 %v2982_v0, %v2972_v56  ;;  %v2987_v35 = vadd.f32 %v2983_v8, %v2972_v56  ;;  %v14028_v0 = vld [vmem:[%s11300_s24 + $0x1b0] sm:$0xff] }
 0x87a   : > { %v5510_v50 = vmul.f32 %v7263_v15, %v12166_v33  ;;  %v15003_v56 = vpack.i.bf16 %v13335_v62, %v13331_v51  ;;  %v5512_v62 = vmul.f32 %v14025_v37, %v12166_v33  ;;  %v5513_v51 = vmul.f32 %v14028_v0, %v12166_v33 }
 0x87b   : > { %v5794_v61 = vpop.permute.xlu1 %5793 }
 0x87c   : > { %v5796_v18 = vmul.f32 %v12171_v46, %v5794_v61  ;;  %v14022_v48 = vpack.c.bf16 %v5511_v21, %v5510_v50  ;;  %v5516_v50 = vmul.f32 %v7255_v42, %v12171_v46  ;;  %v5517_v21 = vmul.f32 %v7259_v27, %v12171_v46 }
 0x87d   : > { %v5518_v42 = vmul.f32 %v7263_v15, %v12171_v46  ;;  %v5519_v27 = vmul.f32 %v7267_v5, %v12171_v46  ;;  %v15008_v5 = vld [vmem:[#allocation55_spill] sm:$0xff] }
 0x87e   : > { %v5797_v17 = vadd.f32 %v5796_v18, %v5791_v45  ;;  %10304 = vmatprep.subr.bf16.mxu0 %v14022_v48 }
 0x87f   : > { %10306 = vmatpush3.bf16.msra.mxu0 %v14022_v48 }
 0x880   : > { %10835 = vrot.lane.b32.xlu1 %v15003_v56, %s11100_s9  ;;  %v5802_v13 = vmul.f32 %v5797_v17, %v2984_v9  ;;  %v5803_v4 = vmul.f32 %v5797_v17, %v2985_v60  ;;  %v5804_v8 = vmul.f32 %v5797_v17, %v2986_v28  ;;  %v5805_v7 = vmul.f32 %v5797_v17, %v2987_v35  ;;  %v14045_v28 = vld [vmem:[%s11300_s24 + $0x1d0] sm:$0xff]  ;;  %v15004_v56 = vld [vmem:[#allocation51_spill] sm:$0xff] }
 0x881   : > { %10870 = vset.pattern.permute.xlu1 %v14998_v16  ;;  %v14042_v60 = vpack.c.bf16 %v5513_v51, %v5512_v62  ;;  %v14048_v35 = vld [vmem:[%s11300_s24 + $0x1f0] sm:$0xff]  ;;  %v5514_v61 = vmul.f32 %v14045_v28, %v12166_v33  ;;  %v15006_v51 = vld [vmem:[#allocation53_spill] sm:$0xff] }
 0x882   : > { %v14038_v9 = vpack.c.bf16 %v5803_v4, %v5802_v13  ;;  %v14040_v57 = vpack.c.bf16 %v5805_v7, %v5804_v8  ;;  %v15005_v4 = vld [vmem:[#allocation52_spill] sm:$0xff] }
 0x883   : > { %10308 = vmatprep.subr.bf16.mxu0 %v14042_v60 }
 0x884   : > { %6215 = vrot.lane.b32.xlu1 %v13203_v23, %s11100_s9  ;;  %v5515_v23 = vmul.f32 %v14048_v35, %v12166_v33  ;;  %10310 = vmatpush3.bf16.msra.mxu0 %v14042_v60 }
 0x886   : > { %v14058_v18 = vpack.c.bf16 %v5515_v23, %v5514_v61  ;;  %v15007_v23 = vld [vmem:[#allocation54_spill] sm:$0xff] }
 0x888   : > { %6219 = vrot.lane.b32.xlu1 %v13376_v49, %s11100_s9  ;;  %v8909_v45 = vpop.f32.mrb[68].mxu0  ;;  %10312 = vmatprep.subr.bf16.mxu0 %v14058_v18  ;;  %v14068_v49 = vpack.c.bf16 %v5517_v21, %v5516_v50 }
 0x889   : > { %v4385_v17 = vpop.f32.mrb[69].mxu0  ;;  %v4425_v8 = vmul.f32 %v8909_v45, %v15005_v4  ;;  %10314 = vmatpush3.bf16.msra.mxu0 %v14058_v18  ;;  %v14079_v45 = vpack.c.bf16 %v5519_v27, %v5518_v42 }
 0x88a   : > { %v4424_v13 = vmul.f32 %v15004_v56, %v4385_v17  ;;  %10316 = vmatprep.subr.bf16.mxu0 %v14068_v49 }
 0x88c   : > { %6223 = vrot.lane.b32.xlu1 %v13392_v29, %s11100_s9  ;;  %v8912_v7 = vpop.f32.mrb[70].mxu0  ;;  %8971 = vmatprep.mubr.f32.mxu1 %v4424_v13 }
 0x88d   : > { %v4395_v62 = vpop.f32.mrb[71].mxu0  ;;  %8972 = vmatmul.mubr.f32.vlgmr.msra.gmra.mrb[60].mxu1 %v4425_v8  ;;  %v4427_v29 = vmul.f32 %v8912_v7, %v15007_v23  ;;  %10318 = vmatpush3.bf16.msra.mxu0 %v14068_v49  ;;  %v15011_v7 = vunpack.i.h.bf16 %v13586_v25 }
 0x88e   : > { %v4426_v61 = vmul.f32 %v15006_v51, %v4395_v62  ;;  %10062 = vmatpush3.bf16.msra.mxu1 %v13805_v26  ;;  %10320 = vmatprep.subr.bf16.mxu0 %v14079_v45  ;;  %v15009_v26 = vunpack.i.l.bf16 %v13586_v25  ;;  %v15012_v62 = vld [vmem:[#allocation57_spill] sm:$0xff]  ;;  %v5521_v25 = vmul.f32 %v14028_v0, %v12171_v46  ;;  %v15015_v0 = vunpack.i.h.bf16 %v13599_v30 }
 0x88f   : > { %10064 = vmatprep.subr.bf16.mxu1 %v13835_v41 }
 0x890   : > { %6227 = vrot.lane.b32.xlu1 %v13379_v59, %s11100_s9  ;;  %v8915_v17 = vpop.f32.mrb[72].mxu0  ;;  %8974 = vmatprep.mubr.f32.mxu1 %v4426_v61  ;;  %v15010_v59 = vld [vmem:[#allocation56_spill] sm:$0xff]  ;;  %v15014_v61 = vunpack.i.l.bf16 %v13599_v30 }
 0x891   : > { %v4405_v15 = vpop.f32.mrb[73].mxu0  ;;  %8975 = vmatmul.mubr.f32.gmra.mrb[62].mxu1 %v4427_v29  ;;  %v4429_v21 = vmul.f32 %v8915_v17, %v15010_v59  ;;  %10322 = vmatpush3.bf16.msra.mxu0 %v14079_v45  ;;  %v15018_v29 = vunpack.i.l.bf16 %v13644_v36  ;;  %v7266_v17 = vld [vmem:[%s11300_s24 + $0x168] sm:$0xff] }
 0x892   : > { %v4428_v50 = vmul.f32 %v15008_v5, %v4405_v15  ;;  %6032 = vxpose.xlu0.b32.start [1/16] (narrow) %v15009_v26, 32  ;;  %10066 = vmatpush3.bf16.msra.mxu1 %v13835_v41  ;;  %v15013_v41 = vld [vmem:[#allocation58_spill] sm:$0xff]  ;;  %v15019_v15 = vunpack.i.h.bf16 %v13644_v36 }
 0x893   : > { %10068 = vmatprep.subr.bf16.mxu1 %v13871_v39 }
 0x894   : > { %3269 = vperm.xlu1 %10870, %v13438_v34   ;;  %v8918_v13 = vpop.f32.mrb[74].mxu0  ;;  %8977 = vmatprep.mubr.f32.mxu1 %v4428_v50  ;;  %v5520_v34 = vmul.f32 %v14025_v37, %v12171_v46  ;;  %v5523_v37 = vmul.f32 %v14048_v35, %v12171_v46  ;;  %v7258_v35 = vld [vmem:[%s11300_s24 + $0x128] sm:$0xff] }
 0x895   : > { %v4415_v8 = vpop.f32.mrb[75].mxu0  ;;  %8978 = vmatmul.mubr.f32.gmra.mrb[64].mxu1 %v4429_v21  ;;  %v4431_v27 = vmul.f32 %v8918_v13, %v15013_v41  ;;  %v4838_v21 = vmul.f32 %v7266_v17, %v12166_v33  ;;  %v7270_v13 = vld [vmem:[%s11300_s24 + $0x188] sm:$0xff] }
 0x896   : > { %6033 = vxpose.xlu0.b32.cont [2/16] (narrow) %v15011_v7, 32  ;;  %v4430_v42 = vmul.f32 %v15012_v62, %v4415_v8  ;;  %10070 = vmatpush3.bf16.msra.mxu1 %v13871_v39  ;;  %v4701_v39 = vpop.trf.xlu0  ;;  %v7274_v8 = vld [vmem:[%s11300_s24 + $0x1a8] sm:$0xff]  ;;  %v15020_v7 = vld [vmem:[#allocation20_spill] sm:$0xff] }
 0x897   : > { %10072 = vmatprep.subr.bf16.mxu1 %v13884_v24  ;;  %v15021_v36 = vunpack.i.l.bf16 %v15020_v7 }
 0x898   : > { %10871 = vset.pattern.permute.xlu1 %v14969_v1  ;;  %8980 = vmatprep.mubr.f32.mxu1 %v4430_v42  ;;  %v14107_v1 = vpack.c.bf16 %v5521_v25, %v5520_v34  ;;  %v4840_v34 = vmul.f32 %v7274_v8, %v12166_v33 }
 0x899   : > { %3275 = vperm.xlu1 %10871, %v14947_v22   ;;  %8981 = vmatmul.mubr.f32.gmra.mrb[66].mxu1 %v4431_v27  ;;  %v5522_v22 = vmul.f32 %v14045_v28, %v12171_v46  ;;  %v15016_v28 = vunpack.i.l.bf16 %v13633_v10  ;;  %v4839_v27 = vmul.f32 %v7270_v13, %v12166_v33 }
 0x89a   : > { %6034 = vxpose.xlu0.b32.cont [3/16] (narrow) %v15014_v61, 32  ;;  %10074 = vmatpush3.bf16.msra.mxu1 %v13884_v24  ;;  %v4702_v30 = vpop.trf.xlu0  ;;  %v15023_v61 = vld [vmem:[#allocation13_spill] sm:$0xff] }
 0x89b   : > { %10076 = vmatprep.subr.bf16.mxu1 %v13922_v14  ;;  %9015 = vmatprep.mubr.f32.mxu1 %v4701_v39  ;;  %v14118_v24 = vpack.c.bf16 %v5523_v37, %v5522_v22  ;;  %v7278_v39 = vld [vmem:[%s11300_s24 + $0x1c8] sm:$0xff] }
 0x89c   : > { %10324 = vmatprep.subr.bf16.mxu0 %v14107_v1  ;;  %v7282_v22 = vld [vmem:[%s11300_s24 + $0x1e8] sm:$0xff] }
 0x89d   : > { %6461 = vperm.xlu1 %10871, %v13476_v6   ;;  %10326 = vmatpush3.bf16.msra.mxu0 %v14107_v1 }
 0x89e   : > { %6035 = vxpose.xlu0.b32.cont [4/16] (narrow) %v15015_v0, 32  ;;  %10078 = vmatpush3.bf16.msra.mxu1 %v13922_v14  ;;  %v15017_v14 = vunpack.i.h.bf16 %v13633_v10  ;;  %v4836_v10 = vmul.f32 %v7258_v35, %v12166_v33 }
 0x89f   : > { %10080 = vmatprep.subr.bf16.mxu1 %v13924_v55  ;;  %10328 = vmatprep.subr.bf16.mxu0 %v14118_v24 }
 0x8a1   : > { %10873 = vset.pattern.permute.xlu1 %v14998_v16  ;;  %10330 = vmatpush3.bf16.msra.mxu0 %v14118_v24  ;;  %v7254_v16 = vld [vmem:[%s11300_s24 + $0x108] sm:$0xff] }
 0x8a2   : > { %6466 = vperm.xlu1 %10873, %v13476_v6   ;;  %6036 = vxpose.xlu0.b32.cont [5/16] (narrow) %v15016_v28, 32  ;;  %v4703_v6 = vpop.trf.xlu0  ;;  %v15025_v28 = vld [vmem:[#allocation14_spill] sm:$0xff] }
 0x8a3   : > { %10082 = vmatpush3.bf16.msra.mxu1 %v13924_v55  ;;  %v4835_v55 = vmul.f32 %v7254_v16, %v12166_v33 }
 0x8a4   : > { %10084 = vmatprep.subr.bf16.mxu1 %v13949_v54 }
 0x8a6   : > { %6037 = vxpose.xlu0.b32.cont [6/16] (narrow) %v15017_v14, 32  ;;  %v4704_v50 = vpop.trf.xlu0  ;;  %v14176_v14 = vpack.c.bf16 %v4840_v34, %v4839_v27  ;;  %v15032_v27 = vld [vmem:[#allocation18_spill] sm:$0xff] }
 0x8a7   : > { %10086 = vmatpush3.bf16.msra.mxu1 %v13949_v54  ;;  %v7262_v54 = vld [vmem:[%s11300_s24 + $0x148] sm:$0xff] }
 0x8a8   : > { %10088 = vmatprep.subr.bf16.mxu1 %v13970_v47  ;;  %v4837_v26 = vmul.f32 %v7262_v54, %v12166_v33 }
 0x8aa   : > { %6038 = vxpose.xlu0.b32.cont [7/16] (narrow) %v15018_v29, 32  ;;  %v14160_v42 = vpack.c.bf16 %v4838_v21, %v4837_v26  ;;  %v4842_v29 = vmul.f32 %v7282_v22, %v12166_v33  ;;  %v4843_v21 = vmul.f32 %v7254_v16, %v12171_v46  ;;  %v4846_v16 = vmul.f32 %v7266_v17, %v12171_v46 }
 0x8ab   : > { %10090 = vmatpush3.bf16.msra.mxu1 %v13970_v47  ;;  %v14148_v47 = vpack.c.bf16 %v4836_v10, %v4835_v55  ;;  %v15026_v55 = vld [vmem:[#allocation15_spill] sm:$0xff]  ;;  %v15027_v10 = vld [vmem:[#allocation26_spill] sm:$0xff] }
 0x8ac   : > { %10140 = vmatprep.subr.bf16.mxu1 %v13958_v19 }
 0x8ae   : > { %9016 = vmatmul.mubr.f32.vlgmr.msra.gmra.mrb[68].mxu1 %v4702_v30  ;;  %6039 = vxpose.xlu0.b32.cont [8/16] (narrow) %v15019_v15, 32  ;;  %v15028_v15 = vunpack.i.l.bf16 %v15027_v10 }
 0x8af   : > { %10142 = vmatpush3.bf16.msra.mxu1 %v13958_v19  ;;  %9018 = vmatprep.mubr.f32.mxu1 %v4703_v6  ;;  %v15022_v19 = vld [vmem:[#allocation21_spill] sm:$0xff]  ;;  %v4841_v6 = vmul.f32 %v7278_v39, %v12166_v33 }
 0x8b0   : > { %10144 = vmatprep.subr.bf16.mxu1 %v13960_v63 }
 0x8b1   : > { %v14188_v26 = vpack.c.bf16 %v4842_v29, %v4841_v6  ;;  %v4848_v6 = vmul.f32 %v7274_v8, %v12171_v46  ;;  %v4849_v29 = vmul.f32 %v7278_v39, %v12171_v46  ;;  %v14240_v39 = vpop.trf.xlu1 }
 0x8b2   : > { %9019 = vmatmul.mubr.f32.gmra.mrb[70].mxu1 %v4704_v50  ;;  %6040 = vxpose.xlu0.b32.cont [9/16] (narrow) %v15021_v36, 32  ;;  %v15029_v50 = vld [vmem:[#allocation16_spill] sm:$0xff]  ;;  %v15030_v36 = vld [vmem:[#allocation17_spill] sm:$0xff] }
 0x8b3   : > { %10146 = vmatpush3.bf16.msra.mxu1 %v13960_v63  ;;  %9073 = vmatprep.mubr.msk.f32.mxu1 %vm1050_vm15, %v15022_v19  ;;  %v15024_v63 = vunpack.i.h.bf16 %v15020_v7  ;;  %v4844_v7 = vmul.f32 %v7258_v35, %v12171_v46  ;;  %v15031_v19 = vunpack.i.h.bf16 %v15027_v10  ;;  %v15033_v35 = vld [vmem:[#allocation19_spill] sm:$0xff] }
 0x8b4   : > { %10148 = vmatprep.subr.bf16.mxu1 %v14148_v47 }
 0x8b5   : > { %v10831_v25 = vpop.permute.xlu0 %10830  ;;  %v14200_v34 = vpack.c.bf16 %v4844_v7, %v4843_v21 }
 0x8b6   : > { %9074 = vmatmul.mubr.msk.f32.vlgmr.msra.gmra.mrb[72].mxu1 %vm1050_vm15, %v15023_v61  ;;  %v10833_v37 = vunpack.i.h.bf16 %v10831_v25  ;;  %v10832_v0 = vunpack.i.l.bf16 %v10831_v25  ;;  %6041 = vxpose.xlu0.b32.cont [10/16] (narrow) %v15024_v63, 32  ;;  %v4845_v25 = vmul.f32 %v7262_v54, %v12171_v46  ;;  %v15034_v61 = vunpack.i.l.bf16 %v13661_v32 }
 0x8b7   : > { %9076 = vmatprep.mubr.msk.f32.mxu1 %vm1050_vm15, %v15025_v28  ;;  %10150 = vmatpush3.bf16.msra.mxu1 %v14148_v47  ;;  %v4847_v28 = vmul.f32 %v7270_v13, %v12171_v46  ;;  %v15035_v54 = vunpack.i.h.bf16 %v13661_v32 }
 0x8b8   : > { %v14173_v30 = vpack.c.bf16 %v10833_v37, %v10832_v0  ;;  %10152 = vmatprep.subr.bf16.mxu1 %v14160_v42  ;;  %v14210_v63 = vpack.c.bf16 %v4846_v16, %v4845_v25 }
 0x8b9   : > { %v14218_v17 = vpack.c.bf16 %v4848_v6, %v4847_v28  ;;  %v14228_v13 = vpop.permute.xlu0 %10840 }
 0x8ba   : > { %9077 = vmatmul.mubr.msk.f32.gmra.mrb[74].mxu1 %vm1050_vm15, %v15026_v55  ;;  %6042 = vxpose.xlu0.b32.cont [11/16] (narrow) %v15028_v15, 32  ;;  %v4850_v55 = vmul.f32 %v7282_v22, %v12171_v46  ;;  %15036 = vst [vmem:[#allocation28_spill] sm:$0xff] %v14228_v13 }
 0x8bb   : > { %9079 = vmatprep.mubr.msk.f32.mxu1 %vm1050_vm15, %v15029_v50  ;;  %10154 = vmatpush3.bf16.msra.mxu1 %v14160_v42 }
 0x8bc   : > { %10156 = vmatprep.subr.bf16.mxu1 %v14176_v14  ;;  %v14226_v32 = vpack.c.bf16 %v4850_v55, %v4849_v29 }
 0x8bd   : > { %v14234_v8 = vpop.permute.xlu0 %10845 }
 0x8be   : > { %9080 = vmatmul.mubr.msk.f32.gmra.mrb[76].mxu1 %vm1050_vm15, %v15030_v36  ;;  %6043 = vxpose.xlu0.b32.cont [12/16] (narrow) %v15031_v19, 32 }
 0x8bf   : > { %9082 = vmatprep.mubr.msk.f32.mxu1 %vm1050_vm15, %v15032_v27  ;;  %10158 = vmatpush3.bf16.msra.mxu1 %v14176_v14  ;;  %v14775_v27 = vunpack.i.l.bf16 %v14228_v13 }
 0x8c0   : > { %10160 = vmatprep.subr.bf16.mxu1 %v14188_v26 }
 0x8c2   : > { %9083 = vmatmul.mubr.msk.f32.gmra.mrb[78].mxu1 %vm1050_vm15, %v15033_v35  ;;  %6044 = vxpose.xlu0.b32.cont [13/16] (narrow) %v15034_v61, 32  ;;  %v14774_v35 = vunpack.i.h.bf16 %v14228_v13 }
 0x8c3   : > { %10162 = vmatpush3.bf16.msra.mxu1 %v14188_v26 }
 0x8c4   : > { %10164 = vmatprep.subr.bf16.mxu1 %v14200_v34 }
 0x8c6   : > { %6045 = vxpose.xlu0.b32.cont [14/16] (narrow) %v15035_v54, 32  ;;  %v10847_v54 = vunpack.i.l.bf16 %v14234_v8 }
 0x8c7   : > { %10166 = vmatpush3.bf16.msra.mxu1 %v14200_v34 }
 0x8c8   : > { %10168 = vmatprep.subr.bf16.mxu1 %v14210_v63 }
 0x8ca   : > { %6046 = vxpose.xlu0.b32.cont [15/16] (narrow) %v10811_v43, 32  ;;  %v14238_v43 = vpop.permute.xlu0 %10850 }
 0x8cb   : > { %6705 = vxpose.xlu1.b32.start [1/16] (narrow) %v10832_v0, 32  ;;  %10170 = vmatpush3.bf16.msra.mxu1 %v14210_v63 }
 0x8cc   : > { %10172 = vmatprep.subr.bf16.mxu1 %v14218_v17 }
 0x8ce   : > { %6047 = vxpose.xlu0.b32.end [16/16] (narrow) %v10812_v20, 32  ;;  %v14242_v22 = vpop.permute.xlu0 %10855 }
 0x8cf   : > { %6706 = vxpose.xlu1.b32.cont [2/16] (narrow) %v10833_v37, 32  ;;  %10174 = vmatpush3.bf16.msra.mxu1 %v14218_v17  ;;  %v14244_v37 = vpop.trf.xlu1 }
 0x8d0   : > { %10176 = vmatprep.subr.bf16.mxu1 %v14226_v32 }
 0x8d2   : > { %v14246_v52 = vpop.permute.xlu0 %10860 }
 0x8d3   : > { %10178 = vmatpush3.bf16.msra.mxu1 %v14226_v32  ;;  %v14248_v20 = vpop.trf.xlu1 }
 0x8d4   : > { %10180 = vmatprep.subr.bf16.mxu1 %v14148_v47 }
 0x8d6   : > { %v14250_v0 = vpop.permute.xlu0 %10865 }
 0x8d7   : > { %v14252_v10 = vpop.trf.xlu1 }
 0x8da   : > { %v14254_v15 = vpop.permute.xlu0 %6213 }
 0x8de   : > { %v14258_v19 = vpop.permute.xlu0 %6217 }
 0x8e2   : > { %v14265_v16 = vpop.permute.xlu0 %6221 }
 0x8f2   : > { %v10836_v50 = vpop.permute.xlu1 %10835 }
 0x8f3   : > { %v10838_v21 = vunpack.i.h.bf16 %v10836_v50  ;;  %v10837_v7 = vunpack.i.l.bf16 %v10836_v50  ;;  %v14275_v50 = vpop.permute.xlu0 %6225 }
 0x8f5   : > { %v14256_v36 = vpack.c.bf16 %v10838_v21, %v10837_v7  ;;  %6707 = vxpose.xlu1.b32.cont [3/16] (narrow) %v10837_v7, 32 }
 0x8f6   : > { %v14261_v25 = vpop.permute.xlu1 %6215 }
 0x8f7   : > { %15037 = vst [vmem:[#allocation30_spill] sm:$0xff] %v14256_v36 }
 0x8f9   : > { %6708 = vxpose.xlu1.b32.cont [4/16] (narrow) %v10838_v21, 32 }
 0x8fa   : > { %v14272_v29 = vpop.permute.xlu1 %6219 }
 0x8fd   : > { %6709 = vxpose.xlu1.b32.cont [5/16] (narrow) %v14775_v27, 32 }
 0x8fe   : > { %v14284_v36 = vpop.permute.xlu1 %6223 }
 0x8ff   : > { %v9055_v61 = vpop.f32.mrb[76].mxu0 }
 0x900   : > { %v5045_v28 = vpop.f32.mrb[77].mxu0  ;;  %v5085_v55 = vmul.f32 %v9055_v61, %v15005_v4  ;;  %v3265_v61 = vpop.permute.xlu0 %3264 }
 0x901   : > { %6710 = vxpose.xlu1.b32.cont [6/16] (narrow) %v14774_v35, 32  ;;  %v5084_v6 = vmul.f32 %v15004_v56, %v5045_v28  ;;  %v14779_v28 = vunpack.i.h.bf16 %v14234_v8 }
 0x903   : > { %v9058_v21 = vpop.f32.mrb[78].mxu0  ;;  %9117 = vmatprep.mubr.f32.mxu1 %v5084_v6 }
 0x904   : > { %v5055_v7 = vpop.f32.mrb[79].mxu0  ;;  %9118 = vmatmul.mubr.f32.vlgmr.msra.gmra.mrb[72].mxu1 %v5085_v55  ;;  %v5087_v27 = vmul.f32 %v9058_v21, %v15007_v23 }
 0x905   : > { %6711 = vxpose.xlu1.b32.cont [7/16] (narrow) %v10847_v54, 32  ;;  %v5086_v35 = vmul.f32 %v15006_v51, %v5055_v7  ;;  %10182 = vmatpush3.bf16.msra.mxu1 %v14148_v47  ;;  %v14782_v47 = vunpack.i.l.bf16 %v14238_v43 }
 0x906   : > { %10184 = vmatprep.subr.bf16.mxu1 %v14160_v42 }
 0x907   : > { %v9061_v13 = vpop.f32.mrb[80].mxu0  ;;  %9120 = vmatprep.mubr.f32.mxu1 %v5086_v35 }
 0x908   : > { %v5065_v6 = vpop.f32.mrb[81].mxu0  ;;  %9121 = vmatmul.mubr.f32.gmra.mrb[74].mxu1 %v5087_v27  ;;  %v5089_v21 = vmul.f32 %v9061_v13, %v15010_v59  ;;  %v14781_v27 = vunpack.i.h.bf16 %v14238_v43 }
 0x909   : > { %6712 = vxpose.xlu1.b32.cont [8/16] (narrow) %v14779_v28, 32  ;;  %v5088_v55 = vmul.f32 %v15008_v5, %v5065_v6  ;;  %10186 = vmatpush3.bf16.msra.mxu1 %v14160_v42  ;;  %v3281_v42 = vpop.permute.xlu0 %3280  ;;  %v14298_v6 = vpop.permute.xlu1 %6227 }
 0x90a   : > { %10188 = vmatprep.subr.bf16.mxu1 %v14176_v14 }
 0x90b   : > { %v9064_v7 = vpop.f32.mrb[82].mxu0  ;;  %9123 = vmatprep.mubr.f32.mxu1 %v5088_v55 }
 0x90c   : > { %v5075_v35 = vpop.f32.mrb[83].mxu0  ;;  %9124 = vmatmul.mubr.f32.gmra.mrb[76].mxu1 %v5089_v21  ;;  %v5091_v13 = vmul.f32 %v9064_v7, %v15013_v41  ;;  %v14784_v7 = vunpack.i.h.bf16 %v14242_v22 }
 0x90d   : > { %6713 = vxpose.xlu1.b32.cont [9/16] (narrow) %v14782_v47, 32  ;;  %v5090_v28 = vmul.f32 %v15012_v62, %v5075_v35  ;;  %10190 = vmatpush3.bf16.msra.mxu1 %v14176_v14  ;;  %v14780_v14 = vunpack.i.l.bf16 %v14242_v22 }
 0x90e   : > { %10192 = vmatprep.subr.bf16.mxu1 %v14188_v26 }
 0x90f   : > { %9126 = vmatprep.mubr.f32.mxu1 %v5090_v28 }
 0x910   : > { %9127 = vmatmul.mubr.f32.gmra.mrb[78].mxu1 %v5091_v13  ;;  %v3283_v13 = vmul.f32 %v12171_v46, %v3281_v42 }
 0x911   : > { %6714 = vxpose.xlu1.b32.cont [10/16] (narrow) %v14781_v27, 32  ;;  %10194 = vmatpush3.bf16.msra.mxu1 %v14188_v26  ;;  %v3267_v26 = vmul.f32 %v12166_v33, %v3265_v61 }
 0x912   : > { %9161 = vmatprep.mubr.f32.mxu1 %v14240_v39  ;;  %v6048_v21 = vpop.trf.xlu0  ;;  %10196 = vmatprep.subr.bf16.mxu1 %v14200_v34 }
 0x913   : > { %v3270_v55 = vpop.permute.xlu1 %3269  ;;  %9307 = vmatprep.mubr.f32.mxu0 %v6048_v21 }
 0x914   : > { %v3272_v28 = vmul.f32 %v12171_v46, %v3270_v55 }
 0x915   : > { %6715 = vxpose.xlu1.b32.cont [11/16] (narrow) %v14780_v14, 32  ;;  %10198 = vmatpush3.bf16.msra.mxu1 %v14200_v34  ;;  %v14783_v34 = vunpack.i.l.bf16 %v14246_v52 }
 0x916   : > { %v6049_v35 = vpop.trf.xlu0  ;;  %10200 = vmatprep.subr.bf16.mxu1 %v14210_v63  ;;  %v3273_v14 = vadd.f32 %v3272_v28, %v3267_v26  ;;  %v14785_v28 = vunpack.i.h.bf16 %v14246_v52 }
 0x917   : > { %9308 = vmatmul.mubr.f32.vlgmr.msra.gmra.mrb[92].mxu0 %v6049_v35  ;;  %v15038_v35 = vld [vmem:[#allocation36_spill] sm:$0xff] }
 0x918   : > { %v3276_v39 = vpop.permute.xlu1 %3275  ;;  %v3651_v42 = vrot.slane %v3273_v14, %v13719_v53 }
 0x919   : > { %v3278_v21 = vmul.f32 %v12166_v33, %v3276_v39  ;;  %6716 = vxpose.xlu1.b32.cont [12/16] (narrow) %v14784_v7, 32  ;;  %10202 = vmatpush3.bf16.msra.mxu1 %v14210_v63  ;;  %v15039_v39 = vld [vmem:[#allocation43_spill] sm:$0xff] }
 0x91a   : > { %v6050_v27 = vpop.trf.xlu0  ;;  %10204 = vmatprep.subr.bf16.mxu1 %v14218_v17  ;;  %v3652_v14 = vmul.f32 0.0, %v3651_v42 }
 0x91b   : > { %v3284_v55 = vadd.f32 %v3283_v13, %v3278_v21  ;;  %9310 = vmatprep.mubr.f32.mxu0 %v6050_v27  ;;  %v15040_v27 = vld [vmem:[#allocation39_spill] sm:$0xff] }
 0x91c   : > { %v6462_v47 = vpop.permute.xlu1 %6461 }
 0x91d   : > { %v3659_v61 = vrot.slane %v3284_v55, %v13719_v53  ;;  %6717 = vxpose.xlu1.b32.cont [13/16] (narrow) %v14783_v34, 32  ;;  %10206 = vmatpush3.bf16.msra.mxu1 %v14218_v17  ;;  %v15041_v53 = vld [vmem:[#allocation38_spill] sm:$0xff]  ;;  %v6464_v34 = vmul.f32 %v12166_v33, %v6462_v47 }
 0x91e   : > { %v6051_v63 = vpop.trf.xlu0  ;;  %10208 = vmatprep.subr.bf16.mxu1 %v14226_v32 }
 0x91f   : > { %9311 = vmatmul.mubr.f32.gmra.mrb[94].mxu0 %v6051_v63  ;;  %v3660_v26 = vmul.f32 %v3659_v61, %v15038_v35  ;;  %v3661_v13 = vmul.f32 %v15039_v39, %v3659_v61  ;;  %v3662_v21 = vmul.f32 %v3659_v61, %v15040_v27  ;;  %v3663_v17 = vmul.f32 %v15041_v53, %v3659_v61 }
 0x920   : > { %9365 = vmatprep.mubr.msk.f32.mxu0 %vm1050_vm15, %v14254_v15  ;;  %v10867_v35 = vunpack.i.l.bf16 %v14250_v0 }
 0x921   : > { %v6467_v55 = vpop.permute.xlu1 %6466  ;;  %6718 = vxpose.xlu1.b32.cont [14/16] (narrow) %v14785_v28, 32  ;;  %10210 = vmatpush3.bf16.msra.mxu1 %v14226_v32  ;;  %v3664_v27 = vadd.f32 %v3660_v26, %v3652_v14  ;;  %v3665_v7 = vadd.f32 %v3661_v13, %v3652_v14  ;;  %v3666_v28 = vadd.f32 %v3662_v21, %v3652_v14  ;;  %v15047_v21 = vunpack.i.h.bf16 %v14234_v8 }
 0x922   : > { %v6469_v63 = vmul.f32 %v12171_v46, %v6467_v55  ;;  %10260 = vmatprep.subr.bf16.mxu1 %v14038_v9  ;;  %v3667_v61 = vadd.f32 %v3663_v17, %v3652_v14  ;;  %v10868_v55 = vunpack.i.h.bf16 %v14250_v0  ;;  %v15049_v8 = vunpack.i.h.bf16 %v14238_v43  ;;  %v7260_v0 = vld [vmem:[%s11300_s24 + $0x138] sm:$0xff] }
 0x923   : > { %v10349_v53 = vpack.c.bf16 %v15047_v21, %v10847_v54 }
 0x924   : > { %v6470_v39 = vadd.f32 %v6469_v63, %v6464_v34  ;;  %9162 = vmatmul.mubr.f32.vlgmr.msra.gmra.mrb[80].mxu1 %v14244_v37 }
 0x925   : > { %6719 = vxpose.xlu1.b32.cont [15/16] (narrow) %v10867_v35, 32  ;;  %9164 = vmatprep.mubr.f32.mxu1 %v14248_v20  ;;  %v15042_v20 = vld [vmem:[#allocation22_spill] sm:$0xff] }
 0x926   : > { %10262 = vmatpush3.bf16.msra.mxu1 %v14038_v9  ;;  %v6475_v47 = vmul.f32 %v6470_v39, %v3664_v27  ;;  %v6476_v32 = vmul.f32 %v6470_v39, %v3665_v7  ;;  %v6477_v42 = vmul.f32 %v6470_v39, %v3666_v28  ;;  %v6478_v34 = vmul.f32 %v6470_v39, %v3667_v61 }
 0x927   : > { %10264 = vmatprep.subr.bf16.mxu1 %v14040_v57  ;;  %v15048_v39 = vunpack.i.l.bf16 %v14238_v43  ;;  %v15052_v43 = vunpack.i.l.bf16 %v14246_v52 }
 0x928   : > { %v10379_v26 = vpack.c.bf16 %v6476_v32, %v6475_v47  ;;  %9165 = vmatmul.mubr.f32.gmra.mrb[82].mxu1 %v14252_v10  ;;  %v10383_v37 = vpack.c.bf16 %v6478_v34, %v6477_v42  ;;  %v15044_v10 = vld [vmem:[#allocation28_spill] sm:$0xff]  ;;  %v15050_v32 = vunpack.i.l.bf16 %v14242_v22  ;;  %v15051_v42 = vunpack.i.h.bf16 %v14242_v22 }
 0x929   : > { %6720 = vxpose.xlu1.b32.end [16/16] (narrow) %v10868_v55, 32  ;;  %9219 = vmatprep.mubr.msk.f32.mxu1 %vm1050_vm15, %v15042_v20  ;;  %v15045_v7 = vunpack.i.l.bf16 %v15044_v10  ;;  %v15046_v28 = vunpack.i.h.bf16 %v15044_v10  ;;  %v10355_v54 = vpack.c.bf16 %v15049_v8, %v15048_v39  ;;  %v10373_v20 = vpack.c.bf16 %v10868_v55, %v10867_v35  ;;  %v7268_v35 = vld [vmem:[%s11300_s24 + $0x178] sm:$0xff] }
 0x92a   : > { %10266 = vmatpush3.bf16.msra.mxu1 %v14040_v57  ;;  %10380 = vmatprep.subr.bf16.mxu0 %v10379_v26  ;;  %v10361_v34 = vpack.c.bf16 %v15051_v42, %v15050_v32  ;;  %v7272_v55 = vld [vmem:[%s11300_s24 + $0x198] sm:$0xff] }
 0x92b   : > { %10268 = vmatprep.subr.bf16.mxu1 %v14009_v31  ;;  %10382 = vmatpush3.bf16.msra.mxu0 %v10379_v26  ;;  %v10343_v13 = vpack.c.bf16 %v15046_v28, %v15045_v7  ;;  %v15053_v26 = vunpack.i.h.bf16 %v14246_v52 }
 0x92c   : > { %10384 = vmatprep.subr.bf16.mxu0 %v10383_v37 }
 0x92d   : > { %9220 = vmatmul.mubr.msk.f32.vlgmr.msra.gmra.mrb[84].mxu1 %vm1050_vm15, %v13681_v11 }
 0x92e   : > { %9222 = vmatprep.mubr.msk.f32.mxu1 %vm1050_vm15, %v13730_v40  ;;  %10270 = vmatpush3.bf16.msra.mxu1 %v14009_v31 }
 0x92f   : > { %10272 = vmatprep.subr.bf16.mxu1 %v14022_v48  ;;  %10386 = vmatpush3.bf16.msra.mxu0 %v10383_v37  ;;  %v10367_v37 = vpack.c.bf16 %v15053_v26, %v15052_v43 }
 0x931   : > { %9223 = vmatmul.mubr.msk.f32.gmra.mrb[86].mxu1 %vm1050_vm15, %v13760_v12 }
 0x932   : > { %9225 = vmatprep.mubr.msk.f32.mxu1 %vm1050_vm15, %v13750_v38  ;;  %10274 = vmatpush3.bf16.msra.mxu1 %v14022_v48 }
 0x933   : > { %9366 = vmatmul.mubr.msk.f32.vlgmr.msra.gmra.mrb[96].mxu0 %vm1050_vm15, %v14261_v25  ;;  %10276 = vmatprep.subr.bf16.mxu1 %v14042_v60 }
 0x934   : > { %9368 = vmatprep.mubr.msk.f32.mxu0 %vm1050_vm15, %v14258_v19 }
 0x935   : > { %9226 = vmatmul.mubr.msk.f32.gmra.mrb[88].mxu1 %vm1050_vm15, %v13783_v3 }
 0x936   : > { %9228 = vmatprep.mubr.msk.f32.mxu1 %vm1050_vm15, %v13777_v2  ;;  %10278 = vmatpush3.bf16.msra.mxu1 %v14042_v60 }
 0x937   : > { %9369 = vmatmul.mubr.msk.f32.gmra.mrb[98].mxu0 %vm1050_vm15, %v14272_v29  ;;  %10280 = vmatprep.subr.bf16.mxu1 %v14058_v18 }
 0x938   : > { %9371 = vmatprep.mubr.msk.f32.mxu0 %vm1050_vm15, %v14265_v16 }
 0x939   : > { %9229 = vmatmul.mubr.msk.f32.gmra.mrb[90].mxu1 %vm1050_vm15, %v13803_v44 }
 0x93a   : > { %10282 = vmatpush3.bf16.msra.mxu1 %v14058_v18 }
 0x93b   : > { %9372 = vmatmul.mubr.msk.f32.gmra.mrb[100].mxu0 %vm1050_vm15, %v14284_v36  ;;  %10284 = vmatprep.subr.bf16.mxu1 %v14068_v49 }
 0x93c   : > { %9374 = vmatprep.mubr.msk.f32.mxu0 %vm1050_vm15, %v14275_v50 }
 0x93e   : > { %10286 = vmatpush3.bf16.msra.mxu1 %v14068_v49 }
 0x93f   : > { %9375 = vmatmul.mubr.msk.f32.gmra.mrb[102].mxu0 %vm1050_vm15, %v14298_v6  ;;  %10288 = vmatprep.subr.bf16.mxu1 %v14079_v45 }
 0x940   : > { %v9201_v40 = vpop.f32.mrb[84].mxu0 }
 0x941   : > { %v5718_v11 = vpop.f32.mrb[85].mxu0  ;;  %v5758_v31 = vmul.f32 %v9201_v40, %v15005_v4 }
 0x942   : > { %10290 = vmatpush3.bf16.msra.mxu1 %v14079_v45  ;;  %v5757_v38 = vmul.f32 %v15004_v56, %v5718_v11 }
 0x943   : > { %10292 = vmatprep.subr.bf16.mxu1 %v14107_v1 }
 0x944   : > { %v9204_v12 = vpop.f32.mrb[86].mxu0  ;;  %9263 = vmatprep.mubr.f32.mxu1 %v5757_v38  ;;  %v6184_v38 = vmul.f32 %v7268_v35, %v12166_v33 }
 0x945   : > { %v5728_v2 = vpop.f32.mrb[87].mxu0  ;;  %v5760_v60 = vmul.f32 %v9204_v12, %v15007_v23  ;;  %v6185_v12 = vmul.f32 %v7272_v55, %v12166_v33 }
 0x946   : > { %10294 = vmatpush3.bf16.msra.mxu1 %v14107_v1  ;;  %v5759_v48 = vmul.f32 %v15006_v51, %v5728_v2  ;;  %v15043_v1 = vld [vmem:[#allocation30_spill] sm:$0xff] }
 0x947   : > { %10296 = vmatprep.subr.bf16.mxu1 %v14118_v24 }
 0x948   : > { %v9207_v3 = vpop.f32.mrb[88].mxu0 }
 0x949   : > { %v5738_v44 = vpop.f32.mrb[89].mxu0  ;;  %v5762_v49 = vmul.f32 %v9207_v3, %v15010_v59  ;;  %v7280_v3 = vld [vmem:[%s11300_s24 + $0x1d8] sm:$0xff] }
 0x94a   : > { %10298 = vmatpush3.bf16.msra.mxu1 %v14118_v24  ;;  %v5761_v18 = vmul.f32 %v15008_v5, %v5738_v44  ;;  %v7284_v44 = vld [vmem:[%s11300_s24 + $0x1f8] sm:$0xff] }
 0x94b   : > { %10333 = vmatprep.subr.msk.bf16.mxu1 %vm11587_vm1, %v14173_v30  ;;  %v6196_v39 = vmul.f32 %v7284_v44, %v12171_v46 }
 0x94c   : > { %v9210_v9 = vpop.f32.mrb[90].mxu0 }
 0x94d   : > { %9264 = vmatmul.mubr.f32.vlgmr.msra.gmra.mrb[84].mxu1 %v5758_v31  ;;  %v5748_v57 = vpop.f32.mrb[91].mxu0  ;;  %v5764_v24 = vmul.f32 %v9210_v9, %v15013_v41  ;;  %v6188_v9 = vmul.f32 %v7284_v44, %v12166_v33 }
 0x94e   : > { %9266 = vmatprep.mubr.f32.mxu1 %v5759_v48  ;;  %v5763_v45 = vmul.f32 %v15012_v62, %v5748_v57  ;;  %v6187_v48 = vmul.f32 %v7280_v3, %v12166_v33 }
 0x950   : > { %v10399_v57 = vpack.c.bf16 %v6188_v9, %v6187_v48 }
 0x951   : > { %9267 = vmatmul.mubr.f32.gmra.mrb[86].mxu1 %v5760_v60  ;;  %v6189_v60 = vmul.f32 %v7256_v58, %v12171_v46 }
 0x952   : > { %9269 = vmatprep.mubr.f32.mxu1 %v5761_v18  ;;  %v6190_v18 = vmul.f32 %v7260_v0, %v12171_v46 }
 0x953   : > { %10336 = vmatpush3.bf16.xpose.msk.msra.mxu1 %vm11587_vm1, %v14173_v30 }
 0x954   : > { %10339 = vmatprep.subr.msk.bf16.mxu1 %vm11587_vm1, %v15043_v1 }
 0x955   : > { %9270 = vmatmul.mubr.f32.gmra.mrb[88].mxu1 %v5762_v49  ;;  %v10403_v49 = vpack.c.bf16 %v6190_v18, %v6189_v60 }
 0x956   : > { %9272 = vmatprep.mubr.f32.mxu1 %v5763_v45 }
 0x959   : > { %9273 = vmatmul.mubr.f32.gmra.mrb[90].mxu1 %v5764_v24  ;;  %v6193_v24 = vmul.f32 %v7272_v55, %v12171_v46 }
 0x95a   : > { %9345 = vmatprep.mubr.msk.f32.mxu1 %vm1050_vm15, %v14254_v15 }
 0x95b   : > { %10342 = vmatpush3.bf16.xpose.msk.msra.mxu1 %vm11587_vm1, %v15043_v1  ;;  %v6192_v1 = vmul.f32 %v7268_v35, %v12171_v46 }
 0x95c   : > { %10345 = vmatprep.subr.msk.bf16.mxu1 %vm11587_vm1, %v10343_v13 }
 0x960   : > { %v8973_v30 = vpop.f32.mrb[60].mxu1 }
 0x961   : > { %7334 = vst [vmem:[%s12741_s13 + $0x120] sm:$0xff] %v8973_v30  ;;  %v4646_v17 = vpop.f32.mrb[61].mxu1 }
 0x962   : > { %7333 = vst [vmem:[%s12741_s13 + $0x100] sm:$0xff] %v4646_v17 }
 0x963   : > { %10348 = vmatpush3.bf16.xpose.msk.msra.mxu1 %vm11587_vm1, %v10343_v13 }
 0x964   : > { %10351 = vmatprep.subr.msk.bf16.mxu1 %vm11587_vm1, %v10349_v53  ;;  %v8976_v15 = vpop.f32.mrb[62].mxu1 }
 0x965   : > { %7336 = vst [vmem:[%s12741_s13 + $0x160] sm:$0xff] %v8976_v15  ;;  %v4656_v14 = vpop.f32.mrb[63].mxu1 }
 0x966   : > { %7335 = vst [vmem:[%s12741_s13 + $0x140] sm:$0xff] %v4656_v14 }
 0x968   : > { %v8979_v63 = vpop.f32.mrb[64].mxu1 }
 0x969   : > { %7338 = vst [vmem:[%s12741_s13 + $0x1a0] sm:$0xff] %v8979_v63  ;;  %v4666_v27 = vpop.f32.mrb[65].mxu1  ;;  %v6195_v63 = vmul.f32 %v7280_v3, %v12171_v46 }
 0x96a   : > { %7337 = vst [vmem:[%s12741_s13 + $0x180] sm:$0xff] %v4666_v27 }
 0x96b   : > { %10354 = vmatpush3.bf16.xpose.msk.msra.mxu1 %vm11587_vm1, %v10349_v53  ;;  %v10415_v8 = vpack.c.bf16 %v6196_v39, %v6195_v63 }
 0x96c   : > { %10357 = vmatprep.subr.msk.bf16.mxu1 %vm11587_vm1, %v10355_v54  ;;  %v8982_v61 = vpop.f32.mrb[66].mxu1 }
 0x96d   : > { %7340 = vst [vmem:[%s12741_s13 + $0x1e0] sm:$0xff] %v8982_v61  ;;  %v4676_v47 = vpop.f32.mrb[67].mxu1 }
 0x96e   : > { %7339 = vst [vmem:[%s12741_s13 + $0x1c0] sm:$0xff] %v4676_v47 }
 0x973   : > { %10360 = vmatpush3.bf16.xpose.msk.msra.mxu1 %vm11587_vm1, %v10355_v54  ;;  %v6721_v54 = vpop.trf.xlu1 }
 0x974   : > { %10363 = vmatprep.subr.msk.bf16.mxu1 %vm11587_vm1, %v10361_v34 }
 0x977   : > { %v6722_v47 = vpop.trf.xlu1 }
 0x97b   : > { %10366 = vmatpush3.bf16.xpose.msk.msra.mxu1 %vm11587_vm1, %v10361_v34  ;;  %v6723_v32 = vpop.trf.xlu1 }
 0x97c   : > { %10369 = vmatprep.subr.msk.bf16.mxu1 %vm11587_vm1, %v10367_v37 }
 0x981   : > { %v9017_v22 = vpop.f32.mrb[68].mxu1 }
 0x982   : > { %v4783_v40 = vpop.f32.mrb[69].mxu1 }
 0x983   : > { %10372 = vmatpush3.bf16.xpose.msk.msra.mxu1 %vm11587_vm1, %v10367_v37 }
 0x984   : > { %10375 = vmatprep.subr.msk.bf16.mxu1 %vm11587_vm1, %v10373_v20 }
 0x985   : > { %v9020_v52 = vpop.f32.mrb[70].mxu1 }
 0x986   : > { %v4793_v11 = vpop.f32.mrb[71].mxu1 }
 0x98b   : > { %10378 = vmatpush3.bf16.xpose.msk.msra.mxu1 %vm11587_vm1, %v10373_v20 }
 0x992   : > { %9346 = vmatmul.mubr.msk.f32.vlgmr.msra.gmra.mrb[92].mxu1 %vm1050_vm15, %v14261_v25  ;;  %v6181_v25 = vmul.f32 %v7256_v58, %v12166_v33 }
 0x993   : > { %9348 = vmatprep.mubr.msk.f32.mxu1 %vm1050_vm15, %v14258_v19  ;;  %v7264_v19 = vld [vmem:[%s11300_s24 + $0x158] sm:$0xff] }
 0x994   : > { %v6191_v45 = vmul.f32 %v7264_v19, %v12171_v46 }
 0x996   : > { %9349 = vmatmul.mubr.msk.f32.gmra.mrb[94].mxu1 %vm1050_vm15, %v14272_v29  ;;  %v6182_v29 = vmul.f32 %v7260_v0, %v12166_v33 }
 0x997   : > { %9351 = vmatprep.mubr.msk.f32.mxu1 %vm1050_vm15, %v14265_v16  ;;  %v6183_v16 = vmul.f32 %v7264_v19, %v12166_v33 }
 0x999   : > { %v10391_v2 = vpack.c.bf16 %v6184_v38, %v6183_v16 }
 0x99a   : > { %9352 = vmatmul.mubr.msk.f32.gmra.mrb[96].mxu1 %vm1050_vm15, %v14284_v36  ;;  %v7276_v36 = vld [vmem:[%s11300_s24 + $0x1b8] sm:$0xff]  ;;  %s6871_s24 = sshll.u32 %s12741_s13, 4  ;;  %s14552_s24 = int_to_ptr.vmem [resolvable:$true] %s6871_s24 }
 0x99b   : > { %9354 = vmatprep.mubr.msk.f32.mxu1 %vm1050_vm15, %v14275_v50  ;;  %v10387_v50 = vpack.c.bf16 %v6182_v29, %v6181_v25  ;;  %v6194_v10 = vmul.f32 %v7276_v36, %v12171_v46  ;;  %v6724_v46 = vpop.trf.xlu1  ;;  %s11004_s18 = scalar_lea.vmem %s14552_s24, 8192  ;;  %p11011_p10 = scmp.lt.s32.totalorder %s14552_s24, %s11009_s7 }
 0x99c   : > { %p11005_p3 = scmp.ne.s32.totalorder %s14552_s24, %s11004_s18  ;;  %p11012_p12 = scmp.lt.s32.totalorder %s11010_s14, %s11004_s18 }
 0x99d   : > { %10388 = vmatprep.subr.bf16.mxu0 %v10387_v50  ;;  %10420 = vmatprep.subr.bf16.mxu1 %v10387_v50  ;;  %v10411_v7 = vpack.c.bf16 %v6194_v10, %v6193_v24 }
 0x99e   : > { %9355 = vmatmul.mubr.msk.f32.gmra.mrb[98].mxu1 %vm1050_vm15, %v14298_v6  ;;  %v6186_v6 = vmul.f32 %v7276_v36, %v12166_v33  ;;  %10390 = vmatpush3.bf16.msra.mxu0 %v10387_v50  ;;  %v10407_v33 = vpack.c.bf16 %v6192_v1, %v6191_v45  ;;  %p11006_p13 = pnand %p11005_p3, %p15054_p11  ;;  %p11013_p9 = por %p11012_p12, %p11011_p10 }
 0x99f   : > { %10422 = vmatpush3.bf16.msra.mxu1 %v10387_v50  ;;  %10392 = vmatprep.subr.bf16.mxu0 %v10391_v2 }
 0x9a0   : > { %v10395_v31 = vpack.c.bf16 %v6186_v6, %v6185_v12  ;;  %10424 = vmatprep.subr.bf16.mxu1 %v10391_v2  ;;  %9453 = vmatprep.mubr.f32.mxu1 %v6721_v54  ;;  %p11007_p7 = pneg %p11006_p13 }
 0x9a2   : > { %10394 = vmatpush3.bf16.msra.mxu0 %v10391_v2  ;;  %p11014_p1 = pnand %p11013_p9, %p11007_p7 }
 0x9a3   : > { %10426 = vmatpush3.bf16.msra.mxu1 %v10391_v2  ;;  %10396 = vmatprep.subr.bf16.mxu0 %v10395_v31 }
 0x9a4   : > { %10428 = vmatprep.subr.bf16.mxu1 %v10395_v31 }
 0x9a6   : > { %10398 = vmatpush3.bf16.msra.mxu0 %v10395_v31 }
 0x9a7   : > { %10430 = vmatpush3.bf16.msra.mxu1 %v10395_v31  ;;  %10400 = vmatprep.subr.bf16.mxu0 %v10399_v57 }
 0x9a8   : > { %10432 = vmatprep.subr.bf16.mxu1 %v10399_v57 }
 0x9aa   : > { %10402 = vmatpush3.bf16.msra.mxu0 %v10399_v57 }
 0x9ab   : > { %10434 = vmatpush3.bf16.msra.mxu1 %v10399_v57  ;;  %10404 = vmatprep.subr.bf16.mxu0 %v10403_v49 }
 0x9ac   : > { %10436 = vmatprep.subr.bf16.mxu1 %v10403_v49 }
 0x9ae   : > { %10406 = vmatpush3.bf16.msra.mxu0 %v10403_v49 }
 0x9af   : > { %10438 = vmatpush3.bf16.msra.mxu1 %v10403_v49  ;;  %10408 = vmatprep.subr.bf16.mxu0 %v10407_v33 }
 0x9b0   : > { %10440 = vmatprep.subr.bf16.mxu1 %v10407_v33 }
 0x9b2   : > { %10410 = vmatpush3.bf16.msra.mxu0 %v10407_v33 }
 0x9b3   : > { %10442 = vmatpush3.bf16.msra.mxu1 %v10407_v33  ;;  %10412 = vmatprep.subr.bf16.mxu0 %v10411_v7 }
 0x9b4   : > { %10444 = vmatprep.subr.bf16.mxu1 %v10411_v7 }
 0x9b6   : > { %10414 = vmatpush3.bf16.msra.mxu0 %v10411_v7 }
 0x9b7   : > { %10446 = vmatpush3.bf16.msra.mxu1 %v10411_v7  ;;  %10416 = vmatprep.subr.bf16.mxu0 %v10415_v8 }
 0x9b8   : > { %10448 = vmatprep.subr.bf16.mxu1 %v10415_v8 }
 0x9ba   : > { %10418 = vmatpush3.bf16.msra.mxu0 %v10415_v8 }
 0x9bb   : > { %10450 = vmatpush3.bf16.msra.mxu1 %v10415_v8 }
 0x9be   : > { %9454 = vmatmul.mubr.f32.vlgmr.msra.gmra.mrb[100].mxu1 %v6722_v47 }
 0x9bf   : > { %9456 = vmatprep.mubr.f32.mxu1 %v6723_v32 }
 0x9c2   : > { %9457 = vmatmul.mubr.f32.gmra.mrb[102].mxu1 %v6724_v46 }
 0x9d7   : > { %v9119_v28 = vpop.f32.mrb[72].mxu1 }
 0x9d8   : > { %7374 = vst [vmem:[%s12741_s13 + $0x128] sm:$0xff] %v9119_v28  ;;  %v5304_v13 = vpop.f32.mrb[73].mxu1 }
 0x9d9   : > { %7373 = vst [vmem:[%s12741_s13 + $0x108] sm:$0xff] %v5304_v13 }
 0x9db   : > { %v9122_v30 = vpop.f32.mrb[74].mxu1 }
 0x9dc   : > { %7376 = vst [vmem:[%s12741_s13 + $0x168] sm:$0xff] %v9122_v30  ;;  %v5314_v21 = vpop.f32.mrb[75].mxu1 }
 0x9dd   : > { %7375 = vst [vmem:[%s12741_s13 + $0x148] sm:$0xff] %v5314_v21 }
 0x9df   : > { %v9125_v53 = vpop.f32.mrb[76].mxu1 }
 0x9e0   : > { %7378 = vst [vmem:[%s12741_s13 + $0x1a8] sm:$0xff] %v9125_v53  ;;  %v5324_v17 = vpop.f32.mrb[77].mxu1 }
 0x9e1   : > { %7377 = vst [vmem:[%s12741_s13 + $0x188] sm:$0xff] %v5324_v17 }
 0x9e3   : > { %v9128_v15 = vpop.f32.mrb[78].mxu1 }
 0x9e4   : > { %7380 = vst [vmem:[%s12741_s13 + $0x1e8] sm:$0xff] %v9128_v15  ;;  %v5334_v14 = vpop.f32.mrb[79].mxu1 }
 0x9e5   : > { %7379 = vst [vmem:[%s12741_s13 + $0x1c8] sm:$0xff] %v5334_v14 }
 0x9ea   : > { %v9309_v27 = vpop.f32.mrb[92].mxu0 }
 0x9eb   : > { %v6130_v61 = vpop.f32.mrb[93].mxu0 }
 0x9f2   : > { %v9312_v42 = vpop.f32.mrb[94].mxu0 }
 0x9f3   : > { %v6140_v34 = vpop.f32.mrb[95].mxu0 }
 0x9f7   : > { %v9163_v43 = vpop.f32.mrb[80].mxu1 }
 0x9f8   : > { %v5457_v26 = vpop.f32.mrb[81].mxu1 }
 0x9fb   : > { %v9166_v37 = vpop.f32.mrb[82].mxu1 }
 0x9fc   : > { %v5467_v22 = vpop.f32.mrb[83].mxu1 }
 0xa20   : > { %v9265_v20 = vpop.f32.mrb[84].mxu1 }
 0xa21   : > { %7414 = vst [vmem:[%s12741_s13 + $0x130] sm:$0xff] %v9265_v20  ;;  %v5977_v40 = vpop.f32.mrb[85].mxu1 }
 0xa22   : > { %7413 = vst [vmem:[%s12741_s13 + $0x110] sm:$0xff] %v5977_v40 }
 0xa24   : > { %v9268_v52 = vpop.f32.mrb[86].mxu1 }
 0xa25   : > { %7416 = vst [vmem:[%s12741_s13 + $0x170] sm:$0xff] %v9268_v52  ;;  %v5987_v11 = vpop.f32.mrb[87].mxu1 }
 0xa26   : > { %7415 = vst [vmem:[%s12741_s13 + $0x150] sm:$0xff] %v5987_v11 }
 0xa28   : > { %v9271_v58 = vpop.f32.mrb[88].mxu1 }
 0xa29   : > { %7418 = vst [vmem:[%s12741_s13 + $0x1b0] sm:$0xff] %v9271_v58  ;;  %v5997_v0 = vpop.f32.mrb[89].mxu1 }
 0xa2a   : > { %7417 = vst [vmem:[%s12741_s13 + $0x190] sm:$0xff] %v5997_v0 }
 0xa2c   : > { %v9274_v19 = vpop.f32.mrb[90].mxu1 }
 0xa2d   : > { %7420 = vst [vmem:[%s12741_s13 + $0x1f0] sm:$0xff] %v9274_v19  ;;  %v6007_v25 = vpop.f32.mrb[91].mxu1 }
 0xa2e   : > { %7419 = vst [vmem:[%s12741_s13 + $0x1d0] sm:$0xff] %v6007_v25 }
 0xa65   : > { %v9347_v29 = vpop.f32.mrb[92].mxu1 }
 0xa66   : > { %v6391_v35 = vpop.f32.mrb[93].mxu1  ;;  %v6431_v55 = vmul.f32 %v9347_v29, %v15005_v4 }
 0xa67   : > { %v6430_v16 = vmul.f32 %v15004_v56, %v6391_v35 }
 0xa69   : > { %v9350_v36 = vpop.f32.mrb[94].mxu1  ;;  %9409 = vmatprep.mubr.f32.mxu0 %v6430_v16 }
 0xa6a   : > { %v6401_v38 = vpop.f32.mrb[95].mxu1  ;;  %9410 = vmatmul.mubr.f32.vlgmr.msra.gmra.mrb[96].mxu0 %v6431_v55  ;;  %v6433_v12 = vmul.f32 %v9350_v36, %v15007_v23 }
 0xa6b   : > { %v6432_v50 = vmul.f32 %v15006_v51, %v6401_v38 }
 0xa6d   : > { %v9353_v6 = vpop.f32.mrb[96].mxu1  ;;  %9412 = vmatprep.mubr.f32.mxu0 %v6432_v50 }
 0xa6e   : > { %v6411_v2 = vpop.f32.mrb[97].mxu1  ;;  %9413 = vmatmul.mubr.f32.gmra.mrb[98].mxu0 %v6433_v12  ;;  %v6435_v44 = vmul.f32 %v9353_v6, %v15010_v59 }
 0xa6f   : > { %v6434_v3 = vmul.f32 %v15008_v5, %v6411_v2 }
 0xa71   : > { %v9356_v56 = vpop.f32.mrb[98].mxu1  ;;  %9415 = vmatprep.mubr.f32.mxu0 %v6434_v3 }
 0xa72   : > { %v6421_v4 = vpop.f32.mrb[99].mxu1  ;;  %9416 = vmatmul.mubr.f32.gmra.mrb[100].mxu0 %v6435_v44  ;;  %v6437_v23 = vmul.f32 %v9356_v56, %v15013_v41 }
 0xa73   : > { %v6436_v51 = vmul.f32 %v15012_v62, %v6421_v4 }
 0xa75   : > { %9418 = vmatprep.mubr.f32.mxu0 %v6436_v51 }
 0xa76   : > { %9419 = vmatmul.mubr.f32.gmra.mrb[102].mxu0 %v6437_v23 }
 0xa91   : > { %v9455_v31 = vpop.f32.mrb[100].mxu1 }
 0xa92   : > { %v6803_v5 = vpop.f32.mrb[101].mxu1 }
 0xa95   : > { %v9458_v59 = vpop.f32.mrb[102].mxu1 }
 0xa96   : > { %v6813_v48 = vpop.f32.mrb[103].mxu1 }
 0xb3d   : > { %v9411_v9 = vpop.f32.mrb[96].mxu0 }
 0xb3e   : > { %7454 = vst [vmem:[%s12741_s13 + $0x138] sm:$0xff] %v9411_v9  ;;  %v6650_v57 = vpop.f32.mrb[97].mxu0 }
 0xb3f   : > { %7453 = vst [vmem:[%s12741_s13 + $0x118] sm:$0xff] %v6650_v57 }
 0xb41   : > { %v9414_v60 = vpop.f32.mrb[98].mxu0 }
 0xb42   : > { %7456 = vst [vmem:[%s12741_s13 + $0x178] sm:$0xff] %v9414_v60  ;;  %v6660_v62 = vpop.f32.mrb[99].mxu0 }
 0xb43   : > { %7455 = vst [vmem:[%s12741_s13 + $0x158] sm:$0xff] %v6660_v62 }
 0xb45   : > { %v9417_v41 = vpop.f32.mrb[100].mxu0 }
 0xb46   : > { %7458 = vst [vmem:[%s12741_s13 + $0x1b8] sm:$0xff] %v9417_v41  ;;  %v6670_v18 = vpop.f32.mrb[101].mxu0 }
 0xb47   : > { %7457 = vst [vmem:[%s12741_s13 + $0x198] sm:$0xff] %v6670_v18 }
 0xb49   : > { %v9420_v49 = vpop.f32.mrb[102].mxu0 }
 0xb4a   : > { %7460 = vst [vmem:[%s12741_s13 + $0x1f8] sm:$0xff] %v9420_v49  ;;  %v6680_v45 = vpop.f32.mrb[103].mxu0 }
 0xb4b   : > { %7459 = vst [vmem:[%s12741_s13 + $0x1d8] sm:$0xff] %v6680_v45 }
 0xb4c   : > { %11017 = shalt.err (!%p11014_p1)
}
 0xb4d   : > { %s11018_s12 = scalar_lea.hbm %s14550_s11, 8192  ;;  %s11022_s5 = scalar_lea.hbm %s14608_s4, 16384 }
 0xb4e   : > { %p11019_p6 = scmp.ne.s32.totalorder %s14550_s11, %s11018_s12  ;;  %p11023_p4 = scmp.lt.u32.totalorder %s14550_s11, %s14608_s4 }
 0xb4f   : > { %p11024_p8 = scmp.lt.u32.totalorder %s11022_s5, %s11018_s12  ;;  %p11026_p3 = scmp.lt.u32.totalorder %s11018_s12, %s14550_s11 }
 0xb50   : > { %p11020_p2 = pnand %p11019_p6, %p15054_p11 }
 0xb51   : > { %p11025_p0 = por %p11024_p8, %p11023_p4 }
 0xb52   : > { %p11021_p5 = pneg %p11020_p2 }
 0xb53   : > { %p11027_p13 = por %p11026_p3, %p11025_p0 }
 0xb55   : > { %p11028_p7 = pnand %p11027_p13, %p11021_p5 }
 0xb57   : > { %11031 = shalt.err (!%p11028_p7)
}
 0xb58   : > { %s11112_s26 = smov 512  }
 0xb59   : > { %10519 = dma.vmem_to_hbm [thread:$0]  (%p15054_p11), %s14552_s24, 8192, %s14550_s11, %s6855_s27, %s11112_s26, %s11112_s26, %s11100_s9  }
 0xb5a PF: > { %s6886_s8 = sand.u32 1, %s11070_s15   ;;  %p15055_p10 = scmp.ne.s32.totalorder %s14789_s30, 0 }
 0xb5b   : > { %p15056_p12 = scmp.ge.s32.totalorder %s11090_s20, 2  ;;  %s6887_s18 = scalar_lea.sflag [#allocation5], %s6886_s8 }
 0xb5d   : > { %p10529_p9 = pnand %p15056_p12, %p15055_p10 }
 0xb5f   : > { %11065 = dma.done.wait (!%p10529_p9), %s6887_s18, 8192  }
 0xb60   : > { %11067 = vsyncadd (!%p10529_p9), %s6887_s18, 4294959104  ;;  %s23_s20 = sadd.s32 1, %s11090_s20   ;;  %s15057_s15 = smov %s11074_s16 }
 0xb61   : > { %p20_p1 = scmp.ge.s32.totalorder %s23_s20, 4   ;;  %s15058_s16 = smov %s11078_s17 }
 0xb62   : > { %s15059_s17 = smov %s11194_s29  ;;  %s15060_s18 = smov %s11086_s19 }
 0xb63   : > { %s15061_s19 = smov %s15063_s23  ;;  %22 = sbr.rel (!%p20_p1) target bundleno = 8 (0x8), region = 112 }
 0xb6a   :  { %6892 = vsyncpa [#allocation4], 1 }
 0xb6b   :  { %6894 = vsyncpa [#allocation4 + $0x1], 1 }
 0xb6c   :  { %6895 = vsyncpa [#allocation7], 1 }
 0xb6d   :  { %6897 = vsyncpa [#allocation7 + $0x1], 1 }
 0xb6e   :  { %6898 = vsyncpa [#allocation5], 1 }
 0xb6f   :  { %6900 = vsyncpa [#allocation5 + $0x1], 1 }

</bundles_post_ra>
